<compile_context>
chip_gen: v5e
topology: v5e:2x2
jax: 0.10.0
libtpu: 0.0.40
codegen_flags: <defaults>
</compile_context>

<pallas_src>
import functools
import math

import jax
import jax.numpy as jnp
from jax.experimental import pallas as pl
from jax.experimental.pallas import tpu as pltpu


def prod(lst):
    r = 1
    for v in lst:
        r *= v
    return r


def _pad_dim(x, axis, mult):
    """Zero-pad `axis` of x up to a multiple of `mult` (no-op if aligned)."""
    size = x.shape[axis]
    pad = (-size) % mult
    if pad == 0:
        return x
    widths = [(0, 0)] * x.ndim
    widths[axis] = (0, pad)
    return jnp.pad(x, widths)


# ----------------------------------------------------------------------------
# Pallas kernels
# ----------------------------------------------------------------------------
def _linear_kernel(x_ref, w_ref, b_ref, o_ref):
    """o = x @ w + b ; bf16 operands, f32 accumulation, bf16 output."""
    acc = jnp.dot(x_ref[...], w_ref[...], preferred_element_type=jnp.float32)
    o_ref[...] = (acc + b_ref[...].astype(jnp.float32)).astype(o_ref.dtype)


def pallas_linear(x, w, b, *, tm=512, out_dtype=jnp.bfloat16):
    """M-tiled, pipelined matmul+bias (patch-embed conv / pooling convs)."""
    x = x.astype(jnp.bfloat16)
    w = w.astype(jnp.bfloat16)
    M, K = x.shape
    _, N = w.shape
    tm = min(tm, M)                         # full dim when M is small
    grid_m = pl.cdiv(M, tm)
    return pl.pallas_call(
        _linear_kernel,
        out_shape=jax.ShapeDtypeStruct((M, N), out_dtype),
        grid=(grid_m,),
        in_specs=[
            pl.BlockSpec((tm, K), lambda i: (i, 0)),
            pl.BlockSpec((K, N), lambda i: (0, 0)),
            pl.BlockSpec((1, N), lambda i: (0, 0)),
        ],
        out_specs=pl.BlockSpec((tm, N), lambda i: (i, 0)),
        compiler_params=pltpu.CompilerParams(
            dimension_semantics=("parallel",)),
    )(x, w, b.reshape(1, N).astype(jnp.float32))


def _layernorm_f32(x, w, b, eps=1e-5):
    # single-pass variance: E[x^2] - mean^2
    mean = jnp.mean(x, axis=-1, keepdims=True)
    var = jnp.mean(x * x, axis=-1, keepdims=True) - mean * mean
    return (x - mean) * jax.lax.rsqrt(var + eps) * w + b


def _gelu_exact(x):
    # nn.GELU() default = exact (erf) GELU
    return 0.5 * x * (1.0 + jax.lax.erf(x * (1.0 / math.sqrt(2.0))))


def _transformer_block_kernel(num_heads,
                              x_ref, ln1w_ref, ln1b_ref,
                              wqkv_ref, bqkv_ref, wo_ref, bo_ref,
                              ln2w_ref, ln2b_ref,
                              w1_ref, b1_ref, w2_ref, b2_ref,
                              o_ref):
    x = x_ref[0].astype(jnp.float32)                 # (S, D), residuals in f32
    S, D = x.shape
    dh = D // num_heads
    scale = 1.0 / math.sqrt(dh)

    # ---- x = x + MHA(LN1(x)) ------------------------------------------------
    xn = _layernorm_f32(x, ln1w_ref[...], ln1b_ref[...])
    qkv = (jnp.dot(xn.astype(jnp.bfloat16), wqkv_ref[...],
                   preferred_element_type=jnp.float32)
           + bqkv_ref[...])                          # (S, 3D) f32
    qkv = qkv.astype(jnp.bfloat16)
    qh = qkv[:, 0 * D:1 * D].reshape(S, num_heads, dh).transpose(1, 0, 2)
    kh = qkv[:, 1 * D:2 * D].reshape(S, num_heads, dh).transpose(1, 0, 2)
    vh = qkv[:, 2 * D:3 * D].reshape(S, num_heads, dh).transpose(1, 0, 2)

    # batched multi-head attention: heads are the batch dim of the dot_general
    s = jnp.einsum("hqc,hkc->hqk", qh, kh,
                   preferred_element_type=jnp.float32) * scale   # (H, S, S) f32
    s = s - jnp.max(s, axis=-1, keepdims=True)
    p = jnp.exp(s)
    p = p * pl.reciprocal(jnp.sum(p, axis=-1, keepdims=True), approx=True)
    ctx = jnp.einsum("hqk,hkc->hqc", p.astype(jnp.bfloat16), vh,
                     preferred_element_type=jnp.float32)          # (H, S, dh)
    ctx = ctx.transpose(1, 0, 2).reshape(S, D)

    attn = (jnp.dot(ctx.astype(jnp.bfloat16), wo_ref[...],
                    preferred_element_type=jnp.float32) + bo_ref[...])
    x = x + attn                  # attention / out-proj dropout: identity (eval)

    # ---- x = x + MLP(LN2(x)) ------------------------------------------------
    xn2 = _layernorm_f32(x, ln2w_ref[...], ln2b_ref[...])
    h = (jnp.dot(xn2.astype(jnp.bfloat16), w1_ref[...],
                 preferred_element_type=jnp.float32) + b1_ref[...])
    h = _gelu_exact(h)
    mlp = (jnp.dot(h.astype(jnp.bfloat16), w2_ref[...],
                   preferred_element_type=jnp.float32) + b2_ref[...])
    x = x + mlp

    o_ref[0] = x.astype(o_ref.dtype)


def pallas_transformer_block(x, blk, num_heads):
    B, S, D = x.shape
    M = blk["w1"].shape[1]
    kernel = functools.partial(_transformer_block_kernel, num_heads)

    def full(shape):
        n = len(shape)
        return pl.BlockSpec(shape, lambda b, n=n: (0,) * n)

    return pl.pallas_call(
        kernel,
        out_shape=jax.ShapeDtypeStruct((B, S, D), jnp.bfloat16),
        grid=(B,),
        in_specs=[
            pl.BlockSpec((1, S, D), lambda b: (b, 0, 0)),
            full((1, D)), full((1, D)),           # ln1
            full((D, 3 * D)), full((1, 3 * D)),   # fused q/k/v projection
            full((D, D)), full((1, D)),           # out proj
            full((1, D)), full((1, D)),           # ln2
            full((D, M)), full((1, M)),           # mlp fc1
            full((M, D)), full((1, D)),           # mlp fc2
        ],
        out_specs=pl.BlockSpec((1, S, D), lambda b: (b, 0, 0)),
        compiler_params=pltpu.CompilerParams(
            dimension_semantics=("parallel",),
            vmem_limit_bytes=48 * 1024 * 1024),
    )(x.astype(jnp.bfloat16),
      blk["ln1w"], blk["ln1b"], blk["wqkv"], blk["bqkv"],
      blk["wo"], blk["bo"], blk["ln2w"], blk["ln2b"],
      blk["w1"], blk["b1"], blk["w2"], blk["b2"])


# ----------------------------------------------------------------------------
# Parameter construction (deterministic, synthetic — no checkpoint loading)
# ----------------------------------------------------------------------------
def init_params(key, *, in_channels, patch_size, hidden_dim, mlp_dim,
                num_levels, num_layers, num_patches, pool_ratios):
    depth = num_layers // num_levels
    keys = iter(jax.random.split(key, 256))

    def xavier(shape):
        bound = math.sqrt(6.0 / (shape[0] + shape[1]))
        return jax.random.uniform(next(keys), shape, jnp.float32, -bound, bound)

    params = {}
    kpp = in_channels * patch_size * patch_size
    # Conv2d patch-embed weight, pre-flattened to (C*p*p, hidden) for x @ W.
    params["patch_w"] = (jax.random.normal(next(keys), (kpp, hidden_dim),
                                           jnp.float32) * 0.02).astype(jnp.bfloat16)
    params["patch_b"] = jnp.zeros((hidden_dim,), jnp.float32)

    params["pos"] = []
    for i in range(num_levels):
        n = num_patches // (prod(pool_ratios[:i]) if i > 0 else 1)
        params["pos"].append(
            jax.random.normal(next(keys), (n, hidden_dim), jnp.float32) * 0.02)

    params["blocks"] = []
    for _lvl in range(num_levels):
        lvl_blocks = []
        for _d in range(depth):
            wqkv = jnp.concatenate(
                [xavier((hidden_dim, hidden_dim)) for _ in range(3)], axis=1)
            blk = {
                "ln1w": jnp.ones((1, hidden_dim), jnp.float32),
                "ln1b": jnp.zeros((1, hidden_dim), jnp.float32),
                "wqkv": wqkv.astype(jnp.bfloat16),
                "bqkv": jnp.zeros((1, 3 * hidden_dim), jnp.float32),
                "wo": xavier((hidden_dim, hidden_dim)).astype(jnp.bfloat16),
                "bo": jnp.zeros((1, hidden_dim), jnp.float32),
                "ln2w": jnp.ones((1, hidden_dim), jnp.float32),
                "ln2b": jnp.zeros((1, hidden_dim), jnp.float32),
                "w1": xavier((hidden_dim, mlp_dim)).astype(jnp.bfloat16),
                "b1": jnp.zeros((1, mlp_dim), jnp.float32),
                "w2": xavier((mlp_dim, hidden_dim)).astype(jnp.bfloat16),
                "b2": jnp.zeros((1, hidden_dim), jnp.float32),
            }
            lvl_blocks.append(blk)
        params["blocks"].append(lvl_blocks)

    params["pool_w"], params["pool_b"] = [], []
    for lvl in range(num_levels - 1):
        r = pool_ratios[lvl]
        # Conv2d(hidden, hidden, k=r, s=r) weight flattened to (r*r*hidden, hidden),
        # matching the (kh, kw, c) patch flatten order used in the wrapper below.
        params["pool_w"].append(
            (jax.random.normal(next(keys), (r * r * hidden_dim, hidden_dim),
                               jnp.float32) * 0.02).astype(jnp.bfloat16))
        params["pool_b"].append(jnp.zeros((hidden_dim,), jnp.float32))
    return params


# ----------------------------------------------------------------------------
# Forward pass (glue in plain JAX, hot paths in Pallas)
# ----------------------------------------------------------------------------
def hierarchical_vit_forward(x, params, *, patch_size, num_heads, num_levels,
                             pool_ratios):
    B, C, H, W = x.shape
    p = patch_size
    gh, gw = H // p, W // p
    D = params["patch_w"].shape[1]

    # patch embed: NCHW -> (B*num_patches, C*p*p) patches, then Pallas matmul.
    # contraction dim padded to a multiple of 128 (no ragged MXU K).
    patches = (x.reshape(B, C, gh, p, gw, p)
                 .transpose(0, 2, 4, 1, 3, 5)
                 .reshape(B * gh * gw, C * p * p))
    patches = _pad_dim(patches.astype(jnp.bfloat16), 1, 128)
    patch_w = _pad_dim(params["patch_w"], 0, 128)
    tokens = pallas_linear(patches, patch_w, params["patch_b"])
    tokens = tokens.reshape(B, gh * gw, D)           # b (h w) c, bf16

    curr_h, curr_w = gh, gw
    for level in range(num_levels):
        S = tokens.shape[1]
        # positional embedding add (cheap elementwise glue, f32 then back to bf16)
        pos = params["pos"][level][:S][None, :, :]
        tokens = (tokens.astype(jnp.float32) + pos).astype(jnp.bfloat16)
        for blk in params["blocks"][level]:
            tokens = pallas_transformer_block(tokens, blk, num_heads)
        if level < num_levels - 1:
            r = pool_ratios[level]
            t = tokens.reshape(B, curr_h, curr_w, D)
            t = (t.reshape(B, curr_h // r, r, curr_w // r, r, D)
                   .transpose(0, 1, 3, 2, 4, 5)
                   .reshape(B * (curr_h // r) * (curr_w // r), r * r * D))
            pooled = pallas_linear(t, params["pool_w"][level],
                                   params["pool_b"][level])
            curr_h, curr_w = curr_h // r, curr_w // r
            tokens = pooled.reshape(B, curr_h * curr_w, D)

    # return_features=False path: b (h w) c -> b c h w
    out = tokens.reshape(B, curr_h, curr_w, D).transpose(0, 3, 1, 2)
    return out.astype(jnp.float32), None


# ----------------------------------------------------------------------------
if __name__ == "__main__":
    # small config consistent with the module (scaled down, lane-dense dims)
    B, C = 2, 3
    IMG, PATCH = 32, 8
    HIDDEN, HEADS, MLP = 128, 4, 256          # hidden/mlp multiples of 128
    NUM_LEVELS, NUM_LAYERS = 3, 3             # depth per level = 1
    POOL_RATIOS = [2, 2, 2]
    NUM_PATCHES = (IMG // PATCH) ** 2         # 16 -> 4 -> 1 tokens across levels

    key = jax.random.PRNGKey(0)
    kx, kp = jax.random.split(key)
    x = jax.random.normal(kx, (B, C, IMG, IMG), jnp.float32)

    params = init_params(
        kp, in_channels=C, patch_size=PATCH, hidden_dim=HIDDEN, mlp_dim=MLP,
        num_levels=NUM_LEVELS, num_layers=NUM_LAYERS, num_patches=NUM_PATCHES,
        pool_ratios=POOL_RATIOS)

    fwd = jax.jit(functools.partial(
        hierarchical_vit_forward, patch_size=PATCH, num_heads=HEADS,
        num_levels=NUM_LEVELS, pool_ratios=tuple(POOL_RATIOS)))
    out, feats = fwd(x, params)
    jax.block_until_ready(out)
    assert out.shape == (B, HIDDEN, 1, 1)
    print("KERNEL_OK")
</pallas_src>

<mosaic_0001>
module attributes {stable_mosaic.version = 11 : i64} {
  func.func @_linear_kernel(%arg0: i32, %arg1: memref<32x256xbf16, #tpu.memory_space<vmem>>, %arg2: memref<256x128xbf16, #tpu.memory_space<vmem>>, %arg3: memref<1x128xf32, #tpu.memory_space<vmem>>, %arg4: memref<32x128xbf16, #tpu.memory_space<vmem>>) attributes {dimension_semantics = [#tpu.dimension_semantics<parallel>], iteration_bounds = array<i64: 1>, scalar_prefetch = 0 : i64, scratch_operands = 0 : i64, tpu.core_type = #tpu.core_type<tc>, window_params = [{transform_indices = @transform_0, window_bounds = array<i64: 32, 256>}, {pipeline_mode = #tpu.pipeline_mode<synchronous>, transform_indices = @transform_1, window_bounds = array<i64: 256, 128>}, {pipeline_mode = #tpu.pipeline_mode<synchronous>, transform_indices = @transform_2, window_bounds = array<i64: 1, 128>}, {transform_indices = @transform_3, window_bounds = array<i64: 32, 128>}]} {
    %c0 = arith.constant 0 : index
    %c0_0 = arith.constant 0 : index
    %0 = vector.load %arg1[%c0, %c0_0] : memref<32x256xbf16, #tpu.memory_space<vmem>>, vector<32x256xbf16>
    %c0_1 = arith.constant 0 : index
    %c0_2 = arith.constant 0 : index
    %1 = vector.load %arg2[%c0_1, %c0_2] : memref<256x128xbf16, #tpu.memory_space<vmem>>, vector<256x128xbf16>
    %cst = arith.constant dense<0.000000e+00> : vector<32x128xf32>
    %2 = tpu.matmul %0, %1, %cst {dimension_numbers = #tpu.dot_dimension_numbers<[1], [0], [0], [1], [0, 0, 1, 1], [], []>} : vector<32x256xbf16>, vector<256x128xbf16>, vector<32x128xf32> -> vector<32x128xf32>
    %c0_3 = arith.constant 0 : index
    %c0_4 = arith.constant 0 : index
    %3 = vector.load %arg3[%c0_3, %c0_4] : memref<1x128xf32, #tpu.memory_space<vmem>>, vector<1x128xf32>
    %4 = vector.broadcast %3 : vector<1x128xf32> to vector<32x128xf32>
    %5 = arith.addf %2, %4 : vector<32x128xf32>
    %6 = arith.truncf %5 : vector<32x128xf32> to vector<32x128xbf16>
    %c0_5 = arith.constant 0 : index
    %c0_6 = arith.constant 0 : index
    %7 = vector.load %arg4[%c0_5, %c0_6] : memref<32x128xbf16, #tpu.memory_space<vmem>>, vector<32x128xbf16>
    tpu.vector_store %arg4[%c0_5, %c0_6], %6 {strides = array<i32>} : memref<32x128xbf16, #tpu.memory_space<vmem>>, vector<32x128xbf16>,
    return
  }
  func.func @transform_0(%arg0: i32) -> (i32, i32) {
    %c0_i32 = arith.constant 0 : i32
    %c0_i32_0 = arith.constant 0 : i32
    return %arg0, %c0_i32 : i32, i32
  }
  func.func @transform_1(%arg0: i32) -> (i32, i32) {
    %c0_i32 = arith.constant 0 : i32
    %c0_i32_0 = arith.constant 0 : i32
    %c0_i32_1 = arith.constant 0 : i32
    return %c0_i32, %c0_i32_0 : i32, i32
  }
  func.func @transform_2(%arg0: i32) -> (i32, i32) {
    %c0_i32 = arith.constant 0 : i32
    %c0_i32_0 = arith.constant 0 : i32
    %c0_i32_1 = arith.constant 0 : i32
    return %c0_i32, %c0_i32_0 : i32, i32
  }
  func.func @transform_3(%arg0: i32) -> (i32, i32) {
    %c0_i32 = arith.constant 0 : i32
    %c0_i32_0 = arith.constant 0 : i32
    return %arg0, %c0_i32 : i32, i32
  }
}

module attributes {stable_mosaic.version = 11 : i64} {
  func.func @_transformer_block_kernel(%arg0: i32, %arg1: memref<1x16x128xbf16, #tpu.memory_space<vmem>>, %arg2: memref<1x128xf32, #tpu.memory_space<vmem>>, %arg3: memref<1x128xf32, #tpu.memory_space<vmem>>, %arg4: memref<128x384xbf16, #tpu.memory_space<vmem>>, %arg5: memref<1x384xf32, #tpu.memory_space<vmem>>, %arg6: memref<128x128xbf16, #tpu.memory_space<vmem>>, %arg7: memref<1x128xf32, #tpu.memory_space<vmem>>, %arg8: memref<1x128xf32, #tpu.memory_space<vmem>>, %arg9: memref<1x128xf32, #tpu.memory_space<vmem>>, %arg10: memref<128x256xbf16, #tpu.memory_space<vmem>>, %arg11: memref<1x256xf32, #tpu.memory_space<vmem>>, %arg12: memref<256x128xbf16, #tpu.memory_space<vmem>>, %arg13: memref<1x128xf32, #tpu.memory_space<vmem>>, %arg14: memref<1x16x128xbf16, #tpu.memory_space<vmem>>) attributes {dimension_semantics = [#tpu.dimension_semantics<parallel>], iteration_bounds = array<i64: 2>, scalar_prefetch = 0 : i64, scratch_operands = 0 : i64, tpu.core_type = #tpu.core_type<tc>, window_params = [{transform_indices = @transform_0, window_bounds = array<i64: 1, 16, 128>}, {pipeline_mode = #tpu.pipeline_mode<synchronous>, transform_indices = @transform_1, window_bounds = array<i64: 1, 128>}, {pipeline_mode = #tpu.pipeline_mode<synchronous>, transform_indices = @transform_2, window_bounds = array<i64: 1, 128>}, {pipeline_mode = #tpu.pipeline_mode<synchronous>, transform_indices = @transform_3, window_bounds = array<i64: 128, 384>}, {pipeline_mode = #tpu.pipeline_mode<synchronous>, transform_indices = @transform_4, window_bounds = array<i64: 1, 384>}, {pipeline_mode = #tpu.pipeline_mode<synchronous>, transform_indices = @transform_5, window_bounds = array<i64: 128, 128>}, {pipeline_mode = #tpu.pipeline_mode<synchronous>, transform_indices = @transform_6, window_bounds = array<i64: 1, 128>}, {pipeline_mode = #tpu.pipeline_mode<synchronous>, transform_indices = @transform_7, window_bounds = array<i64: 1, 128>}, {pipeline_mode = #tpu.pipeline_mode<synchronous>, transform_indices = @transform_8, window_bounds = array<i64: 1, 128>}, {pipeline_mode = #tpu.pipeline_mode<synchronous>, transform_indices = @transform_9, window_bounds = array<i64: 128, 256>}, {pipeline_mode = #tpu.pipeline_mode<synchronous>, transform_indices = @transform_10, window_bounds = array<i64: 1, 256>}, {pipeline_mode = #tpu.pipeline_mode<synchronous>, transform_indices = @transform_11, window_bounds = array<i64: 256, 128>}, {pipeline_mode = #tpu.pipeline_mode<synchronous>, transform_indices = @transform_12, window_bounds = array<i64: 1, 128>}, {transform_indices = @transform_13, window_bounds = array<i64: 1, 16, 128>}]} {
    %c0 = arith.constant 0 : index
    %c0_0 = arith.constant 0 : index
    %c0_1 = arith.constant 0 : index
    %0 = vector.load %arg1[%c0, %c0_0, %c0_1] : memref<1x16x128xbf16, #tpu.memory_space<vmem>>, vector<1x16x128xbf16>
    %1 = vector.shape_cast %0 : vector<1x16x128xbf16> to vector<16x128xbf16>
    %2 = arith.extf %1 : vector<16x128xbf16> to vector<16x128xf32>
    %c0_2 = arith.constant 0 : index
    %c0_3 = arith.constant 0 : index
    %3 = vector.load %arg2[%c0_2, %c0_3] : memref<1x128xf32, #tpu.memory_space<vmem>>, vector<1x128xf32>
    %c0_4 = arith.constant 0 : index
    %c0_5 = arith.constant 0 : index
    %4 = vector.load %arg3[%c0_4, %c0_5] : memref<1x128xf32, #tpu.memory_space<vmem>>, vector<1x128xf32>
    %cst = arith.constant dense<0.000000e+00> : vector<16xf32>
    %5 = vector.multi_reduction <add>, %2, %cst [1] : vector<16x128xf32> to vector<16xf32>
    %6 = vector.shape_cast %5 : vector<16xf32> to vector<16x1xf32>
    %cst_6 = arith.constant 1.280000e+02 : f32
    %7 = vector.broadcast %cst_6 : f32 to vector<16x1xf32>
    %8 = arith.divf %6, %7 : vector<16x1xf32>
    %9 = arith.mulf %2, %2 : vector<16x128xf32>
    %cst_7 = arith.constant dense<0.000000e+00> : vector<16xf32>
    %10 = vector.multi_reduction <add>, %9, %cst_7 [1] : vector<16x128xf32> to vector<16xf32>
    %11 = vector.shape_cast %10 : vector<16xf32> to vector<16x1xf32>
    %cst_8 = arith.constant 1.280000e+02 : f32
    %12 = vector.broadcast %cst_8 : f32 to vector<16x1xf32>
    %13 = arith.divf %11, %12 : vector<16x1xf32>
    %14 = arith.mulf %8, %8 : vector<16x1xf32>
    %15 = arith.subf %13, %14 : vector<16x1xf32>
    %16 = vector.broadcast %8 : vector<16x1xf32> to vector<16x128xf32>
    %17 = arith.subf %2, %16 : vector<16x128xf32>
    %cst_9 = arith.constant 9.99999974E-6 : f32
    %18 = vector.broadcast %cst_9 : f32 to vector<16x1xf32>
    %19 = arith.addf %15, %18 : vector<16x1xf32>
    %20 = math.rsqrt %19 : vector<16x1xf32>
    %21 = vector.broadcast %20 : vector<16x1xf32> to vector<16x128xf32>
    %22 = arith.mulf %17, %21 : vector<16x128xf32>
    %23 = vector.broadcast %3 : vector<1x128xf32> to vector<16x128xf32>
    %24 = arith.mulf %22, %23 : vector<16x128xf32>
    %25 = vector.broadcast %4 : vector<1x128xf32> to vector<16x128xf32>
    %26 = arith.addf %24, %25 : vector<16x128xf32>
    %27 = arith.truncf %26 : vector<16x128xf32> to vector<16x128xbf16>
    %c0_10 = arith.constant 0 : index
    %c0_11 = arith.constant 0 : index
    %28 = vector.load %arg4[%c0_10, %c0_11] : memref<128x384xbf16, #tpu.memory_space<vmem>>, vector<128x384xbf16>
    %cst_12 = arith.constant dense<0.000000e+00> : vector<16x384xf32>
    %29 = tpu.matmul %27, %28, %cst_12 {dimension_numbers = #tpu.dot_dimension_numbers<[1], [0], [0], [1], [0, 0, 1, 1], [], []>} : vector<16x128xbf16>, vector<128x384xbf16>, vector<16x384xf32> -> vector<16x384xf32>
    %c0_13 = arith.constant 0 : index
    %c0_14 = arith.constant 0 : index
    %30 = vector.load %arg5[%c0_13, %c0_14] : memref<1x384xf32, #tpu.memory_space<vmem>>, vector<1x384xf32>
    %31 = vector.broadcast %30 : vector<1x384xf32> to vector<16x384xf32>
    %32 = arith.addf %29, %31 : vector<16x384xf32>
    %33 = arith.truncf %32 : vector<16x384xf32> to vector<16x384xbf16>
    %34 = vector.extract_strided_slice %33 {offsets = [0, 0], sizes = [16, 128], strides = [1, 1]} : vector<16x384xbf16> to vector<16x128xbf16>
    %35 = vector.shape_cast %34 : vector<16x128xbf16> to vector<16x4x32xbf16>
    %36 = tpu.transpose %35, [1, 0, 2] : vector<16x4x32xbf16> -> vector<4x16x32xbf16>
    %37 = vector.extract_strided_slice %33 {offsets = [0, 128], sizes = [16, 128], strides = [1, 1]} : vector<16x384xbf16> to vector<16x128xbf16>
    %38 = vector.shape_cast %37 : vector<16x128xbf16> to vector<16x4x32xbf16>
    %39 = tpu.transpose %38, [1, 0, 2] : vector<16x4x32xbf16> -> vector<4x16x32xbf16>
    %40 = vector.extract_strided_slice %33 {offsets = [0, 256], sizes = [16, 128], strides = [1, 1]} : vector<16x384xbf16> to vector<16x128xbf16>
    %41 = vector.shape_cast %40 : vector<16x128xbf16> to vector<16x4x32xbf16>
    %42 = tpu.transpose %41, [1, 0, 2] : vector<16x4x32xbf16> -> vector<4x16x32xbf16>
    "tpu.trace_start"() <{level = 10 : i32, message = "hqc,hkc->hqk"}> : () -> ()
    %cst_15 = arith.constant dense<0.000000e+00> : vector<4x16x16xf32>
    %43 = tpu.matmul %36, %39, %cst_15 {dimension_numbers = #tpu.dot_dimension_numbers<[2], [2], [1], [1], [0, 0, 0, 1, 1, 1], [0], [0]>} : vector<4x16x32xbf16>, vector<4x16x32xbf16>, vector<4x16x16xf32> -> vector<4x16x16xf32>
    "tpu.trace_stop"() : () -> ()
    %cst_16 = arith.constant 0.176776692 : f32
    %44 = vector.broadcast %cst_16 : f32 to vector<4x16x16xf32>
    %45 = arith.mulf %43, %44 : vector<4x16x16xf32>
    %cst_17 = arith.constant dense<0xFF800000> : vector<4x16xf32>
    %46 = vector.multi_reduction <maximumf>, %45, %cst_17 [2] : vector<4x16x16xf32> to vector<4x16xf32>
    %47 = vector.shape_cast %46 : vector<4x16xf32> to vector<4x16x1xf32>
    %48 = vector.broadcast %47 : vector<4x16x1xf32> to vector<4x16x16xf32>
    %49 = arith.subf %45, %48 : vector<4x16x16xf32>
    %50 = math.exp %49 : vector<4x16x16xf32>
    %cst_18 = arith.constant dense<0.000000e+00> : vector<4x16xf32>
    %51 = vector.multi_reduction <add>, %50, %cst_18 [2] : vector<4x16x16xf32> to vector<4x16xf32>
    %52 = vector.shape_cast %51 : vector<4x16xf32> to vector<4x16x1xf32>
    %53 = tpu.reciprocal %52 {approx = true} : vector<4x16x1xf32> -> vector<4x16x1xf32>
    %54 = vector.broadcast %53 : vector<4x16x1xf32> to vector<4x16x16xf32>
    %55 = arith.mulf %50, %54 : vector<4x16x16xf32>
    %56 = arith.truncf %55 : vector<4x16x16xf32> to vector<4x16x16xbf16>
    "tpu.trace_start"() <{level = 10 : i32, message = "hqk,hkc->hqc"}> : () -> ()
    %cst_19 = arith.constant dense<0.000000e+00> : vector<4x16x32xf32>
    %57 = tpu.matmul %56, %42, %cst_19 {dimension_numbers = #tpu.dot_dimension_numbers<[2], [1], [1], [2], [0, 0, 0, 1, 1, 2], [0], [0]>} : vector<4x16x16xbf16>, vector<4x16x32xbf16>, vector<4x16x32xf32> -> vector<4x16x32xf32>
    "tpu.trace_stop"() : () -> ()
    %58 = tpu.transpose %57, [1, 0, 2] : vector<4x16x32xf32> -> vector<16x4x32xf32>
    %59 = vector.shape_cast %58 : vector<16x4x32xf32> to vector<16x128xf32>
    %60 = arith.truncf %59 : vector<16x128xf32> to vector<16x128xbf16>
    %c0_20 = arith.constant 0 : index
    %c0_21 = arith.constant 0 : index
    %61 = vector.load %arg6[%c0_20, %c0_21] : memref<128x128xbf16, #tpu.memory_space<vmem>>, vector<128x128xbf16>
    %cst_22 = arith.constant dense<0.000000e+00> : vector<16x128xf32>
    %62 = tpu.matmul %60, %61, %cst_22 {dimension_numbers = #tpu.dot_dimension_numbers<[1], [0], [0], [1], [0, 0, 1, 1], [], []>} : vector<16x128xbf16>, vector<128x128xbf16>, vector<16x128xf32> -> vector<16x128xf32>
    %c0_23 = arith.constant 0 : index
    %c0_24 = arith.constant 0 : index
    %63 = vector.load %arg7[%c0_23, %c0_24] : memref<1x128xf32, #tpu.memory_space<vmem>>, vector<1x128xf32>
    %64 = vector.broadcast %63 : vector<1x128xf32> to vector<16x128xf32>
    %65 = arith.addf %62, %64 : vector<16x128xf32>
    %66 = arith.addf %2, %65 : vector<16x128xf32>
    %c0_25 = arith.constant 0 : index
    %c0_26 = arith.constant 0 : index
    %67 = vector.load %arg8[%c0_25, %c0_26] : memref<1x128xf32, #tpu.memory_space<vmem>>, vector<1x128xf32>
    %c0_27 = arith.constant 0 : index
    %c0_28 = arith.constant 0 : index
    %68 = vector.load %arg9[%c0_27, %c0_28] : memref<1x128xf32, #tpu.memory_space<vmem>>, vector<1x128xf32>
    %cst_29 = arith.constant dense<0.000000e+00> : vector<16xf32>
    %69 = vector.multi_reduction <add>, %66, %cst_29 [1] : vector<16x128xf32> to vector<16xf32>
    %70 = vector.shape_cast %69 : vector<16xf32> to vector<16x1xf32>
    %cst_30 = arith.constant 1.280000e+02 : f32
    %71 = vector.broadcast %cst_30 : f32 to vector<16x1xf32>
    %72 = arith.divf %70, %71 : vector<16x1xf32>
    %73 = arith.mulf %66, %66 : vector<16x128xf32>
    %cst_31 = arith.constant dense<0.000000e+00> : vector<16xf32>
    %74 = vector.multi_reduction <add>, %73, %cst_31 [1] : vector<16x128xf32> to vector<16xf32>
    %75 = vector.shape_cast %74 : vector<16xf32> to vector<16x1xf32>
    %cst_32 = arith.constant 1.280000e+02 : f32
    %76 = vector.broadcast %cst_32 : f32 to vector<16x1xf32>
    %77 = arith.divf %75, %76 : vector<16x1xf32>
    %78 = arith.mulf %72, %72 : vector<16x1xf32>
    %79 = arith.subf %77, %78 : vector<16x1xf32>
    %80 = vector.broadcast %72 : vector<16x1xf32> to vector<16x128xf32>
    %81 = arith.subf %66, %80 : vector<16x128xf32>
    %cst_33 = arith.constant 9.99999974E-6 : f32
    %82 = vector.broadcast %cst_33 : f32 to vector<16x1xf32>
    %83 = arith.addf %79, %82 : vector<16x1xf32>
    %84 = math.rsqrt %83 : vector<16x1xf32>
    %85 = vector.broadcast %84 : vector<16x1xf32> to vector<16x128xf32>
    %86 = arith.mulf %81, %85 : vector<16x128xf32>
    %87 = vector.broadcast %67 : vector<1x128xf32> to vector<16x128xf32>
    %88 = arith.mulf %86, %87 : vector<16x128xf32>
    %89 = vector.broadcast %68 : vector<1x128xf32> to vector<16x128xf32>
    %90 = arith.addf %88, %89 : vector<16x128xf32>
    %91 = arith.truncf %90 : vector<16x128xf32> to vector<16x128xbf16>
    %c0_34 = arith.constant 0 : index
    %c0_35 = arith.constant 0 : index
    %92 = vector.load %arg10[%c0_34, %c0_35] : memref<128x256xbf16, #tpu.memory_space<vmem>>, vector<128x256xbf16>
    %cst_36 = arith.constant dense<0.000000e+00> : vector<16x256xf32>
    %93 = tpu.matmul %91, %92, %cst_36 {dimension_numbers = #tpu.dot_dimension_numbers<[1], [0], [0], [1], [0, 0, 1, 1], [], []>} : vector<16x128xbf16>, vector<128x256xbf16>, vector<16x256xf32> -> vector<16x256xf32>
    %c0_37 = arith.constant 0 : index
    %c0_38 = arith.constant 0 : index
    %94 = vector.load %arg11[%c0_37, %c0_38] : memref<1x256xf32, #tpu.memory_space<vmem>>, vector<1x256xf32>
    %95 = vector.broadcast %94 : vector<1x256xf32> to vector<16x256xf32>
    %96 = arith.addf %93, %95 : vector<16x256xf32>
    %cst_39 = arith.constant 5.000000e-01 : f32
    %97 = vector.broadcast %cst_39 : f32 to vector<16x256xf32>
    %98 = arith.mulf %97, %96 : vector<16x256xf32>
    %cst_40 = arith.constant 0.707106769 : f32
    %99 = vector.broadcast %cst_40 : f32 to vector<16x256xf32>
    %100 = arith.mulf %96, %99 : vector<16x256xf32>
    %101 = math.erf %100 : vector<16x256xf32>
    %cst_41 = arith.constant 1.000000e+00 : f32
    %102 = vector.broadcast %cst_41 : f32 to vector<16x256xf32>
    %103 = arith.addf %102, %101 : vector<16x256xf32>
    %104 = arith.mulf %98, %103 : vector<16x256xf32>
    %105 = arith.truncf %104 : vector<16x256xf32> to vector<16x256xbf16>
    %c0_42 = arith.constant 0 : index
    %c0_43 = arith.constant 0 : index
    %106 = vector.load %arg12[%c0_42, %c0_43] : memref<256x128xbf16, #tpu.memory_space<vmem>>, vector<256x128xbf16>
    %cst_44 = arith.constant dense<0.000000e+00> : vector<16x128xf32>
    %107 = tpu.matmul %105, %106, %cst_44 {dimension_numbers = #tpu.dot_dimension_numbers<[1], [0], [0], [1], [0, 0, 1, 1], [], []>} : vector<16x256xbf16>, vector<256x128xbf16>, vector<16x128xf32> -> vector<16x128xf32>
    %c0_45 = arith.constant 0 : index
    %c0_46 = arith.constant 0 : index
    %108 = vector.load %arg13[%c0_45, %c0_46] : memref<1x128xf32, #tpu.memory_space<vmem>>, vector<1x128xf32>
    %109 = vector.broadcast %108 : vector<1x128xf32> to vector<16x128xf32>
    %110 = arith.addf %107, %109 : vector<16x128xf32>
    %111 = arith.addf %66, %110 : vector<16x128xf32>
    %112 = arith.truncf %111 : vector<16x128xf32> to vector<16x128xbf16>
    %c0_47 = arith.constant 0 : index
    %c0_48 = arith.constant 0 : index
    %c0_49 = arith.constant 0 : index
    %113 = vector.load %arg14[%c0_47, %c0_48, %c0_49] : memref<1x16x128xbf16, #tpu.memory_space<vmem>>, vector<1x16x128xbf16>
    %114 = vector.shape_cast %113 : vector<1x16x128xbf16> to vector<16x128xbf16>
    %115 = vector.shape_cast %112 : vector<16x128xbf16> to vector<1x16x128xbf16>
    tpu.vector_store %arg14[%c0_47, %c0_48, %c0_49], %115 {strides = array<i32>} : memref<1x16x128xbf16, #tpu.memory_space<vmem>>, vector<1x16x128xbf16>,
    return
  }
  func.func @transform_0(%arg0: i32) -> (i32, i32, i32) {
    %c0_i32 = arith.constant 0 : i32
    %c0_i32_0 = arith.constant 0 : i32
    %c0_i32_1 = arith.constant 0 : i32
    return %arg0, %c0_i32, %c0_i32_0 : i32, i32, i32
  }
  func.func @transform_1(%arg0: i32) -> (i32, i32) {
    %c0_i32 = arith.constant 0 : i32
    %c0_i32_0 = arith.constant 0 : i32
    %c0_i32_1 = arith.constant 0 : i32
    return %c0_i32, %c0_i32_0 : i32, i32
  }
  func.func @transform_2(%arg0: i32) -> (i32, i32) {
    %c0_i32 = arith.constant 0 : i32
    %c0_i32_0 = arith.constant 0 : i32
    %c0_i32_1 = arith.constant 0 : i32
    return %c0_i32, %c0_i32_0 : i32, i32
  }
  func.func @transform_3(%arg0: i32) -> (i32, i32) {
    %c0_i32 = arith.constant 0 : i32
    %c0_i32_0 = arith.constant 0 : i32
    %c0_i32_1 = arith.constant 0 : i32
    return %c0_i32, %c0_i32_0 : i32, i32
  }
  func.func @transform_4(%arg0: i32) -> (i32, i32) {
    %c0_i32 = arith.constant 0 : i32
    %c0_i32_0 = arith.constant 0 : i32
    %c0_i32_1 = arith.constant 0 : i32
    return %c0_i32, %c0_i32_0 : i32, i32
  }
  func.func @transform_5(%arg0: i32) -> (i32, i32) {
    %c0_i32 = arith.constant 0 : i32
    %c0_i32_0 = arith.constant 0 : i32
    %c0_i32_1 = arith.constant 0 : i32
    return %c0_i32, %c0_i32_0 : i32, i32
  }
  func.func @transform_6(%arg0: i32) -> (i32, i32) {
    %c0_i32 = arith.constant 0 : i32
    %c0_i32_0 = arith.constant 0 : i32
    %c0_i32_1 = arith.constant 0 : i32
    return %c0_i32, %c0_i32_0 : i32, i32
  }
  func.func @transform_7(%arg0: i32) -> (i32, i32) {
    %c0_i32 = arith.constant 0 : i32
    %c0_i32_0 = arith.constant 0 : i32
    %c0_i32_1 = arith.constant 0 : i32
    return %c0_i32, %c0_i32_0 : i32, i32
  }
  func.func @transform_8(%arg0: i32) -> (i32, i32) {
    %c0_i32 = arith.constant 0 : i32
    %c0_i32_0 = arith.constant 0 : i32
    %c0_i32_1 = arith.constant 0 : i32
    return %c0_i32, %c0_i32_0 : i32, i32
  }
  func.func @transform_9(%arg0: i32) -> (i32, i32) {
    %c0_i32 = arith.constant 0 : i32
    %c0_i32_0 = arith.constant 0 : i32
    %c0_i32_1 = arith.constant 0 : i32
    return %c0_i32, %c0_i32_0 : i32, i32
  }
  func.func @transform_10(%arg0: i32) -> (i32, i32) {
    %c0_i32 = arith.constant 0 : i32
    %c0_i32_0 = arith.constant 0 : i32
    %c0_i32_1 = arith.constant 0 : i32
    return %c0_i32, %c0_i32_0 : i32, i32
  }
  func.func @transform_11(%arg0: i32) -> (i32, i32) {
    %c0_i32 = arith.constant 0 : i32
    %c0_i32_0 = arith.constant 0 : i32
    %c0_i32_1 = arith.constant 0 : i32
    return %c0_i32, %c0_i32_0 : i32, i32
  }
  func.func @transform_12(%arg0: i32) -> (i32, i32) {
    %c0_i32 = arith.constant 0 : i32
    %c0_i32_0 = arith.constant 0 : i32
    %c0_i32_1 = arith.constant 0 : i32
    return %c0_i32, %c0_i32_0 : i32, i32
  }
  func.func @transform_13(%arg0: i32) -> (i32, i32, i32) {
    %c0_i32 = arith.constant 0 : i32
    %c0_i32_0 = arith.constant 0 : i32
    %c0_i32_1 = arith.constant 0 : i32
    return %arg0, %c0_i32, %c0_i32_0 : i32, i32, i32
  }
}

module attributes {stable_mosaic.version = 11 : i64} {
  func.func @_linear_kernel(%arg0: i32, %arg1: memref<8x512xbf16, #tpu.memory_space<vmem>>, %arg2: memref<512x128xbf16, #tpu.memory_space<vmem>>, %arg3: memref<1x128xf32, #tpu.memory_space<vmem>>, %arg4: memref<8x128xbf16, #tpu.memory_space<vmem>>) attributes {dimension_semantics = [#tpu.dimension_semantics<parallel>], iteration_bounds = array<i64: 1>, scalar_prefetch = 0 : i64, scratch_operands = 0 : i64, tpu.core_type = #tpu.core_type<tc>, window_params = [{transform_indices = @transform_0, window_bounds = array<i64: 8, 512>}, {pipeline_mode = #tpu.pipeline_mode<synchronous>, transform_indices = @transform_1, window_bounds = array<i64: 512, 128>}, {pipeline_mode = #tpu.pipeline_mode<synchronous>, transform_indices = @transform_2, window_bounds = array<i64: 1, 128>}, {transform_indices = @transform_3, window_bounds = array<i64: 8, 128>}]} {
    %c0 = arith.constant 0 : index
    %c0_0 = arith.constant 0 : index
    %0 = vector.load %arg1[%c0, %c0_0] : memref<8x512xbf16, #tpu.memory_space<vmem>>, vector<8x512xbf16>
    %c0_1 = arith.constant 0 : index
    %c0_2 = arith.constant 0 : index
    %1 = vector.load %arg2[%c0_1, %c0_2] : memref<512x128xbf16, #tpu.memory_space<vmem>>, vector<512x128xbf16>
    %cst = arith.constant dense<0.000000e+00> : vector<8x128xf32>
    %2 = tpu.matmul %0, %1, %cst {dimension_numbers = #tpu.dot_dimension_numbers<[1], [0], [0], [1], [0, 0, 1, 1], [], []>} : vector<8x512xbf16>, vector<512x128xbf16>, vector<8x128xf32> -> vector<8x128xf32>
    %c0_3 = arith.constant 0 : index
    %c0_4 = arith.constant 0 : index
    %3 = vector.load %arg3[%c0_3, %c0_4] : memref<1x128xf32, #tpu.memory_space<vmem>>, vector<1x128xf32>
    %4 = vector.broadcast %3 : vector<1x128xf32> to vector<8x128xf32>
    %5 = arith.addf %2, %4 : vector<8x128xf32>
    %6 = arith.truncf %5 : vector<8x128xf32> to vector<8x128xbf16>
    %c0_5 = arith.constant 0 : index
    %c0_6 = arith.constant 0 : index
    %7 = vector.load %arg4[%c0_5, %c0_6] : memref<8x128xbf16, #tpu.memory_space<vmem>>, vector<8x128xbf16>
    tpu.vector_store %arg4[%c0_5, %c0_6], %6 {strides = array<i32>} : memref<8x128xbf16, #tpu.memory_space<vmem>>, vector<8x128xbf16>,
    return
  }
  func.func @transform_0(%arg0: i32) -> (i32, i32) {
    %c0_i32 = arith.constant 0 : i32
    %c0_i32_0 = arith.constant 0 : i32
    return %arg0, %c0_i32 : i32, i32
  }
  func.func @transform_1(%arg0: i32) -> (i32, i32) {
    %c0_i32 = arith.constant 0 : i32
    %c0_i32_0 = arith.constant 0 : i32
    %c0_i32_1 = arith.constant 0 : i32
    return %c0_i32, %c0_i32_0 : i32, i32
  }
  func.func @transform_2(%arg0: i32) -> (i32, i32) {
    %c0_i32 = arith.constant 0 : i32
    %c0_i32_0 = arith.constant 0 : i32
    %c0_i32_1 = arith.constant 0 : i32
    return %c0_i32, %c0_i32_0 : i32, i32
  }
  func.func @transform_3(%arg0: i32) -> (i32, i32) {
    %c0_i32 = arith.constant 0 : i32
    %c0_i32_0 = arith.constant 0 : i32
    return %arg0, %c0_i32 : i32, i32
  }
}

module attributes {stable_mosaic.version = 11 : i64} {
  func.func @_transformer_block_kernel(%arg0: i32, %arg1: memref<1x4x128xbf16, #tpu.memory_space<vmem>>, %arg2: memref<1x128xf32, #tpu.memory_space<vmem>>, %arg3: memref<1x128xf32, #tpu.memory_space<vmem>>, %arg4: memref<128x384xbf16, #tpu.memory_space<vmem>>, %arg5: memref<1x384xf32, #tpu.memory_space<vmem>>, %arg6: memref<128x128xbf16, #tpu.memory_space<vmem>>, %arg7: memref<1x128xf32, #tpu.memory_space<vmem>>, %arg8: memref<1x128xf32, #tpu.memory_space<vmem>>, %arg9: memref<1x128xf32, #tpu.memory_space<vmem>>, %arg10: memref<128x256xbf16, #tpu.memory_space<vmem>>, %arg11: memref<1x256xf32, #tpu.memory_space<vmem>>, %arg12: memref<256x128xbf16, #tpu.memory_space<vmem>>, %arg13: memref<1x128xf32, #tpu.memory_space<vmem>>, %arg14: memref<1x4x128xbf16, #tpu.memory_space<vmem>>) attributes {dimension_semantics = [#tpu.dimension_semantics<parallel>], iteration_bounds = array<i64: 2>, scalar_prefetch = 0 : i64, scratch_operands = 0 : i64, tpu.core_type = #tpu.core_type<tc>, window_params = [{transform_indices = @transform_0, window_bounds = array<i64: 1, 4, 128>}, {pipeline_mode = #tpu.pipeline_mode<synchronous>, transform_indices = @transform_1, window_bounds = array<i64: 1, 128>}, {pipeline_mode = #tpu.pipeline_mode<synchronous>, transform_indices = @transform_2, window_bounds = array<i64: 1, 128>}, {pipeline_mode = #tpu.pipeline_mode<synchronous>, transform_indices = @transform_3, window_bounds = array<i64: 128, 384>}, {pipeline_mode = #tpu.pipeline_mode<synchronous>, transform_indices = @transform_4, window_bounds = array<i64: 1, 384>}, {pipeline_mode = #tpu.pipeline_mode<synchronous>, transform_indices = @transform_5, window_bounds = array<i64: 128, 128>}, {pipeline_mode = #tpu.pipeline_mode<synchronous>, transform_indices = @transform_6, window_bounds = array<i64: 1, 128>}, {pipeline_mode = #tpu.pipeline_mode<synchronous>, transform_indices = @transform_7, window_bounds = array<i64: 1, 128>}, {pipeline_mode = #tpu.pipeline_mode<synchronous>, transform_indices = @transform_8, window_bounds = array<i64: 1, 128>}, {pipeline_mode = #tpu.pipeline_mode<synchronous>, transform_indices = @transform_9, window_bounds = array<i64: 128, 256>}, {pipeline_mode = #tpu.pipeline_mode<synchronous>, transform_indices = @transform_10, window_bounds = array<i64: 1, 256>}, {pipeline_mode = #tpu.pipeline_mode<synchronous>, transform_indices = @transform_11, window_bounds = array<i64: 256, 128>}, {pipeline_mode = #tpu.pipeline_mode<synchronous>, transform_indices = @transform_12, window_bounds = array<i64: 1, 128>}, {transform_indices = @transform_13, window_bounds = array<i64: 1, 4, 128>}]} {
    %c0 = arith.constant 0 : index
    %c0_0 = arith.constant 0 : index
    %c0_1 = arith.constant 0 : index
    %0 = vector.load %arg1[%c0, %c0_0, %c0_1] : memref<1x4x128xbf16, #tpu.memory_space<vmem>>, vector<1x4x128xbf16>
    %1 = vector.shape_cast %0 : vector<1x4x128xbf16> to vector<4x128xbf16>
    %2 = arith.extf %1 : vector<4x128xbf16> to vector<4x128xf32>
    %c0_2 = arith.constant 0 : index
    %c0_3 = arith.constant 0 : index
    %3 = vector.load %arg2[%c0_2, %c0_3] : memref<1x128xf32, #tpu.memory_space<vmem>>, vector<1x128xf32>
    %c0_4 = arith.constant 0 : index
    %c0_5 = arith.constant 0 : index
    %4 = vector.load %arg3[%c0_4, %c0_5] : memref<1x128xf32, #tpu.memory_space<vmem>>, vector<1x128xf32>
    %cst = arith.constant dense<0.000000e+00> : vector<4xf32>
    %5 = vector.multi_reduction <add>, %2, %cst [1] : vector<4x128xf32> to vector<4xf32>
    %6 = vector.shape_cast %5 : vector<4xf32> to vector<4x1xf32>
    %cst_6 = arith.constant 1.280000e+02 : f32
    %7 = vector.broadcast %cst_6 : f32 to vector<4x1xf32>
    %8 = arith.divf %6, %7 : vector<4x1xf32>
    %9 = arith.mulf %2, %2 : vector<4x128xf32>
    %cst_7 = arith.constant dense<0.000000e+00> : vector<4xf32>
    %10 = vector.multi_reduction <add>, %9, %cst_7 [1] : vector<4x128xf32> to vector<4xf32>
    %11 = vector.shape_cast %10 : vector<4xf32> to vector<4x1xf32>
    %cst_8 = arith.constant 1.280000e+02 : f32
    %12 = vector.broadcast %cst_8 : f32 to vector<4x1xf32>
    %13 = arith.divf %11, %12 : vector<4x1xf32>
    %14 = arith.mulf %8, %8 : vector<4x1xf32>
    %15 = arith.subf %13, %14 : vector<4x1xf32>
    %16 = vector.broadcast %8 : vector<4x1xf32> to vector<4x128xf32>
    %17 = arith.subf %2, %16 : vector<4x128xf32>
    %cst_9 = arith.constant 9.99999974E-6 : f32
    %18 = vector.broadcast %cst_9 : f32 to vector<4x1xf32>
    %19 = arith.addf %15, %18 : vector<4x1xf32>
    %20 = math.rsqrt %19 : vector<4x1xf32>
    %21 = vector.broadcast %20 : vector<4x1xf32> to vector<4x128xf32>
    %22 = arith.mulf %17, %21 : vector<4x128xf32>
    %23 = vector.broadcast %3 : vector<1x128xf32> to vector<4x128xf32>
    %24 = arith.mulf %22, %23 : vector<4x128xf32>
    %25 = vector.broadcast %4 : vector<1x128xf32> to vector<4x128xf32>
    %26 = arith.addf %24, %25 : vector<4x128xf32>
    %27 = arith.truncf %26 : vector<4x128xf32> to vector<4x128xbf16>
    %c0_10 = arith.constant 0 : index
    %c0_11 = arith.constant 0 : index
    %28 = vector.load %arg4[%c0_10, %c0_11] : memref<128x384xbf16, #tpu.memory_space<vmem>>, vector<128x384xbf16>
    %cst_12 = arith.constant dense<0.000000e+00> : vector<4x384xf32>
    %29 = tpu.matmul %27, %28, %cst_12 {dimension_numbers = #tpu.dot_dimension_numbers<[1], [0], [0], [1], [0, 0, 1, 1], [], []>} : vector<4x128xbf16>, vector<128x384xbf16>, vector<4x384xf32> -> vector<4x384xf32>
    %c0_13 = arith.constant 0 : index
    %c0_14 = arith.constant 0 : index
    %30 = vector.load %arg5[%c0_13, %c0_14] : memref<1x384xf32, #tpu.memory_space<vmem>>, vector<1x384xf32>
    %31 = vector.broadcast %30 : vector<1x384xf32> to vector<4x384xf32>
    %32 = arith.addf %29, %31 : vector<4x384xf32>
    %33 = arith.truncf %32 : vector<4x384xf32> to vector<4x384xbf16>
    %34 = vector.extract_strided_slice %33 {offsets = [0, 0], sizes = [4, 128], strides = [1, 1]} : vector<4x384xbf16> to vector<4x128xbf16>
    %35 = vector.shape_cast %34 : vector<4x128xbf16> to vector<4x4x32xbf16>
    %36 = tpu.transpose %35, [1, 0, 2] : vector<4x4x32xbf16> -> vector<4x4x32xbf16>
    %37 = vector.extract_strided_slice %33 {offsets = [0, 128], sizes = [4, 128], strides = [1, 1]} : vector<4x384xbf16> to vector<4x128xbf16>
    %38 = vector.shape_cast %37 : vector<4x128xbf16> to vector<4x4x32xbf16>
    %39 = tpu.transpose %38, [1, 0, 2] : vector<4x4x32xbf16> -> vector<4x4x32xbf16>
    %40 = vector.extract_strided_slice %33 {offsets = [0, 256], sizes = [4, 128], strides = [1, 1]} : vector<4x384xbf16> to vector<4x128xbf16>
    %41 = vector.shape_cast %40 : vector<4x128xbf16> to vector<4x4x32xbf16>
    %42 = tpu.transpose %41, [1, 0, 2] : vector<4x4x32xbf16> -> vector<4x4x32xbf16>
    "tpu.trace_start"() <{level = 10 : i32, message = "hqc,hkc->hqk"}> : () -> ()
    %cst_15 = arith.constant dense<0.000000e+00> : vector<4x4x4xf32>
    %43 = tpu.matmul %36, %39, %cst_15 {dimension_numbers = #tpu.dot_dimension_numbers<[2], [2], [1], [1], [0, 0, 0, 1, 1, 1], [0], [0]>} : vector<4x4x32xbf16>, vector<4x4x32xbf16>, vector<4x4x4xf32> -> vector<4x4x4xf32>
    "tpu.trace_stop"() : () -> ()
    %cst_16 = arith.constant 0.176776692 : f32
    %44 = vector.broadcast %cst_16 : f32 to vector<4x4x4xf32>
    %45 = arith.mulf %43, %44 : vector<4x4x4xf32>
    %cst_17 = arith.constant dense<0xFF800000> : vector<4x4xf32>
    %46 = vector.multi_reduction <maximumf>, %45, %cst_17 [2] : vector<4x4x4xf32> to vector<4x4xf32>
    %47 = vector.shape_cast %46 : vector<4x4xf32> to vector<4x4x1xf32>
    %48 = vector.broadcast %47 : vector<4x4x1xf32> to vector<4x4x4xf32>
    %49 = arith.subf %45, %48 : vector<4x4x4xf32>
    %50 = math.exp %49 : vector<4x4x4xf32>
    %cst_18 = arith.constant dense<0.000000e+00> : vector<4x4xf32>
    %51 = vector.multi_reduction <add>, %50, %cst_18 [2] : vector<4x4x4xf32> to vector<4x4xf32>
    %52 = vector.shape_cast %51 : vector<4x4xf32> to vector<4x4x1xf32>
    %53 = tpu.reciprocal %52 {approx = true} : vector<4x4x1xf32> -> vector<4x4x1xf32>
    %54 = vector.broadcast %53 : vector<4x4x1xf32> to vector<4x4x4xf32>
    %55 = arith.mulf %50, %54 : vector<4x4x4xf32>
    %56 = arith.truncf %55 : vector<4x4x4xf32> to vector<4x4x4xbf16>
    "tpu.trace_start"() <{level = 10 : i32, message = "hqk,hkc->hqc"}> : () -> ()
    %cst_19 = arith.constant dense<0.000000e+00> : vector<4x4x32xf32>
    %57 = tpu.matmul %56, %42, %cst_19 {dimension_numbers = #tpu.dot_dimension_numbers<[2], [1], [1], [2], [0, 0, 0, 1, 1, 2], [0], [0]>} : vector<4x4x4xbf16>, vector<4x4x32xbf16>, vector<4x4x32xf32> -> vector<4x4x32xf32>
    "tpu.trace_stop"() : () -> ()
    %58 = tpu.transpose %57, [1, 0, 2] : vector<4x4x32xf32> -> vector<4x4x32xf32>
    %59 = vector.shape_cast %58 : vector<4x4x32xf32> to vector<4x128xf32>
    %60 = arith.truncf %59 : vector<4x128xf32> to vector<4x128xbf16>
    %c0_20 = arith.constant 0 : index
    %c0_21 = arith.constant 0 : index
    %61 = vector.load %arg6[%c0_20, %c0_21] : memref<128x128xbf16, #tpu.memory_space<vmem>>, vector<128x128xbf16>
    %cst_22 = arith.constant dense<0.000000e+00> : vector<4x128xf32>
    %62 = tpu.matmul %60, %61, %cst_22 {dimension_numbers = #tpu.dot_dimension_numbers<[1], [0], [0], [1], [0, 0, 1, 1], [], []>} : vector<4x128xbf16>, vector<128x128xbf16>, vector<4x128xf32> -> vector<4x128xf32>
    %c0_23 = arith.constant 0 : index
    %c0_24 = arith.constant 0 : index
    %63 = vector.load %arg7[%c0_23, %c0_24] : memref<1x128xf32, #tpu.memory_space<vmem>>, vector<1x128xf32>
    %64 = vector.broadcast %63 : vector<1x128xf32> to vector<4x128xf32>
    %65 = arith.addf %62, %64 : vector<4x128xf32>
    %66 = arith.addf %2, %65 : vector<4x128xf32>
    %c0_25 = arith.constant 0 : index
    %c0_26 = arith.constant 0 : index
    %67 = vector.load %arg8[%c0_25, %c0_26] : memref<1x128xf32, #tpu.memory_space<vmem>>, vector<1x128xf32>
    %c0_27 = arith.constant 0 : index
    %c0_28 = arith.constant 0 : index
    %68 = vector.load %arg9[%c0_27, %c0_28] : memref<1x128xf32, #tpu.memory_space<vmem>>, vector<1x128xf32>
    %cst_29 = arith.constant dense<0.000000e+00> : vector<4xf32>
    %69 = vector.multi_reduction <add>, %66, %cst_29 [1] : vector<4x128xf32> to vector<4xf32>
    %70 = vector.shape_cast %69 : vector<4xf32> to vector<4x1xf32>
    %cst_30 = arith.constant 1.280000e+02 : f32
    %71 = vector.broadcast %cst_30 : f32 to vector<4x1xf32>
    %72 = arith.divf %70, %71 : vector<4x1xf32>
    %73 = arith.mulf %66, %66 : vector<4x128xf32>
    %cst_31 = arith.constant dense<0.000000e+00> : vector<4xf32>
    %74 = vector.multi_reduction <add>, %73, %cst_31 [1] : vector<4x128xf32> to vector<4xf32>
    %75 = vector.shape_cast %74 : vector<4xf32> to vector<4x1xf32>
    %cst_32 = arith.constant 1.280000e+02 : f32
    %76 = vector.broadcast %cst_32 : f32 to vector<4x1xf32>
    %77 = arith.divf %75, %76 : vector<4x1xf32>
    %78 = arith.mulf %72, %72 : vector<4x1xf32>
    %79 = arith.subf %77, %78 : vector<4x1xf32>
    %80 = vector.broadcast %72 : vector<4x1xf32> to vector<4x128xf32>
    %81 = arith.subf %66, %80 : vector<4x128xf32>
    %cst_33 = arith.constant 9.99999974E-6 : f32
    %82 = vector.broadcast %cst_33 : f32 to vector<4x1xf32>
    %83 = arith.addf %79, %82 : vector<4x1xf32>
    %84 = math.rsqrt %83 : vector<4x1xf32>
    %85 = vector.broadcast %84 : vector<4x1xf32> to vector<4x128xf32>
    %86 = arith.mulf %81, %85 : vector<4x128xf32>
    %87 = vector.broadcast %67 : vector<1x128xf32> to vector<4x128xf32>
    %88 = arith.mulf %86, %87 : vector<4x128xf32>
    %89 = vector.broadcast %68 : vector<1x128xf32> to vector<4x128xf32>
    %90 = arith.addf %88, %89 : vector<4x128xf32>
    %91 = arith.truncf %90 : vector<4x128xf32> to vector<4x128xbf16>
    %c0_34 = arith.constant 0 : index
    %c0_35 = arith.constant 0 : index
    %92 = vector.load %arg10[%c0_34, %c0_35] : memref<128x256xbf16, #tpu.memory_space<vmem>>, vector<128x256xbf16>
    %cst_36 = arith.constant dense<0.000000e+00> : vector<4x256xf32>
    %93 = tpu.matmul %91, %92, %cst_36 {dimension_numbers = #tpu.dot_dimension_numbers<[1], [0], [0], [1], [0, 0, 1, 1], [], []>} : vector<4x128xbf16>, vector<128x256xbf16>, vector<4x256xf32> -> vector<4x256xf32>
    %c0_37 = arith.constant 0 : index
    %c0_38 = arith.constant 0 : index
    %94 = vector.load %arg11[%c0_37, %c0_38] : memref<1x256xf32, #tpu.memory_space<vmem>>, vector<1x256xf32>
    %95 = vector.broadcast %94 : vector<1x256xf32> to vector<4x256xf32>
    %96 = arith.addf %93, %95 : vector<4x256xf32>
    %cst_39 = arith.constant 5.000000e-01 : f32
    %97 = vector.broadcast %cst_39 : f32 to vector<4x256xf32>
    %98 = arith.mulf %97, %96 : vector<4x256xf32>
    %cst_40 = arith.constant 0.707106769 : f32
    %99 = vector.broadcast %cst_40 : f32 to vector<4x256xf32>
    %100 = arith.mulf %96, %99 : vector<4x256xf32>
    %101 = math.erf %100 : vector<4x256xf32>
    %cst_41 = arith.constant 1.000000e+00 : f32
    %102 = vector.broadcast %cst_41 : f32 to vector<4x256xf32>
    %103 = arith.addf %102, %101 : vector<4x256xf32>
    %104 = arith.mulf %98, %103 : vector<4x256xf32>
    %105 = arith.truncf %104 : vector<4x256xf32> to vector<4x256xbf16>
    %c0_42 = arith.constant 0 : index
    %c0_43 = arith.constant 0 : index
    %106 = vector.load %arg12[%c0_42, %c0_43] : memref<256x128xbf16, #tpu.memory_space<vmem>>, vector<256x128xbf16>
    %cst_44 = arith.constant dense<0.000000e+00> : vector<4x128xf32>
    %107 = tpu.matmul %105, %106, %cst_44 {dimension_numbers = #tpu.dot_dimension_numbers<[1], [0], [0], [1], [0, 0, 1, 1], [], []>} : vector<4x256xbf16>, vector<256x128xbf16>, vector<4x128xf32> -> vector<4x128xf32>
    %c0_45 = arith.constant 0 : index
    %c0_46 = arith.constant 0 : index
    %108 = vector.load %arg13[%c0_45, %c0_46] : memref<1x128xf32, #tpu.memory_space<vmem>>, vector<1x128xf32>
    %109 = vector.broadcast %108 : vector<1x128xf32> to vector<4x128xf32>
    %110 = arith.addf %107, %109 : vector<4x128xf32>
    %111 = arith.addf %66, %110 : vector<4x128xf32>
    %112 = arith.truncf %111 : vector<4x128xf32> to vector<4x128xbf16>
    %c0_47 = arith.constant 0 : index
    %c0_48 = arith.constant 0 : index
    %c0_49 = arith.constant 0 : index
    %113 = vector.load %arg14[%c0_47, %c0_48, %c0_49] : memref<1x4x128xbf16, #tpu.memory_space<vmem>>, vector<1x4x128xbf16>
    %114 = vector.shape_cast %113 : vector<1x4x128xbf16> to vector<4x128xbf16>
    %115 = vector.shape_cast %112 : vector<4x128xbf16> to vector<1x4x128xbf16>
    tpu.vector_store %arg14[%c0_47, %c0_48, %c0_49], %115 {strides = array<i32>} : memref<1x4x128xbf16, #tpu.memory_space<vmem>>, vector<1x4x128xbf16>,
    return
  }
  func.func @transform_0(%arg0: i32) -> (i32, i32, i32) {
    %c0_i32 = arith.constant 0 : i32
    %c0_i32_0 = arith.constant 0 : i32
    %c0_i32_1 = arith.constant 0 : i32
    return %arg0, %c0_i32, %c0_i32_0 : i32, i32, i32
  }
  func.func @transform_1(%arg0: i32) -> (i32, i32) {
    %c0_i32 = arith.constant 0 : i32
    %c0_i32_0 = arith.constant 0 : i32
    %c0_i32_1 = arith.constant 0 : i32
    return %c0_i32, %c0_i32_0 : i32, i32
  }
  func.func @transform_2(%arg0: i32) -> (i32, i32) {
    %c0_i32 = arith.constant 0 : i32
    %c0_i32_0 = arith.constant 0 : i32
    %c0_i32_1 = arith.constant 0 : i32
    return %c0_i32, %c0_i32_0 : i32, i32
  }
  func.func @transform_3(%arg0: i32) -> (i32, i32) {
    %c0_i32 = arith.constant 0 : i32
    %c0_i32_0 = arith.constant 0 : i32
    %c0_i32_1 = arith.constant 0 : i32
    return %c0_i32, %c0_i32_0 : i32, i32
  }
  func.func @transform_4(%arg0: i32) -> (i32, i32) {
    %c0_i32 = arith.constant 0 : i32
    %c0_i32_0 = arith.constant 0 : i32
    %c0_i32_1 = arith.constant 0 : i32
    return %c0_i32, %c0_i32_0 : i32, i32
  }
  func.func @transform_5(%arg0: i32) -> (i32, i32) {
    %c0_i32 = arith.constant 0 : i32
    %c0_i32_0 = arith.constant 0 : i32
    %c0_i32_1 = arith.constant 0 : i32
    return %c0_i32, %c0_i32_0 : i32, i32
  }
  func.func @transform_6(%arg0: i32) -> (i32, i32) {
    %c0_i32 = arith.constant 0 : i32
    %c0_i32_0 = arith.constant 0 : i32
    %c0_i32_1 = arith.constant 0 : i32
    return %c0_i32, %c0_i32_0 : i32, i32
  }
  func.func @transform_7(%arg0: i32) -> (i32, i32) {
    %c0_i32 = arith.constant 0 : i32
    %c0_i32_0 = arith.constant 0 : i32
    %c0_i32_1 = arith.constant 0 : i32
    return %c0_i32, %c0_i32_0 : i32, i32
  }
  func.func @transform_8(%arg0: i32) -> (i32, i32) {
    %c0_i32 = arith.constant 0 : i32
    %c0_i32_0 = arith.constant 0 : i32
    %c0_i32_1 = arith.constant 0 : i32
    return %c0_i32, %c0_i32_0 : i32, i32
  }
  func.func @transform_9(%arg0: i32) -> (i32, i32) {
    %c0_i32 = arith.constant 0 : i32
    %c0_i32_0 = arith.constant 0 : i32
    %c0_i32_1 = arith.constant 0 : i32
    return %c0_i32, %c0_i32_0 : i32, i32
  }
  func.func @transform_10(%arg0: i32) -> (i32, i32) {
    %c0_i32 = arith.constant 0 : i32
    %c0_i32_0 = arith.constant 0 : i32
    %c0_i32_1 = arith.constant 0 : i32
    return %c0_i32, %c0_i32_0 : i32, i32
  }
  func.func @transform_11(%arg0: i32) -> (i32, i32) {
    %c0_i32 = arith.constant 0 : i32
    %c0_i32_0 = arith.constant 0 : i32
    %c0_i32_1 = arith.constant 0 : i32
    return %c0_i32, %c0_i32_0 : i32, i32
  }
  func.func @transform_12(%arg0: i32) -> (i32, i32) {
    %c0_i32 = arith.constant 0 : i32
    %c0_i32_0 = arith.constant 0 : i32
    %c0_i32_1 = arith.constant 0 : i32
    return %c0_i32, %c0_i32_0 : i32, i32
  }
  func.func @transform_13(%arg0: i32) -> (i32, i32, i32) {
    %c0_i32 = arith.constant 0 : i32
    %c0_i32_0 = arith.constant 0 : i32
    %c0_i32_1 = arith.constant 0 : i32
    return %arg0, %c0_i32, %c0_i32_0 : i32, i32, i32
  }
}

module attributes {stable_mosaic.version = 11 : i64} {
  func.func @_linear_kernel(%arg0: i32, %arg1: memref<2x512xbf16, #tpu.memory_space<vmem>>, %arg2: memref<512x128xbf16, #tpu.memory_space<vmem>>, %arg3: memref<1x128xf32, #tpu.memory_space<vmem>>, %arg4: memref<2x128xbf16, #tpu.memory_space<vmem>>) attributes {dimension_semantics = [#tpu.dimension_semantics<parallel>], iteration_bounds = array<i64: 1>, scalar_prefetch = 0 : i64, scratch_operands = 0 : i64, tpu.core_type = #tpu.core_type<tc>, window_params = [{transform_indices = @transform_0, window_bounds = array<i64: 2, 512>}, {pipeline_mode = #tpu.pipeline_mode<synchronous>, transform_indices = @transform_1, window_bounds = array<i64: 512, 128>}, {pipeline_mode = #tpu.pipeline_mode<synchronous>, transform_indices = @transform_2, window_bounds = array<i64: 1, 128>}, {transform_indices = @transform_3, window_bounds = array<i64: 2, 128>}]} {
    %c0 = arith.constant 0 : index
    %c0_0 = arith.constant 0 : index
    %0 = vector.load %arg1[%c0, %c0_0] : memref<2x512xbf16, #tpu.memory_space<vmem>>, vector<2x512xbf16>
    %c0_1 = arith.constant 0 : index
    %c0_2 = arith.constant 0 : index
    %1 = vector.load %arg2[%c0_1, %c0_2] : memref<512x128xbf16, #tpu.memory_space<vmem>>, vector<512x128xbf16>
    %cst = arith.constant dense<0.000000e+00> : vector<2x128xf32>
    %2 = tpu.matmul %0, %1, %cst {dimension_numbers = #tpu.dot_dimension_numbers<[1], [0], [0], [1], [0, 0, 1, 1], [], []>} : vector<2x512xbf16>, vector<512x128xbf16>, vector<2x128xf32> -> vector<2x128xf32>
    %c0_3 = arith.constant 0 : index
    %c0_4 = arith.constant 0 : index
    %3 = vector.load %arg3[%c0_3, %c0_4] : memref<1x128xf32, #tpu.memory_space<vmem>>, vector<1x128xf32>
    %4 = vector.broadcast %3 : vector<1x128xf32> to vector<2x128xf32>
    %5 = arith.addf %2, %4 : vector<2x128xf32>
    %6 = arith.truncf %5 : vector<2x128xf32> to vector<2x128xbf16>
    %c0_5 = arith.constant 0 : index
    %c0_6 = arith.constant 0 : index
    %7 = vector.load %arg4[%c0_5, %c0_6] : memref<2x128xbf16, #tpu.memory_space<vmem>>, vector<2x128xbf16>
    tpu.vector_store %arg4[%c0_5, %c0_6], %6 {strides = array<i32>} : memref<2x128xbf16, #tpu.memory_space<vmem>>, vector<2x128xbf16>,
    return
  }
  func.func @transform_0(%arg0: i32) -> (i32, i32) {
    %c0_i32 = arith.constant 0 : i32
    %c0_i32_0 = arith.constant 0 : i32
    return %arg0, %c0_i32 : i32, i32
  }
  func.func @transform_1(%arg0: i32) -> (i32, i32) {
    %c0_i32 = arith.constant 0 : i32
    %c0_i32_0 = arith.constant 0 : i32
    %c0_i32_1 = arith.constant 0 : i32
    return %c0_i32, %c0_i32_0 : i32, i32
  }
  func.func @transform_2(%arg0: i32) -> (i32, i32) {
    %c0_i32 = arith.constant 0 : i32
    %c0_i32_0 = arith.constant 0 : i32
    %c0_i32_1 = arith.constant 0 : i32
    return %c0_i32, %c0_i32_0 : i32, i32
  }
  func.func @transform_3(%arg0: i32) -> (i32, i32) {
    %c0_i32 = arith.constant 0 : i32
    %c0_i32_0 = arith.constant 0 : i32
    return %arg0, %c0_i32 : i32, i32
  }
}

module attributes {stable_mosaic.version = 11 : i64} {
  func.func @_transformer_block_kernel(%arg0: i32, %arg1: memref<1x1x128xbf16, #tpu.memory_space<vmem>>, %arg2: memref<1x128xf32, #tpu.memory_space<vmem>>, %arg3: memref<1x128xf32, #tpu.memory_space<vmem>>, %arg4: memref<128x384xbf16, #tpu.memory_space<vmem>>, %arg5: memref<1x384xf32, #tpu.memory_space<vmem>>, %arg6: memref<128x128xbf16, #tpu.memory_space<vmem>>, %arg7: memref<1x128xf32, #tpu.memory_space<vmem>>, %arg8: memref<1x128xf32, #tpu.memory_space<vmem>>, %arg9: memref<1x128xf32, #tpu.memory_space<vmem>>, %arg10: memref<128x256xbf16, #tpu.memory_space<vmem>>, %arg11: memref<1x256xf32, #tpu.memory_space<vmem>>, %arg12: memref<256x128xbf16, #tpu.memory_space<vmem>>, %arg13: memref<1x128xf32, #tpu.memory_space<vmem>>, %arg14: memref<1x1x128xbf16, #tpu.memory_space<vmem>>) attributes {dimension_semantics = [#tpu.dimension_semantics<parallel>], iteration_bounds = array<i64: 2>, scalar_prefetch = 0 : i64, scratch_operands = 0 : i64, tpu.core_type = #tpu.core_type<tc>, window_params = [{transform_indices = @transform_0, window_bounds = array<i64: 1, 1, 128>}, {pipeline_mode = #tpu.pipeline_mode<synchronous>, transform_indices = @transform_1, window_bounds = array<i64: 1, 128>}, {pipeline_mode = #tpu.pipeline_mode<synchronous>, transform_indices = @transform_2, window_bounds = array<i64: 1, 128>}, {pipeline_mode = #tpu.pipeline_mode<synchronous>, transform_indices = @transform_3, window_bounds = array<i64: 128, 384>}, {pipeline_mode = #tpu.pipeline_mode<synchronous>, transform_indices = @transform_4, window_bounds = array<i64: 1, 384>}, {pipeline_mode = #tpu.pipeline_mode<synchronous>, transform_indices = @transform_5, window_bounds = array<i64: 128, 128>}, {pipeline_mode = #tpu.pipeline_mode<synchronous>, transform_indices = @transform_6, window_bounds = array<i64: 1, 128>}, {pipeline_mode = #tpu.pipeline_mode<synchronous>, transform_indices = @transform_7, window_bounds = array<i64: 1, 128>}, {pipeline_mode = #tpu.pipeline_mode<synchronous>, transform_indices = @transform_8, window_bounds = array<i64: 1, 128>}, {pipeline_mode = #tpu.pipeline_mode<synchronous>, transform_indices = @transform_9, window_bounds = array<i64: 128, 256>}, {pipeline_mode = #tpu.pipeline_mode<synchronous>, transform_indices = @transform_10, window_bounds = array<i64: 1, 256>}, {pipeline_mode = #tpu.pipeline_mode<synchronous>, transform_indices = @transform_11, window_bounds = array<i64: 256, 128>}, {pipeline_mode = #tpu.pipeline_mode<synchronous>, transform_indices = @transform_12, window_bounds = array<i64: 1, 128>}, {transform_indices = @transform_13, window_bounds = array<i64: 1, 1, 128>}]} {
    %c0 = arith.constant 0 : index
    %c0_0 = arith.constant 0 : index
    %c0_1 = arith.constant 0 : index
    %0 = vector.load %arg1[%c0, %c0_0, %c0_1] : memref<1x1x128xbf16, #tpu.memory_space<vmem>>, vector<1x1x128xbf16>
    %1 = vector.shape_cast %0 : vector<1x1x128xbf16> to vector<1x128xbf16>
    %2 = arith.extf %1 : vector<1x128xbf16> to vector<1x128xf32>
    %c0_2 = arith.constant 0 : index
    %c0_3 = arith.constant 0 : index
    %3 = vector.load %arg2[%c0_2, %c0_3] : memref<1x128xf32, #tpu.memory_space<vmem>>, vector<1x128xf32>
    %c0_4 = arith.constant 0 : index
    %c0_5 = arith.constant 0 : index
    %4 = vector.load %arg3[%c0_4, %c0_5] : memref<1x128xf32, #tpu.memory_space<vmem>>, vector<1x128xf32>
    %cst = arith.constant dense<0.000000e+00> : vector<1xf32>
    %5 = vector.multi_reduction <add>, %2, %cst [1] : vector<1x128xf32> to vector<1xf32>
    %6 = vector.shape_cast %5 : vector<1xf32> to vector<1x1xf32>
    %cst_6 = arith.constant 1.280000e+02 : f32
    %7 = vector.broadcast %cst_6 : f32 to vector<1x1xf32>
    %8 = arith.divf %6, %7 : vector<1x1xf32>
    %9 = arith.mulf %2, %2 : vector<1x128xf32>
    %cst_7 = arith.constant dense<0.000000e+00> : vector<1xf32>
    %10 = vector.multi_reduction <add>, %9, %cst_7 [1] : vector<1x128xf32> to vector<1xf32>
    %11 = vector.shape_cast %10 : vector<1xf32> to vector<1x1xf32>
    %cst_8 = arith.constant 1.280000e+02 : f32
    %12 = vector.broadcast %cst_8 : f32 to vector<1x1xf32>
    %13 = arith.divf %11, %12 : vector<1x1xf32>
    %14 = arith.mulf %8, %8 : vector<1x1xf32>
    %15 = arith.subf %13, %14 : vector<1x1xf32>
    %16 = vector.broadcast %8 : vector<1x1xf32> to vector<1x128xf32>
    %17 = arith.subf %2, %16 : vector<1x128xf32>
    %cst_9 = arith.constant 9.99999974E-6 : f32
    %18 = vector.broadcast %cst_9 : f32 to vector<1x1xf32>
    %19 = arith.addf %15, %18 : vector<1x1xf32>
    %20 = math.rsqrt %19 : vector<1x1xf32>
    %21 = vector.broadcast %20 : vector<1x1xf32> to vector<1x128xf32>
    %22 = arith.mulf %17, %21 : vector<1x128xf32>
    %23 = arith.mulf %22, %3 : vector<1x128xf32>
    %24 = arith.addf %23, %4 : vector<1x128xf32>
    %25 = arith.truncf %24 : vector<1x128xf32> to vector<1x128xbf16>
    %c0_10 = arith.constant 0 : index
    %c0_11 = arith.constant 0 : index
    %26 = vector.load %arg4[%c0_10, %c0_11] : memref<128x384xbf16, #tpu.memory_space<vmem>>, vector<128x384xbf16>
    %cst_12 = arith.constant dense<0.000000e+00> : vector<1x384xf32>
    %27 = tpu.matmul %25, %26, %cst_12 {dimension_numbers = #tpu.dot_dimension_numbers<[1], [0], [0], [1], [0, 0, 1, 1], [], []>} : vector<1x128xbf16>, vector<128x384xbf16>, vector<1x384xf32> -> vector<1x384xf32>
    %c0_13 = arith.constant 0 : index
    %c0_14 = arith.constant 0 : index
    %28 = vector.load %arg5[%c0_13, %c0_14] : memref<1x384xf32, #tpu.memory_space<vmem>>, vector<1x384xf32>
    %29 = arith.addf %27, %28 : vector<1x384xf32>
    %30 = arith.truncf %29 : vector<1x384xf32> to vector<1x384xbf16>
    %31 = vector.extract_strided_slice %30 {offsets = [0, 0], sizes = [1, 128], strides = [1, 1]} : vector<1x384xbf16> to vector<1x128xbf16>
    %32 = vector.shape_cast %31 : vector<1x128xbf16> to vector<1x4x32xbf16>
    %33 = tpu.transpose %32, [1, 0, 2] : vector<1x4x32xbf16> -> vector<4x1x32xbf16>
    %34 = vector.extract_strided_slice %30 {offsets = [0, 128], sizes = [1, 128], strides = [1, 1]} : vector<1x384xbf16> to vector<1x128xbf16>
    %35 = vector.shape_cast %34 : vector<1x128xbf16> to vector<1x4x32xbf16>
    %36 = tpu.transpose %35, [1, 0, 2] : vector<1x4x32xbf16> -> vector<4x1x32xbf16>
    %37 = vector.extract_strided_slice %30 {offsets = [0, 256], sizes = [1, 128], strides = [1, 1]} : vector<1x384xbf16> to vector<1x128xbf16>
    %38 = vector.shape_cast %37 : vector<1x128xbf16> to vector<1x4x32xbf16>
    %39 = tpu.transpose %38, [1, 0, 2] : vector<1x4x32xbf16> -> vector<4x1x32xbf16>
    "tpu.trace_start"() <{level = 10 : i32, message = "hqc,hkc->hqk"}> : () -> ()
    %cst_15 = arith.constant dense<0.000000e+00> : vector<4x1x1xf32>
    %40 = tpu.matmul %33, %36, %cst_15 {dimension_numbers = #tpu.dot_dimension_numbers<[2], [2], [1], [1], [0, 0, 0, 1, 1, 1], [0], [0]>} : vector<4x1x32xbf16>, vector<4x1x32xbf16>, vector<4x1x1xf32> -> vector<4x1x1xf32>
    "tpu.trace_stop"() : () -> ()
    %cst_16 = arith.constant 0.176776692 : f32
    %41 = vector.broadcast %cst_16 : f32 to vector<4x1x1xf32>
    %42 = arith.mulf %40, %41 : vector<4x1x1xf32>
    %cst_17 = arith.constant dense<0xFF800000> : vector<4x1xf32>
    %43 = vector.multi_reduction <maximumf>, %42, %cst_17 [2] : vector<4x1x1xf32> to vector<4x1xf32>
    %44 = vector.shape_cast %43 : vector<4x1xf32> to vector<4x1x1xf32>
    %45 = arith.subf %42, %44 : vector<4x1x1xf32>
    %46 = math.exp %45 : vector<4x1x1xf32>
    %cst_18 = arith.constant dense<0.000000e+00> : vector<4x1xf32>
    %47 = vector.multi_reduction <add>, %46, %cst_18 [2] : vector<4x1x1xf32> to vector<4x1xf32>
    %48 = vector.shape_cast %47 : vector<4x1xf32> to vector<4x1x1xf32>
    %49 = tpu.reciprocal %48 {approx = true} : vector<4x1x1xf32> -> vector<4x1x1xf32>
    %50 = arith.mulf %46, %49 : vector<4x1x1xf32>
    %51 = arith.truncf %50 : vector<4x1x1xf32> to vector<4x1x1xbf16>
    "tpu.trace_start"() <{level = 10 : i32, message = "hqk,hkc->hqc"}> : () -> ()
    %cst_19 = arith.constant dense<0.000000e+00> : vector<4x1x32xf32>
    %52 = tpu.matmul %51, %39, %cst_19 {dimension_numbers = #tpu.dot_dimension_numbers<[2], [1], [1], [2], [0, 0, 0, 1, 1, 2], [0], [0]>} : vector<4x1x1xbf16>, vector<4x1x32xbf16>, vector<4x1x32xf32> -> vector<4x1x32xf32>
    "tpu.trace_stop"() : () -> ()
    %53 = tpu.transpose %52, [1, 0, 2] : vector<4x1x32xf32> -> vector<1x4x32xf32>
    %54 = vector.shape_cast %53 : vector<1x4x32xf32> to vector<1x128xf32>
    %55 = arith.truncf %54 : vector<1x128xf32> to vector<1x128xbf16>
    %c0_20 = arith.constant 0 : index
    %c0_21 = arith.constant 0 : index
    %56 = vector.load %arg6[%c0_20, %c0_21] : memref<128x128xbf16, #tpu.memory_space<vmem>>, vector<128x128xbf16>
    %cst_22 = arith.constant dense<0.000000e+00> : vector<1x128xf32>
    %57 = tpu.matmul %55, %56, %cst_22 {dimension_numbers = #tpu.dot_dimension_numbers<[1], [0], [0], [1], [0, 0, 1, 1], [], []>} : vector<1x128xbf16>, vector<128x128xbf16>, vector<1x128xf32> -> vector<1x128xf32>
    %c0_23 = arith.constant 0 : index
    %c0_24 = arith.constant 0 : index
    %58 = vector.load %arg7[%c0_23, %c0_24] : memref<1x128xf32, #tpu.memory_space<vmem>>, vector<1x128xf32>
    %59 = arith.addf %57, %58 : vector<1x128xf32>
    %60 = arith.addf %2, %59 : vector<1x128xf32>
    %c0_25 = arith.constant 0 : index
    %c0_26 = arith.constant 0 : index
    %61 = vector.load %arg8[%c0_25, %c0_26] : memref<1x128xf32, #tpu.memory_space<vmem>>, vector<1x128xf32>
    %c0_27 = arith.constant 0 : index
    %c0_28 = arith.constant 0 : index
    %62 = vector.load %arg9[%c0_27, %c0_28] : memref<1x128xf32, #tpu.memory_space<vmem>>, vector<1x128xf32>
    %cst_29 = arith.constant dense<0.000000e+00> : vector<1xf32>
    %63 = vector.multi_reduction <add>, %60, %cst_29 [1] : vector<1x128xf32> to vector<1xf32>
    %64 = vector.shape_cast %63 : vector<1xf32> to vector<1x1xf32>
    %cst_30 = arith.constant 1.280000e+02 : f32
    %65 = vector.broadcast %cst_30 : f32 to vector<1x1xf32>
    %66 = arith.divf %64, %65 : vector<1x1xf32>
    %67 = arith.mulf %60, %60 : vector<1x128xf32>
    %cst_31 = arith.constant dense<0.000000e+00> : vector<1xf32>
    %68 = vector.multi_reduction <add>, %67, %cst_31 [1] : vector<1x128xf32> to vector<1xf32>
    %69 = vector.shape_cast %68 : vector<1xf32> to vector<1x1xf32>
    %cst_32 = arith.constant 1.280000e+02 : f32
    %70 = vector.broadcast %cst_32 : f32 to vector<1x1xf32>
    %71 = arith.divf %69, %70 : vector<1x1xf32>
    %72 = arith.mulf %66, %66 : vector<1x1xf32>
    %73 = arith.subf %71, %72 : vector<1x1xf32>
    %74 = vector.broadcast %66 : vector<1x1xf32> to vector<1x128xf32>
    %75 = arith.subf %60, %74 : vector<1x128xf32>
    %cst_33 = arith.constant 9.99999974E-6 : f32
    %76 = vector.broadcast %cst_33 : f32 to vector<1x1xf32>
    %77 = arith.addf %73, %76 : vector<1x1xf32>
    %78 = math.rsqrt %77 : vector<1x1xf32>
    %79 = vector.broadcast %78 : vector<1x1xf32> to vector<1x128xf32>
    %80 = arith.mulf %75, %79 : vector<1x128xf32>
    %81 = arith.mulf %80, %61 : vector<1x128xf32>
    %82 = arith.addf %81, %62 : vector<1x128xf32>
    %83 = arith.truncf %82 : vector<1x128xf32> to vector<1x128xbf16>
    %c0_34 = arith.constant 0 : index
    %c0_35 = arith.constant 0 : index
    %84 = vector.load %arg10[%c0_34, %c0_35] : memref<128x256xbf16, #tpu.memory_space<vmem>>, vector<128x256xbf16>
    %cst_36 = arith.constant dense<0.000000e+00> : vector<1x256xf32>
    %85 = tpu.matmul %83, %84, %cst_36 {dimension_numbers = #tpu.dot_dimension_numbers<[1], [0], [0], [1], [0, 0, 1, 1], [], []>} : vector<1x128xbf16>, vector<128x256xbf16>, vector<1x256xf32> -> vector<1x256xf32>
    %c0_37 = arith.constant 0 : index
    %c0_38 = arith.constant 0 : index
    %86 = vector.load %arg11[%c0_37, %c0_38] : memref<1x256xf32, #tpu.memory_space<vmem>>, vector<1x256xf32>
    %87 = arith.addf %85, %86 : vector<1x256xf32>
    %cst_39 = arith.constant 5.000000e-01 : f32
    %88 = vector.broadcast %cst_39 : f32 to vector<1x256xf32>
    %89 = arith.mulf %88, %87 : vector<1x256xf32>
    %cst_40 = arith.constant 0.707106769 : f32
    %90 = vector.broadcast %cst_40 : f32 to vector<1x256xf32>
    %91 = arith.mulf %87, %90 : vector<1x256xf32>
    %92 = math.erf %91 : vector<1x256xf32>
    %cst_41 = arith.constant 1.000000e+00 : f32
    %93 = vector.broadcast %cst_41 : f32 to vector<1x256xf32>
    %94 = arith.addf %93, %92 : vector<1x256xf32>
    %95 = arith.mulf %89, %94 : vector<1x256xf32>
    %96 = arith.truncf %95 : vector<1x256xf32> to vector<1x256xbf16>
    %c0_42 = arith.constant 0 : index
    %c0_43 = arith.constant 0 : index
    %97 = vector.load %arg12[%c0_42, %c0_43] : memref<256x128xbf16, #tpu.memory_space<vmem>>, vector<256x128xbf16>
    %cst_44 = arith.constant dense<0.000000e+00> : vector<1x128xf32>
    %98 = tpu.matmul %96, %97, %cst_44 {dimension_numbers = #tpu.dot_dimension_numbers<[1], [0], [0], [1], [0, 0, 1, 1], [], []>} : vector<1x256xbf16>, vector<256x128xbf16>, vector<1x128xf32> -> vector<1x128xf32>
    %c0_45 = arith.constant 0 : index
    %c0_46 = arith.constant 0 : index
    %99 = vector.load %arg13[%c0_45, %c0_46] : memref<1x128xf32, #tpu.memory_space<vmem>>, vector<1x128xf32>
    %100 = arith.addf %98, %99 : vector<1x128xf32>
    %101 = arith.addf %60, %100 : vector<1x128xf32>
    %102 = arith.truncf %101 : vector<1x128xf32> to vector<1x128xbf16>
    %c0_47 = arith.constant 0 : index
    %c0_48 = arith.constant 0 : index
    %c0_49 = arith.constant 0 : index
    %103 = vector.load %arg14[%c0_47, %c0_48, %c0_49] : memref<1x1x128xbf16, #tpu.memory_space<vmem>>, vector<1x1x128xbf16>
    %104 = vector.shape_cast %103 : vector<1x1x128xbf16> to vector<1x128xbf16>
    %105 = vector.shape_cast %102 : vector<1x128xbf16> to vector<1x1x128xbf16>
    tpu.vector_store %arg14[%c0_47, %c0_48, %c0_49], %105 {strides = array<i32>} : memref<1x1x128xbf16, #tpu.memory_space<vmem>>, vector<1x1x128xbf16>,
    return
  }
  func.func @transform_0(%arg0: i32) -> (i32, i32, i32) {
    %c0_i32 = arith.constant 0 : i32
    %c0_i32_0 = arith.constant 0 : i32
    %c0_i32_1 = arith.constant 0 : i32
    return %arg0, %c0_i32, %c0_i32_0 : i32, i32, i32
  }
  func.func @transform_1(%arg0: i32) -> (i32, i32) {
    %c0_i32 = arith.constant 0 : i32
    %c0_i32_0 = arith.constant 0 : i32
    %c0_i32_1 = arith.constant 0 : i32
    return %c0_i32, %c0_i32_0 : i32, i32
  }
  func.func @transform_2(%arg0: i32) -> (i32, i32) {
    %c0_i32 = arith.constant 0 : i32
    %c0_i32_0 = arith.constant 0 : i32
    %c0_i32_1 = arith.constant 0 : i32
    return %c0_i32, %c0_i32_0 : i32, i32
  }
  func.func @transform_3(%arg0: i32) -> (i32, i32) {
    %c0_i32 = arith.constant 0 : i32
    %c0_i32_0 = arith.constant 0 : i32
    %c0_i32_1 = arith.constant 0 : i32
    return %c0_i32, %c0_i32_0 : i32, i32
  }
  func.func @transform_4(%arg0: i32) -> (i32, i32) {
    %c0_i32 = arith.constant 0 : i32
    %c0_i32_0 = arith.constant 0 : i32
    %c0_i32_1 = arith.constant 0 : i32
    return %c0_i32, %c0_i32_0 : i32, i32
  }
  func.func @transform_5(%arg0: i32) -> (i32, i32) {
    %c0_i32 = arith.constant 0 : i32
    %c0_i32_0 = arith.constant 0 : i32
    %c0_i32_1 = arith.constant 0 : i32
    return %c0_i32, %c0_i32_0 : i32, i32
  }
  func.func @transform_6(%arg0: i32) -> (i32, i32) {
    %c0_i32 = arith.constant 0 : i32
    %c0_i32_0 = arith.constant 0 : i32
    %c0_i32_1 = arith.constant 0 : i32
    return %c0_i32, %c0_i32_0 : i32, i32
  }
  func.func @transform_7(%arg0: i32) -> (i32, i32) {
    %c0_i32 = arith.constant 0 : i32
    %c0_i32_0 = arith.constant 0 : i32
    %c0_i32_1 = arith.constant 0 : i32
    return %c0_i32, %c0_i32_0 : i32, i32
  }
  func.func @transform_8(%arg0: i32) -> (i32, i32) {
    %c0_i32 = arith.constant 0 : i32
    %c0_i32_0 = arith.constant 0 : i32
    %c0_i32_1 = arith.constant 0 : i32
    return %c0_i32, %c0_i32_0 : i32, i32
  }
  func.func @transform_9(%arg0: i32) -> (i32, i32) {
    %c0_i32 = arith.constant 0 : i32
    %c0_i32_0 = arith.constant 0 : i32
    %c0_i32_1 = arith.constant 0 : i32
    return %c0_i32, %c0_i32_0 : i32, i32
  }
  func.func @transform_10(%arg0: i32) -> (i32, i32) {
    %c0_i32 = arith.constant 0 : i32
    %c0_i32_0 = arith.constant 0 : i32
    %c0_i32_1 = arith.constant 0 : i32
    return %c0_i32, %c0_i32_0 : i32, i32
  }
  func.func @transform_11(%arg0: i32) -> (i32, i32) {
    %c0_i32 = arith.constant 0 : i32
    %c0_i32_0 = arith.constant 0 : i32
    %c0_i32_1 = arith.constant 0 : i32
    return %c0_i32, %c0_i32_0 : i32, i32
  }
  func.func @transform_12(%arg0: i32) -> (i32, i32) {
    %c0_i32 = arith.constant 0 : i32
    %c0_i32_0 = arith.constant 0 : i32
    %c0_i32_1 = arith.constant 0 : i32
    return %c0_i32, %c0_i32_0 : i32, i32
  }
  func.func @transform_13(%arg0: i32) -> (i32, i32, i32) {
    %c0_i32 = arith.constant 0 : i32
    %c0_i32_0 = arith.constant 0 : i32
    %c0_i32_1 = arith.constant 0 : i32
    return %arg0, %c0_i32, %c0_i32_0 : i32, i32, i32
  }
}

</mosaic_0001>

<bundles_post_ra>
// kernel: hierarchical_vit_forward.6
= control target key start
LH: loop header
LB: loop body
LE: loop exit
PB: predicated region body
PF: predicated region fallthrough
CT: control target
= control target key end

     0   :  { %s449_s1 = inlined_call_operand.vmem [shape: bf16[256,128], index: 1, kind: input, shape index: {}]   ;;  %s450_s2 = inlined_call_operand.vmem [shape: f32[1,128], index: 2, kind: input, shape index: {}]   ;;  %s451_s0 = inlined_call_operand.vmem [shape: bf16[32,256], index: 0, kind: input, shape index: {}]   ;;  %s452_s3 = inlined_call_operand.vmem [shape: bf16[32,128], index: 3, kind: output, shape index: {}]  }
   0x1   :  { %v311_v0 = vld [vmem:[%s449_s1 + $0x38] sm:$0xff]  ;;  %v310_v2 = vld [vmem:[%s449_s1 + $0x30] sm:$0xff]  ;;  %v309_v4 = vld [vmem:[%s449_s1 + $0x28] sm:$0xff] }
   0x2   :  { %v319_v1 = vld [vmem:[%s449_s1 + $0x78] sm:$0xff]  ;;  %170 = vmatpush.bf16.msra.mxu0 %v311_v0  ;;  %331 = vmatpush.bf16.msra.mxu2 %v311_v0  ;;  %v318_v3 = vld [vmem:[%s449_s1 + $0x70] sm:$0xff]  ;;  %v317_v5 = vld [vmem:[%s449_s1 + $0x68] sm:$0xff] }
   0x3   :  { %189 = vmatpush.bf16.msra.mxu1 %v319_v1  ;;  %339 = vmatpush.bf16.msra.mxu3 %v319_v1  ;;  %v308_v6 = vld [vmem:[%s449_s1 + $0x20] sm:$0xff]  ;;  %v307_v8 = vld [vmem:[%s449_s1 + $0x18] sm:$0xff]  ;;  %v306_v10 = vld [vmem:[%s449_s1 + $0x10] sm:$0xff] }
   0x4   :  { %v316_v7 = vld [vmem:[%s449_s1 + $0x60] sm:$0xff]  ;;  %v315_v9 = vld [vmem:[%s449_s1 + $0x58] sm:$0xff]  ;;  %v314_v11 = vld [vmem:[%s449_s1 + $0x50] sm:$0xff] }
   0x5   :  { %v305_v12 = vld [vmem:[%s449_s1 + $0x8] sm:$0xff]  ;;  %v304_v14 = vld [vmem:[%s449_s1] sm:$0xff]  ;;  %v230_v18 = vld [vmem:[%s451_s0 + $0x10] sm:$0xf] }
   0x6   :  { %171 = vmatpush.bf16.msra.mxu0 %v310_v2  ;;  %332 = vmatpush.bf16.msra.mxu2 %v310_v2  ;;  %v313_v13 = vld [vmem:[%s449_s1 + $0x48] sm:$0xff]  ;;  %v312_v15 = vld [vmem:[%s449_s1 + $0x40] sm:$0xff]  ;;  %v303_v19 = vld [vmem:[%s451_s0 + $0x14] sm:$0xf0] }
   0x7   :  { %190 = vmatpush.bf16.msra.mxu1 %v318_v3  ;;  %340 = vmatpush.bf16.msra.mxu3 %v318_v3  ;;  %v222_v16 = vld [vmem:[%s451_s0] sm:$0xf]  ;;  %v301_v17 = vld [vmem:[%s451_s0 + $0x4] sm:$0xf0]  ;;  %v300_v20 = vld [vmem:[%s451_s0 + $0x4] sm:$0xf]  ;;  %v231_v25 = vor.u32 %v303_v19, %v230_v18 }
   0x8   :  { %v224_v21 = vld [vmem:[%s451_s0 + $0x8] sm:$0xf0]  ;;  %v302_v22 = vld [vmem:[%s451_s0 + $0x14] sm:$0xf]  ;;  %v232_v23 = vld [vmem:[%s451_s0 + $0x18] sm:$0xf0]  ;;  %v223_v24 = vor.u32 %v301_v17, %v222_v16 }
   0x9   :  { %v227_v26 = vor.u32 %v300_v20, %v224_v21  ;;  %v235_v27 = vor.u32 %v302_v22, %v232_v23  ;;  %v347_v30 = vld [vmem:[%s450_s2] ss:$0 sm:$0xff] }
   0xa   :  { %172 = vmatpush.bf16.msra.mxu0 %v309_v4  ;;  %333 = vmatpush.bf16.msra.mxu2 %v309_v4 }
   0xb   :  { %191 = vmatpush.bf16.msra.mxu1 %v317_v5  ;;  %341 = vmatpush.bf16.msra.mxu3 %v317_v5 }
   0xe   :  { %173 = vmatpush.bf16.msra.mxu0 %v308_v6  ;;  %334 = vmatpush.bf16.msra.mxu2 %v308_v6 }
   0xf   :  { %192 = vmatpush.bf16.msra.mxu1 %v316_v7  ;;  %342 = vmatpush.bf16.msra.mxu3 %v316_v7 }
  0x12   :  { %174 = vmatpush.bf16.msra.mxu0 %v307_v8  ;;  %335 = vmatpush.bf16.msra.mxu2 %v307_v8 }
  0x13   :  { %193 = vmatpush.bf16.msra.mxu1 %v315_v9  ;;  %343 = vmatpush.bf16.msra.mxu3 %v315_v9 }
  0x16   :  { %175 = vmatpush.bf16.msra.mxu0 %v306_v10  ;;  %336 = vmatpush.bf16.msra.mxu2 %v306_v10 }
  0x17   :  { %194 = vmatpush.bf16.msra.mxu1 %v314_v11  ;;  %344 = vmatpush.bf16.msra.mxu3 %v314_v11 }
  0x1a   :  { %176 = vmatpush.bf16.msra.mxu0 %v305_v12  ;;  %337 = vmatpush.bf16.msra.mxu2 %v305_v12 }
  0x1b   :  { %195 = vmatpush.bf16.msra.mxu1 %v313_v13  ;;  %345 = vmatpush.bf16.msra.mxu3 %v313_v13 }
  0x1e   :  { %177 = vmatpush.bf16.msra.mxu0 %v304_v14  ;;  %338 = vmatpush.bf16.msra.mxu2 %v304_v14 }
  0x1f   :  { %196 = vmatpush.bf16.msra.mxu1 %v312_v15  ;;  %346 = vmatpush.bf16.msra.mxu3 %v312_v15 }
  0x21   :  { %178 = vmatmul.bf16.vlgmr.msra.gmra.mxu0 %v223_v24  ;;  %183 = vmatmul.bf16.vlgmr.msra.gmra.mxu2 %v231_v25 }
  0x22   :  { %197 = vmatmul.bf16.vlgmr.msra.gmra.mxu1 %v227_v26  ;;  %202 = vmatmul.bf16.vlgmr.msra.gmra.mxu3 %v235_v27 }
  0x9e   :  { %v179_v28 = vpop.f32.mrf.mxu0 }
  0x9f   :  { %v198_v29 = vpop.f32.mrf.mxu1  ;;  %v180_v32 = vadd.f32 %v347_v30, %v179_v28 }
  0xa1   :  { %v199_v37 = vadd.f32 %v198_v29, %v180_v32 }
  0xa4   :  { %v184_v31 = vpop.f32.mrf.mxu2 }
  0xa5   :  { %v203_v33 = vpop.f32.mrf.mxu3  ;;  %v185_v39 = vadd.f32 %v347_v30, %v184_v31 }
  0xa6   :  { %v181_v34 = vpop.f32.mrf.mxu0 }
  0xa7   :  { %v182_v35 = vadd.f32 %v347_v30, %v181_v34  ;;  %v200_v36 = vpop.f32.mrf.mxu1  ;;  %v204_v44 = vadd.f32 %v203_v33, %v185_v39 }
  0xa9   :  { %v201_v38 = vadd.f32 %v200_v36, %v182_v35 }
  0xab   :  { %v323_v40 = vpack.c.bf16 %v201_v38, %v199_v37 }
  0xac   :  { %v186_v41 = vpop.f32.mrf.mxu2 }
  0xad   :  { %324 = vst [vmem:[%s452_s3] sm:$0xff] %v323_v40   ;;  %v187_v42 = vadd.f32 %v347_v30, %v186_v41  ;;  %v205_v43 = vpop.f32.mrf.mxu3 }
  0xaf   :  { %v206_v45 = vadd.f32 %v205_v43, %v187_v42 }
  0xb1   :  { %v328_v46 = vpack.c.bf16 %v206_v45, %v204_v44 }
  0xb3   :  { %330 = vst [vmem:[%s452_s3 + $0x8] sm:$0xff] %v328_v46  }

// kernel: hierarchical_vit_forward.8
= control target key start
LH: loop header
LB: loop body
LE: loop exit
PB: predicated region body
PF: predicated region fallthrough
CT: control target
= control target key end

     0   :  { %s637_s1 = inlined_call_operand.vmem [shape: bf16[512,128], index: 1, kind: input, shape index: {}]   ;;  %s638_s2 = inlined_call_operand.vmem [shape: f32[1,128], index: 2, kind: input, shape index: {}]   ;;  %s639_s0 = inlined_call_operand.vmem [shape: bf16[8,512], index: 0, kind: input, shape index: {}]   ;;  %s640_s3 = inlined_call_operand.vmem [shape: bf16[8,128], index: 3, kind: output, shape index: {}]  }
   0x1   :  { %v483_v0 = vld [vmem:[%s637_s1 + $0x38] sm:$0xff]  ;;  %v482_v4 = vld [vmem:[%s637_s1 + $0x30] sm:$0xff]  ;;  %v481_v8 = vld [vmem:[%s637_s1 + $0x28] sm:$0xff] }
   0x2   :  { %v491_v1 = vld [vmem:[%s637_s1 + $0x78] sm:$0xff]  ;;  %290 = vmatpush.bf16.msra.mxu0 %v483_v0  ;;  %v490_v5 = vld [vmem:[%s637_s1 + $0x70] sm:$0xff]  ;;  %v489_v9 = vld [vmem:[%s637_s1 + $0x68] sm:$0xff] }
   0x3   :  { %v499_v2 = vld [vmem:[%s637_s1 + $0xb8] sm:$0xff]  ;;  %303 = vmatpush.bf16.msra.mxu1 %v491_v1  ;;  %v498_v6 = vld [vmem:[%s637_s1 + $0xb0] sm:$0xff]  ;;  %v497_v10 = vld [vmem:[%s637_s1 + $0xa8] sm:$0xff] }
   0x4   :  { %v507_v3 = vld [vmem:[%s637_s1 + $0xf8] sm:$0xff]  ;;  %316 = vmatpush.bf16.msra.mxu2 %v499_v2  ;;  %v506_v7 = vld [vmem:[%s637_s1 + $0xf0] sm:$0xff]  ;;  %v505_v11 = vld [vmem:[%s637_s1 + $0xe8] sm:$0xff] }
   0x5   :  { %329 = vmatpush.bf16.msra.mxu3 %v507_v3  ;;  %v480_v12 = vld [vmem:[%s637_s1 + $0x20] sm:$0xff]  ;;  %v479_v16 = vld [vmem:[%s637_s1 + $0x18] sm:$0xff]  ;;  %v478_v20 = vld [vmem:[%s637_s1 + $0x10] sm:$0xff] }
   0x6   :  { %291 = vmatpush.bf16.msra.mxu0 %v482_v4  ;;  %v488_v13 = vld [vmem:[%s637_s1 + $0x60] sm:$0xff]  ;;  %v487_v17 = vld [vmem:[%s637_s1 + $0x58] sm:$0xff]  ;;  %v486_v21 = vld [vmem:[%s637_s1 + $0x50] sm:$0xff] }
   0x7   :  { %304 = vmatpush.bf16.msra.mxu1 %v490_v5  ;;  %v496_v14 = vld [vmem:[%s637_s1 + $0xa0] sm:$0xff]  ;;  %v495_v18 = vld [vmem:[%s637_s1 + $0x98] sm:$0xff]  ;;  %v494_v22 = vld [vmem:[%s637_s1 + $0x90] sm:$0xff] }
   0x8   :  { %317 = vmatpush.bf16.msra.mxu2 %v498_v6  ;;  %v504_v15 = vld [vmem:[%s637_s1 + $0xe0] sm:$0xff]  ;;  %v503_v19 = vld [vmem:[%s637_s1 + $0xd8] sm:$0xff]  ;;  %v502_v23 = vld [vmem:[%s637_s1 + $0xd0] sm:$0xff] }
   0x9   :  { %330 = vmatpush.bf16.msra.mxu3 %v506_v7  ;;  %v477_v24 = vld [vmem:[%s637_s1 + $0x8] sm:$0xff]  ;;  %v14_v26 = vld [vmem:[%s639_s0] sm:$0xff] }
   0xa   :  { %292 = vmatpush.bf16.msra.mxu0 %v481_v8  ;;  %v485_v25 = vld [vmem:[%s637_s1 + $0x48] sm:$0xff]  ;;  %v86_v30 = vunpack.c.l.b16 %v14_v26  ;;  %v87_v31 = vunpack.c.h.b16 %v14_v26  ;;  %v476_v32 = vld [vmem:[%s637_s1] sm:$0xff] }
   0xb   :  { %305 = vmatpush.bf16.msra.mxu1 %v489_v9  ;;  %v493_v27 = vld [vmem:[%s637_s1 + $0x88] sm:$0xff]  ;;  %v484_v33 = vld [vmem:[%s637_s1 + $0x40] sm:$0xff] }
   0xc   :  { %318 = vmatpush.bf16.msra.mxu2 %v497_v10  ;;  %v501_v28 = vld [vmem:[%s637_s1 + $0xc8] sm:$0xff]  ;;  %v492_v36 = vld [vmem:[%s637_s1 + $0x80] sm:$0xff]  ;;  %v90_v38 = vpack.c.b16 %v86_v30, %v86_v30  ;;  %v91_v39 = vpack.c.b16 %v87_v31, %v87_v31 }
   0xd   :  { %331 = vmatpush.bf16.msra.mxu3 %v505_v11  ;;  %v15_v29 = vld [vmem:[%s639_s0 + $0x8] sm:$0xff]  ;;  %v500_v37 = vld [vmem:[%s637_s1 + $0xc0] sm:$0xff] }
   0xe   :  { %293 = vmatpush.bf16.msra.mxu0 %v480_v12  ;;  %v88_v34 = vunpack.c.l.b16 %v15_v29  ;;  %v89_v35 = vunpack.c.h.b16 %v15_v29  ;;  %v508_v42 = vld [vmem:[%s638_s2] ss:$0 sm:$0xff] }
   0xf   :  { %306 = vmatpush.bf16.msra.mxu1 %v488_v13 }
  0x10   :  { %319 = vmatpush.bf16.msra.mxu2 %v496_v14  ;;  %v92_v40 = vpack.c.b16 %v88_v34, %v88_v34  ;;  %v93_v41 = vpack.c.b16 %v89_v35, %v89_v35 }
  0x11   :  { %332 = vmatpush.bf16.msra.mxu3 %v504_v15 }
  0x12   :  { %294 = vmatpush.bf16.msra.mxu0 %v479_v16 }
  0x13   :  { %307 = vmatpush.bf16.msra.mxu1 %v487_v17 }
  0x14   :  { %320 = vmatpush.bf16.msra.mxu2 %v495_v18 }
  0x15   :  { %333 = vmatpush.bf16.msra.mxu3 %v503_v19 }
  0x16   :  { %295 = vmatpush.bf16.msra.mxu0 %v478_v20 }
  0x17   :  { %308 = vmatpush.bf16.msra.mxu1 %v486_v21 }
  0x18   :  { %321 = vmatpush.bf16.msra.mxu2 %v494_v22 }
  0x19   :  { %334 = vmatpush.bf16.msra.mxu3 %v502_v23 }
  0x1a   :  { %296 = vmatpush.bf16.msra.mxu0 %v477_v24 }
  0x1b   :  { %309 = vmatpush.bf16.msra.mxu1 %v485_v25 }
  0x1c   :  { %322 = vmatpush.bf16.msra.mxu2 %v493_v27 }
  0x1d   :  { %335 = vmatpush.bf16.msra.mxu3 %v501_v28 }
  0x1e   :  { %297 = vmatpush.bf16.msra.mxu0 %v476_v32 }
  0x1f   :  { %310 = vmatpush.bf16.msra.mxu1 %v484_v33 }
  0x20   :  { %323 = vmatpush.bf16.msra.mxu2 %v492_v36 }
  0x21   :  { %336 = vmatpush.bf16.msra.mxu3 %v500_v37  ;;  %298 = vmatmul.bf16.vlgmr.msra.gmra.mxu0 %v90_v38 }
  0x22   :  { %311 = vmatmul.bf16.vlgmr.msra.gmra.mxu1 %v91_v39 }
  0x23   :  { %324 = vmatmul.bf16.vlgmr.msra.gmra.mxu2 %v92_v40 }
  0x24   :  { %337 = vmatmul.bf16.vlgmr.msra.gmra.mxu3 %v93_v41 }
  0x9e   :  { %v299_v43 = vpop.f32.mrf.mxu0 }
  0x9f   :  { %v312_v44 = vpop.f32.mrf.mxu1  ;;  %v300_v45 = vadd.f32 %v508_v42, %v299_v43 }
  0xa1   :  { %v313_v46 = vadd.f32 %v312_v44, %v300_v45 }
  0xa6   :  { %v325_v47 = vpop.f32.mrf.mxu2  ;;  %v301_v50 = vpop.f32.mrf.mxu0 }
  0xa7   :  { %v338_v48 = vpop.f32.mrf.mxu3  ;;  %v326_v49 = vadd.f32 %v325_v47, %v313_v46  ;;  %v314_v51 = vpop.f32.mrf.mxu1 }
  0xa9   :  { %v339_v52 = vadd.f32 %v338_v48, %v326_v49 }
  0xab   :  { %v342_v53 = vpack.c.bf16 %v339_v52, %v339_v52 }
  0xad   :  { %343 = vst [vmem:[%s640_s3] sm:$0xf] %v342_v53 }
  0xae   :  { %v327_v54 = vpop.f32.mrf.mxu2 }
  0xaf   :  { %v340_v55 = vpop.f32.mrf.mxu3 }

// kernel: hierarchical_vit_forward.10
= control target key start
LH: loop header
LB: loop body
LE: loop exit
PB: predicated region body
PF: predicated region fallthrough
CT: control target
= control target key end

     0   :  { %s629_s1 = inlined_call_operand.vmem [shape: bf16[512,128], index: 1, kind: input, shape index: {}]   ;;  %s630_s0 = inlined_call_operand.vmem [shape: bf16[2,512], index: 0, kind: input, shape index: {}]   ;;  %s631_s2 = inlined_call_operand.vmem [shape: f32[1,128], index: 2, kind: input, shape index: {}]   ;;  %s632_s3 = inlined_call_operand.vmem [shape: bf16[2,128], index: 3, kind: output, shape index: {}]  }
   0x1   :  { %v478_v0 = vld [vmem:[%s629_s1 + $0x38] sm:$0xff]  ;;  %v477_v4 = vld [vmem:[%s629_s1 + $0x30] sm:$0xff]  ;;  %v476_v8 = vld [vmem:[%s629_s1 + $0x28] sm:$0xff] }
   0x2   :  { %v486_v1 = vld [vmem:[%s629_s1 + $0x78] sm:$0xff]  ;;  %285 = vmatpush.bf16.msra.mxu0 %v478_v0  ;;  %v485_v5 = vld [vmem:[%s629_s1 + $0x70] sm:$0xff]  ;;  %v484_v9 = vld [vmem:[%s629_s1 + $0x68] sm:$0xff] }
   0x3   :  { %v494_v2 = vld [vmem:[%s629_s1 + $0xb8] sm:$0xff]  ;;  %298 = vmatpush.bf16.msra.mxu1 %v486_v1  ;;  %v493_v6 = vld [vmem:[%s629_s1 + $0xb0] sm:$0xff]  ;;  %v492_v10 = vld [vmem:[%s629_s1 + $0xa8] sm:$0xff] }
   0x4   :  { %v502_v3 = vld [vmem:[%s629_s1 + $0xf8] sm:$0xff]  ;;  %311 = vmatpush.bf16.msra.mxu2 %v494_v2  ;;  %v501_v7 = vld [vmem:[%s629_s1 + $0xf0] sm:$0xff]  ;;  %v500_v11 = vld [vmem:[%s629_s1 + $0xe8] sm:$0xff] }
   0x5   :  { %324 = vmatpush.bf16.msra.mxu3 %v502_v3  ;;  %v475_v12 = vld [vmem:[%s629_s1 + $0x20] sm:$0xff]  ;;  %v474_v17 = vld [vmem:[%s629_s1 + $0x18] sm:$0xff]  ;;  %v473_v21 = vld [vmem:[%s629_s1 + $0x10] sm:$0xff] }
   0x6   :  { %286 = vmatpush.bf16.msra.mxu0 %v477_v4  ;;  %v483_v13 = vld [vmem:[%s629_s1 + $0x60] sm:$0xff]  ;;  %v482_v18 = vld [vmem:[%s629_s1 + $0x58] sm:$0xff]  ;;  %v481_v22 = vld [vmem:[%s629_s1 + $0x50] sm:$0xff] }
   0x7   :  { %299 = vmatpush.bf16.msra.mxu1 %v485_v5  ;;  %v14_v14 = vld [vmem:[%s630_s0] sm:$0xf]  ;;  %v490_v19 = vld [vmem:[%s629_s1 + $0x98] sm:$0xff]  ;;  %v489_v23 = vld [vmem:[%s629_s1 + $0x90] sm:$0xff] }
   0x8   :  { %312 = vmatpush.bf16.msra.mxu2 %v493_v6  ;;  %v491_v15 = vld [vmem:[%s629_s1 + $0xa0] sm:$0xff]  ;;  %84 = vst [vmem:[#allocation1] ss:$9 sm:$0xff] %v14_v14  ;;  %v498_v20 = vld [vmem:[%s629_s1 + $0xd8] sm:$0xff]  ;;  %v497_v24 = vld [vmem:[%s629_s1 + $0xd0] sm:$0xff] }
   0x9   :  { %325 = vmatpush.bf16.msra.mxu3 %v501_v7  ;;  %v499_v16 = vld [vmem:[%s629_s1 + $0xe0] sm:$0xff]  ;;  %v472_v25 = vld [vmem:[%s629_s1 + $0x8] sm:$0xff] }
   0xa   :  { %287 = vmatpush.bf16.msra.mxu0 %v476_v8  ;;  %v480_v26 = vld [vmem:[%s629_s1 + $0x48] sm:$0xff]  ;;  %v471_v29 = vld [vmem:[%s629_s1] sm:$0xff] }
   0xb   :  { %300 = vmatpush.bf16.msra.mxu1 %v484_v9  ;;  %v488_v27 = vld [vmem:[%s629_s1 + $0x88] sm:$0xff]  ;;  %v479_v30 = vld [vmem:[%s629_s1 + $0x40] sm:$0xff] }
   0xc   :  { %313 = vmatpush.bf16.msra.mxu2 %v492_v10  ;;  %v496_v28 = vld [vmem:[%s629_s1 + $0xc8] sm:$0xff]  ;;  %v487_v31 = vld [vmem:[%s629_s1 + $0x80] sm:$0xff] }
   0xd   :  { %326 = vmatpush.bf16.msra.mxu3 %v500_v11  ;;  %v495_v32 = vld [vmem:[%s629_s1 + $0xc0] sm:$0xff] }
   0xe   :  { %288 = vmatpush.bf16.msra.mxu0 %v475_v12  ;;  %v503_v37 = vld [vmem:[%s631_s2] ss:$0 sm:$0xff] }
   0xf   :  { %301 = vmatpush.bf16.msra.mxu1 %v483_v13  ;;  %v85_v33 = vld [vmem:[#allocation1] sm:$0xff]  ;;  %v86_v34 = vld [vmem:[#allocation1 + $0x9] sm:$0xff]  ;;  %v87_v35 = vld [vmem:[#allocation1 + $0x12] sm:$0xff] }
  0x10   :  { %314 = vmatpush.bf16.msra.mxu2 %v491_v15  ;;  %v88_v36 = vld [vmem:[#allocation1 + $0x1b] sm:$0xff] }
  0x11   :  { %327 = vmatpush.bf16.msra.mxu3 %v499_v16 }
  0x12   :  { %289 = vmatpush.bf16.msra.mxu0 %v474_v17 }
  0x13   :  { %302 = vmatpush.bf16.msra.mxu1 %v482_v18 }
  0x14   :  { %315 = vmatpush.bf16.msra.mxu2 %v490_v19 }
  0x15   :  { %328 = vmatpush.bf16.msra.mxu3 %v498_v20 }
  0x16   :  { %290 = vmatpush.bf16.msra.mxu0 %v473_v21 }
  0x17   :  { %303 = vmatpush.bf16.msra.mxu1 %v481_v22 }
  0x18   :  { %316 = vmatpush.bf16.msra.mxu2 %v489_v23 }
  0x19   :  { %329 = vmatpush.bf16.msra.mxu3 %v497_v24 }
  0x1a   :  { %291 = vmatpush.bf16.msra.mxu0 %v472_v25 }
  0x1b   :  { %304 = vmatpush.bf16.msra.mxu1 %v480_v26 }
  0x1c   :  { %317 = vmatpush.bf16.msra.mxu2 %v488_v27 }
  0x1d   :  { %330 = vmatpush.bf16.msra.mxu3 %v496_v28 }
  0x1e   :  { %292 = vmatpush.bf16.msra.mxu0 %v471_v29 }
  0x1f   :  { %305 = vmatpush.bf16.msra.mxu1 %v479_v30 }
  0x20   :  { %318 = vmatpush.bf16.msra.mxu2 %v487_v31 }
  0x21   :  { %331 = vmatpush.bf16.msra.mxu3 %v495_v32  ;;  %293 = vmatmul.bf16.vlgmr.msra.gmra.mxu0 %v85_v33 }
  0x22   :  { %306 = vmatmul.bf16.vlgmr.msra.gmra.mxu1 %v86_v34 }
  0x23   :  { %319 = vmatmul.bf16.vlgmr.msra.gmra.mxu2 %v87_v35 }
  0x24   :  { %332 = vmatmul.bf16.vlgmr.msra.gmra.mxu3 %v88_v36 }
  0x9e   :  { %v294_v38 = vpop.f32.mrf.mxu0 }
  0x9f   :  { %v307_v39 = vpop.f32.mrf.mxu1  ;;  %v295_v40 = vadd.f32 %v503_v37, %v294_v38 }
  0xa1   :  { %v308_v41 = vadd.f32 %v307_v39, %v295_v40 }
  0xa6   :  { %v320_v42 = vpop.f32.mrf.mxu2  ;;  %v296_v45 = vpop.f32.mrf.mxu0 }
  0xa7   :  { %v333_v43 = vpop.f32.mrf.mxu3  ;;  %v321_v44 = vadd.f32 %v320_v42, %v308_v41  ;;  %v309_v46 = vpop.f32.mrf.mxu1 }
  0xa9   :  { %v334_v47 = vadd.f32 %v333_v43, %v321_v44 }
  0xab   :  { %v337_v48 = vpack.c.bf16 %v334_v47, %v334_v47 }
  0xad   :  { %338 = vst [vmem:[%s632_s3] sm:$0x1] %v337_v48 }
  0xae   :  { %v322_v49 = vpop.f32.mrf.mxu2 }
  0xaf   :  { %v335_v50 = vpop.f32.mrf.mxu3 }

// kernel: hierarchical_vit_forward.7
= control target key start
LH: loop header
LB: loop body
LE: loop exit
PB: predicated region body
PF: predicated region fallthrough
CT: control target
= control target key end

     0   :  { %s3206_s25 = smov 0   ;;  %s4180_s0 = inlined_call_operand.vmem [shape: bf16[2,16,128], index: 0, kind: input, shape index: {}]   ;;  %s4181_s1 = inlined_call_operand.vmem [shape: f32[1,128], index: 1, kind: input, shape index: {}]   ;;  %s4182_s2 = inlined_call_operand.vmem [shape: f32[1,128], index: 2, kind: input, shape index: {}]   ;;  %s4183_s3 = inlined_call_operand.vmem [shape: bf16[128,384], index: 3, kind: input, shape index: {}]   ;;  %s4184_s4 = inlined_call_operand.vmem [shape: f32[1,384], index: 4, kind: input, shape index: {}]   ;;  %s4185_s5 = inlined_call_operand.vmem [shape: bf16[128,128], index: 5, kind: input, shape index: {}]   ;;  %s4186_s6 = inlined_call_operand.vmem [shape: f32[1,128], index: 6, kind: input, shape index: {}]   ;;  %s4187_s7 = inlined_call_operand.vmem [shape: f32[1,128], index: 7, kind: input, shape index: {}]   ;;  %s4188_s8 = inlined_call_operand.vmem [shape: f32[1,128], index: 8, kind: input, shape index: {}]   ;;  %s4189_s9 = inlined_call_operand.vmem [shape: bf16[128,256], index: 9, kind: input, shape index: {}]   ;;  %s4190_s10 = inlined_call_operand.vmem [shape: f32[1,256], index: 10, kind: input, shape index: {}]   ;;  %s4191_s11 = inlined_call_operand.vmem [shape: bf16[256,128], index: 11, kind: input, shape index: {}]   ;;  %s4192_s12 = inlined_call_operand.vmem [shape: f32[1,128], index: 12, kind: input, shape index: {}]   ;;  %s4193_s13 = inlined_call_operand.vmem [shape: bf16[2,16,128], index: 13, kind: output, shape index: {}]  }
   0x1 LB: > { %s2683_s26 = sadd.s32 4294967295, %s3128_s25   ;;  %p2687_p0 = scmp.ge.s32.totalorder %s3128_s25, 1  ;;  %s3128_s25 = sphi %s3206_s25, %s23_s25  }
   0x2   : > { %p387_p1 = scmp.lt.s32.totalorder %s3128_s25, 3 }
   0x4   : > { %p388_p2 = pnand %p2687_p0, %p387_p1 }
   0x5   : > { %p431_p3 = scmp.lt.s32.totalorder (!%p388_p2), %s2683_s26, 1  ;;  %s3131_s18 = smov (!%p388_p2), 64  }
   0x6   : > { %391 = sbr.rel (%p388_p2) target bundleno = 1837 (0x72d), region = 72  ;;  %s3132_s19 = smov (!%p388_p2), 96  }
   0x7   : > { %s3133_s20 = smov (!%p388_p2), 32  }
   0xb   : > { %s4197_s26 = smov (!%p431_p3, %s2683_s26), 1  ;;  %v3130_v5 = vmov 128.0   ;;  %v2778_v7 = vld [vmem:[%s4183_s3 + $0xa8] sm:$0xf]  ;;  %v2986_v8 = vld [vmem:[%s4183_s3 + $0xb0] sm:$0xf0] }
   0xc   : > { %s2962_s27 = sshll.u32 %s4197_s26, 3  ;;  %3072 = vrcp.f32 %v3130_v5  ;;  %v2985_v9 = vld [vmem:[%s4183_s3 + $0xac] sm:$0xf]  ;;  %v2779_v10 = vor.u32 %v2986_v8, %v2778_v7  ;;  %v2780_v11 = vld [vmem:[%s4183_s3 + $0xb4] sm:$0xf0]  ;;  %vm773_vm7 = vcmask 1047556  }
   0xd   : > { %s435_s30 = scalar_lea.vmem %s4180_s0, %s2962_s27  ;;  %v2786_v12 = vld [vmem:[%s4183_s3 + $0xb0] sm:$0xf]  ;;  %v2987_v13 = vld [vmem:[%s4183_s3 + $0xb8] sm:$0xf0]  ;;  %v2783_v14 = vor.u32 %v2985_v9, %v2780_v11  ;;  %v2982_v19 = vld [vmem:[%s4183_s3 + $0x94] sm:$0xf] }
   0xe   : > { %v3029_v0 = vld [vmem:[%s435_s30] sm:$0xff]   ;;  %v2787_v15 = vor.u32 %v2987_v13, %v2786_v12  ;;  %678 = vmatpush.bf16.msra.mxu0 %v2779_v10  ;;  %v2766_v17 = vld [vmem:[%s4183_s3 + $0x90] sm:$0xf]  ;;  %v2983_v18 = vld [vmem:[%s4183_s3 + $0x98] sm:$0xf0]  ;;  %vm1451_vm8 = vcmask 261120  }
   0xf   : > { %v3222_v1 = vunpack.c.l.bf16 %v3029_v0  ;;  %v3227_v3 = vunpack.c.h.bf16 %v3029_v0  ;;  %692 = vmatpush.bf16.msra.mxu1 %v2783_v14  ;;  %v2767_v20 = vor.u32 %v2983_v18, %v2766_v17  ;;  %v2768_v21 = vld [vmem:[%s4183_s3 + $0x9c] sm:$0xf0]  ;;  %v2774_v22 = vld [vmem:[%s4183_s3 + $0x98] sm:$0xf]  ;;  %v2984_v23 = vld [vmem:[%s4183_s3 + $0xa0] sm:$0xf0] }
  0x10   : > { %706 = vmatpush.bf16.msra.mxu2 %v2787_v15  ;;  %v2771_v24 = vor.u32 %v2982_v19, %v2768_v21  ;;  %v2775_v25 = vor.u32 %v2984_v23, %v2774_v22  ;;  %v2754_v27 = vld [vmem:[%s4183_s3 + $0x78] sm:$0xf]  ;;  %v2980_v28 = vld [vmem:[%s4183_s3 + $0x80] sm:$0xf0]  ;;  %v2979_v29 = vld [vmem:[%s4183_s3 + $0x7c] sm:$0xf] }
  0x11   : > { %448 = vadd.xlane.f32.xlu0 %v3222_v1  ;;  %v461_v2 = vmul.f32 %v3222_v1, %v3222_v1  ;;  %v462_v4 = vmul.f32 %v3227_v3, %v3227_v3  ;;  %v2755_v30 = vor.u32 %v2980_v28, %v2754_v27  ;;  %v2756_v31 = vld [vmem:[%s4183_s3 + $0x84] sm:$0xf0]  ;;  %v2762_v32 = vld [vmem:[%s4183_s3 + $0x80] sm:$0xf]  ;;  %v2981_v33 = vld [vmem:[%s4183_s3 + $0x88] sm:$0xf0] }
  0x12   : > { %v3232_v6 = vpop.eup %3072  ;;  %679 = vmatpush.bf16.msra.mxu0 %v2767_v20  ;;  %v2759_v34 = vor.u32 %v2979_v29, %v2756_v31  ;;  %v2763_v35 = vor.u32 %v2981_v33, %v2762_v32  ;;  %v2742_v36 = vld [vmem:[%s4183_s3 + $0x60] sm:$0xf]  ;;  %v2977_v37 = vld [vmem:[%s4183_s3 + $0x68] sm:$0xf0]  ;;  %v2976_v38 = vld [vmem:[%s4183_s3 + $0x64] sm:$0xf] }
  0x13   : > { %463 = vadd.xlane.f32.xlu1 %v461_v2  ;;  %v453_v16 = vmul.f32 128.0, %v3232_v6  ;;  %693 = vmatpush.bf16.msra.mxu1 %v2771_v24  ;;  %v2743_v40 = vor.u32 %v2977_v37, %v2742_v36  ;;  %v2744_v41 = vld [vmem:[%s4183_s3 + $0x6c] sm:$0xf0]  ;;  %v2750_v42 = vld [vmem:[%s4183_s3 + $0x68] sm:$0xf]  ;;  %vm457_vm0 = vweird.f32 %v3232_v6  ;;  %vm1558_vm9 = vcmask 130048  }
  0x14   : > { %707 = vmatpush.bf16.msra.mxu2 %v2775_v25  ;;  %v2978_v43 = vld [vmem:[%s4183_s3 + $0x70] sm:$0xf0]  ;;  %v2747_v44 = vor.u32 %v2976_v38, %v2744_v41  ;;  %v2730_v46 = vld [vmem:[%s4183_s3 + $0x48] sm:$0xf]  ;;  %v2973_v48 = vld [vmem:[%s4183_s3 + $0x4c] sm:$0xf] }
  0x15   : > { %v454_v26 = vsub.f32 1.0, %v453_v16  ;;  %v2751_v45 = vor.u32 %v2978_v43, %v2750_v42  ;;  %v2974_v47 = vld [vmem:[%s4183_s3 + $0x50] sm:$0xf0]  ;;  %v2732_v51 = vld [vmem:[%s4183_s3 + $0x54] sm:$0xf0]  ;;  %vm2006_vm10 = vcmask 523264  }
  0x16   : > { %680 = vmatpush.bf16.msra.mxu0 %v2755_v30  ;;  %v2731_v50 = vor.u32 %v2974_v47, %v2730_v46  ;;  %v2738_v52 = vld [vmem:[%s4183_s3 + $0x50] sm:$0xf]  ;;  %v2975_v53 = vld [vmem:[%s4183_s3 + $0x58] sm:$0xf0]  ;;  %v2735_v54 = vor.u32 %v2973_v48, %v2732_v51  ;;  %v2970_v58 = vld [vmem:[%s4183_s3 + $0x34] sm:$0xf] }
  0x17   : > { %694 = vmatpush.bf16.msra.mxu1 %v2759_v34  ;;  %v455_v39 = vmul.f32 %v3232_v6, %v454_v26  ;;  %v2739_v55 = vor.u32 %v2975_v53, %v2738_v52  ;;  %v2718_v56 = vld [vmem:[%s4183_s3 + $0x30] sm:$0xf]  ;;  %v2971_v57 = vld [vmem:[%s4183_s3 + $0x38] sm:$0xf0]  ;;  %v2720_v61 = vld [vmem:[%s4183_s3 + $0x3c] sm:$0xf0] }
  0x18   : > { %708 = vmatpush.bf16.msra.mxu2 %v2763_v35  ;;  %v2719_v60 = vor.u32 %v2971_v57, %v2718_v56  ;;  %v2726_v62 = vld [vmem:[%s4183_s3 + $0x38] sm:$0xf]  ;;  %v2972_v63 = vld [vmem:[%s4183_s3 + $0x40] sm:$0xf0]  ;;  %v2723_v0 = vor.u32 %v2970_v58, %v2720_v61  ;;  %v2967_v8 = vld [vmem:[%s4183_s3 + $0x1c] sm:$0xf] }
  0x19   : > { %450 = vadd.xlane.f32.xlu0 %v3227_v3  ;;  %v456_v49 = vadd.f32 %v3232_v6, %v455_v39  ;;  %v2727_v2 = vor.u32 %v2972_v63, %v2726_v62  ;;  %v2968_v7 = vld [vmem:[%s4183_s3 + $0x20] sm:$0xf0]  ;;  %v2708_v11 = vld [vmem:[%s4183_s3 + $0x24] sm:$0xf0]  ;;  %v2714_v12 = vld [vmem:[%s4183_s3 + $0x20] sm:$0xf] }
  0x1a   : > { %681 = vmatpush.bf16.msra.mxu0 %v2743_v40  ;;  %v2969_v13 = vld [vmem:[%s4183_s3 + $0x28] sm:$0xf0]  ;;  %v2711_v16 = vor.u32 %v2967_v8, %v2708_v11  ;;  %v2694_v17 = vld [vmem:[%s4183_s3] sm:$0xf]  ;;  %v2964_v19 = vld [vmem:[%s4183_s3 + $0x4] sm:$0xf] }
  0x1b   : > { %465 = vadd.xlane.f32.xlu1 %v462_v4  ;;  %695 = vmatpush.bf16.msra.mxu1 %v2747_v44  ;;  %v3338_v59 = vsel %vm457_vm0, %v3232_v6, %v456_v49  ;;  %v2706_v6 = vld [vmem:[%s4183_s3 + $0x18] sm:$0xf]  ;;  %v2965_v18 = vld [vmem:[%s4183_s3 + $0x8] sm:$0xf0]  ;;  %v2715_v20 = vor.u32 %v2969_v13, %v2714_v12  ;;  %v2696_v22 = vld [vmem:[%s4183_s3 + $0xc] sm:$0xf0] }
  0x1c   : > { %709 = vmatpush.bf16.msra.mxu2 %v2751_v45  ;;  %v2707_v10 = vor.u32 %v2968_v7, %v2706_v6  ;;  %v2695_v21 = vor.u32 %v2965_v18, %v2694_v17  ;;  %v2702_v23 = vld [vmem:[%s4183_s3 + $0x8] sm:$0xf]  ;;  %v2966_v24 = vld [vmem:[%s4183_s3 + $0x10] sm:$0xf0]  ;;  %v2699_v26 = vor.u32 %v2964_v19, %v2696_v22  ;;  %v3067_v56 = vld [vmem:[%s4182_s2] ss:$0 sm:$0xff] }
  0x1d   : > { %v2703_v27 = vor.u32 %v2966_v24, %v2702_v23  ;;  %v542_v62 = vld [vmem:[%s4184_s4] sm:$0x7]  ;;  %v3134_v22 = vmov 1983009808   ;;  %vm2009_vm11 = vcmask 785408  }
  0x1e   : > { %682 = vmatpush.bf16.msra.mxu0 %v2731_v50  ;;  %v3066_v50 = vld [vmem:[%s4181_s1] ss:$0 sm:$0xff]  ;;  %v544_v63 = vperm.slane %v542_v62, 0  ;;  %v546_v8 = vperm.slane %v542_v62, 2  ;;  %v764_v23 = vunpack.c.l.s4 %v3134_v22 }
  0x1f   : > { %696 = vmatpush.bf16.msra.mxu1 %v2735_v54 }
  0x20   : > { %710 = vmatpush.bf16.msra.mxu2 %v2739_v55 }
  0x22   : > { %683 = vmatpush.bf16.msra.mxu0 %v2719_v60 }
  0x23   : > { %697 = vmatpush.bf16.msra.mxu1 %v2723_v0  ;;  %v545_v0 = vperm.slane %v542_v62, 1 }
  0x24   : > { %711 = vmatpush.bf16.msra.mxu2 %v2727_v2 }
  0x26   : > { %684 = vmatpush.bf16.msra.mxu0 %v2707_v10 }
  0x27   : > { %698 = vmatpush.bf16.msra.mxu1 %v2711_v16 }
  0x28   : > { %712 = vmatpush.bf16.msra.mxu2 %v2715_v20 }
  0x2a   : > { %685 = vmatpush.bf16.msra.mxu0 %v2695_v21 }
  0x2b   : > { %699 = vmatpush.bf16.msra.mxu1 %v2699_v26 }
  0x2c   : > { %713 = vmatpush.bf16.msra.mxu2 %v2703_v27 }
  0x84   : > { %v449_v4 = vpop.xlane.xlu0 %448 }
  0x85   : > { %v459_v5 = vmul.f32 %v3338_v59, %v449_v4 }
  0x86   : > { %v464_v9 = vpop.xlane.xlu1 %463 }
  0x87   : > { %v469_v14 = vmul.f32 %v459_v5, %v459_v5  ;;  %v467_v15 = vmul.f32 %v464_v9, %v3338_v59  ;;  %v473_v47 = vsub.f32 %v3222_v1, %v459_v5 }
  0x89   : > { %v471_v25 = vsub.f32 %v467_v15, %v469_v14 }
  0x8b   : > { %v475_v28 = vadd.f32 1e-05, %v471_v25  ;;  %v3421_v25 = vunpack.c.0.s8 %v764_v23 }
  0x8c   : > { %v451_v29 = vpop.xlane.xlu0 %450 }
  0x8d   : > { %3074 = vrsqrt.f32 %v475_v28  ;;  %v460_v30 = vmul.f32 %v3338_v59, %v451_v29  ;;  %vm483_vm2 = vweird.f32 %v475_v28 }
  0x8e   : > { %v466_v31 = vpop.xlane.xlu1 %465 }
  0x8f   : > { %v470_v32 = vmul.f32 %v460_v30, %v460_v30  ;;  %v468_v33 = vmul.f32 %v466_v31, %v3338_v59  ;;  %v474_v52 = vsub.f32 %v3227_v3, %v460_v30 }
  0x91   : > { %v472_v34 = vsub.f32 %v468_v33, %v470_v32  ;;  %v3135_v33 = vmov 1934713408  }
  0x93   : > { %v3075_v35 = vpop.eup %3074  ;;  %v476_v36 = vadd.f32 1e-05, %v472_v34  ;;  %v778_v34 = vunpack.c.l.s4 %v3135_v33 }
  0x94   : > { %v478_v37 = vmul.f32 %v3075_v35, %v475_v28  ;;  %vm484_vm1 = vweird.f32 %v3075_v35 }
  0x95   : > { %3076 = vrsqrt.f32 %v476_v36  ;;  %vm485_vm3 = vmor %vm483_vm2, %vm484_vm1  ;;  %vm493_vm5 = vweird.f32 %v476_v36 }
  0x96   : > { %v479_v38 = vmul.f32 %v3075_v35, %v478_v37 }
  0x98   : > { %v480_v39 = vmul.f32 0.5, %v479_v38 }
  0x9a   : > { %v481_v40 = vsub.f32 1.5, %v480_v39 }
  0x9b   : > { %v3077_v41 = vpop.eup %3076 }
  0x9c   : > { %v482_v42 = vmul.f32 %v3075_v35, %v481_v40  ;;  %v488_v43 = vmul.f32 %v3077_v41, %v476_v36  ;;  %vm494_vm4 = vweird.f32 %v3077_v41 }
  0x9d   : > { %vm495_vm6 = vmor %vm493_vm5, %vm494_vm4 }
  0x9e   : > { %v489_v44 = vmul.f32 %v3077_v41, %v488_v43  ;;  %v486_v45 = vsel %vm485_vm3, %v3075_v35, %v482_v42 }
  0x9f   : > { %v497_v49 = vmul.f32 %v486_v45, %v473_v47  ;;  %v3426_v45 = vunpack.c.0.s8 %v778_v34 }
  0xa0   : > { %v490_v46 = vmul.f32 0.5, %v489_v44 }
  0xa1   : > { %v502_v55 = vmul.f32 %v3066_v50, %v497_v49 }
  0xa2   : > { %v491_v48 = vsub.f32 1.5, %v490_v46 }
  0xa3   : > { %v507_v58 = vadd.f32 %v3067_v56, %v502_v55 }
  0xa4   : > { %v492_v51 = vmul.f32 %v3077_v41, %v491_v48 }
  0xa6   : > { %v496_v53 = vsel %vm495_vm6, %v3077_v41, %v492_v51 }
  0xa7   : > { %v498_v54 = vmul.f32 %v496_v53, %v474_v52 }
  0xa9   : > { %v503_v57 = vmul.f32 %v3066_v50, %v498_v54 }
  0xab   : > { %v508_v60 = vadd.f32 %v3067_v56, %v503_v57 }
  0xad   : > { %v509_v61 = vpack.c.bf16 %v508_v60, %v507_v58 }
  0xaf   : > { %686 = vmatmul.bf16.vlgmr.msra.gmra.mxu0 %v509_v61  ;;  %700 = vmatmul.bf16.vlgmr.msra.gmra.mxu1 %v509_v61 }
  0xb0   : > { %714 = vmatmul.bf16.vlgmr.msra.gmra.mxu2 %v509_v61 }
 0x12c   : > { %v687_v2 = vpop.f32.mrf.mxu0  ;;  %v701_v4 = vpop.f32.mrf.mxu1 }
 0x12d   : > { %v688_v5 = vadd.f32 %v687_v2, %v544_v63  ;;  %v702_v6 = vadd.f32 %v701_v4, %v545_v0 }
 0x12f   : > { %v720_v7 = vpack.c.bf16 %v702_v6, %v688_v5 }
 0x131   : > { %730 = vrot.lane.b32.xlu0 %v720_v7, %s3131_s18  ;;  %726 = vrot.lane.b32.xlu2 %v720_v7, %s3132_s19  ;;  %v967_v24 = vrot.slane %v720_v7, 4  ;;  %v741_v30 = vshrl.u32 %v720_v7, 16 }
 0x133   : > { %v715_v9 = vpop.f32.mrf.mxu2  ;;  %v978_v37 = vshrl.u32 %v967_v24, 16 }
 0x134   : > { %v716_v10 = vadd.f32 %v715_v9, %v546_v8  ;;  %v689_v11 = vpop.f32.mrf.mxu0  ;;  %v703_v12 = vpop.f32.mrf.mxu1 }
 0x135   : > { %v690_v13 = vadd.f32 %v689_v11, %v544_v63  ;;  %v704_v14 = vadd.f32 %v703_v12, %v545_v0 }
 0x136   : > { %v3402_v15 = vpack.c.bf16 %v716_v10, %v716_v10 }
 0x137   : > { %v3404_v16 = vpack.c.bf16 %v704_v14, %v690_v13 }
 0x139   : > { %732 = vrot.lane.b32.xlu1 %v3404_v16, %s3131_s18  ;;  %1209 = vrot.lane.b32.xlu0 %v3402_v15, %s3131_s18  ;;  %v968_v29 = vrot.slane %v3404_v16, 4  ;;  %v753_v39 = vshrl.u32 %v3404_v16, 16 }
 0x13a   : > { %728 = vrot.lane.b32.xlu2 %v3404_v16, %s3132_s19 }
 0x13b   : > { %v717_v17 = vpop.f32.mrf.mxu2  ;;  %v990_v40 = vshrl.u32 %v968_v29, 16 }
 0x13c   : > { %v718_v18 = vadd.f32 %v717_v17, %v546_v8 }
 0x13e   : > { %v3412_v19 = vpack.c.bf16 %v718_v18, %v718_v18 }
 0x141   : > { %1207 = vrot.lane.b32.xlu1 %v3412_v19, %s3132_s19 }
 0x142   : > { %734 = vrot.lane.b32.xlu2 %v720_v7, %s3133_s20 }
 0x14a   : > { %736 = vrot.lane.b32.xlu2 %v3404_v16, %s3133_s20 }
 0x152   : > { %1205 = vrot.lane.b32.xlu2 %v3402_v15, %s3132_s19 }
 0x18b   : > { %v727_v20 = vpop.permute.xlu2 %726 }
 0x18c   : > { %v740_v26 = vpack.i.b16 %v727_v20, %v720_v7  ;;  %v742_v27 = vshrl.u32 %v727_v20, 16  ;;  %v969_v28 = vrot.slane %v727_v20, 4 }
 0x18e   : > { %v743_v35 = vpack.i.b16 %v742_v27, %v741_v30  ;;  %v766_v36 = vperm.slane %v740_v26, %v3421_v25  ;;  %v979_v38 = vshrl.u32 %v969_v28, 16  ;;  %v977_v42 = vpack.i.b16 %v969_v28, %v967_v24 }
 0x190   : > { %v775_v51 = vrot.slane %v766_v36, 4  ;;  %v793_v52 = vperm.slane %v743_v35, %v3421_v25  ;;  %v980_v53 = vpack.i.b16 %v979_v38, %v978_v37  ;;  %v1003_v6 = vperm.slane %v977_v42, %v3421_v25 }
 0x192   : > { %v801_v5 = vrot.slane %v793_v52, 4  ;;  %v1029_v10 = vperm.slane %v980_v53, %v3421_v25  ;;  %v1011_v23 = vrot.slane %v1003_v6, 4 }
 0x194   : > { %v729_v21 = vpop.permute.xlu2 %728  ;;  %v1037_v27 = vrot.slane %v1029_v10, 4 }
 0x195   : > { %v970_v31 = vrot.slane %v729_v21, 4  ;;  %v754_v41 = vshrl.u32 %v729_v21, 16  ;;  %v752_v54 = vpack.i.b16 %v729_v21, %v3404_v16 }
 0x197   : > { %v991_v43 = vshrl.u32 %v970_v31, 16  ;;  %v755_v55 = vpack.i.b16 %v754_v41, %v753_v39  ;;  %v989_v60 = vpack.i.b16 %v970_v31, %v968_v29  ;;  %v819_v11 = vperm.slane %v752_v54, %v3421_v25 }
 0x199   : > { %v992_v61 = vpack.i.b16 %v991_v43, %v990_v40  ;;  %v3438_v12 = vperm.slane %v755_v55, %v3421_v25  ;;  %v3442_v14 = vperm.slane %v989_v60, %v3421_v25  ;;  %v827_v28 = vrot.slane %v819_v11, 4 }
 0x19b   : > { %v3445_v16 = vperm.slane %v992_v61, %v3421_v25  ;;  %v853_v29 = vrot.slane %v3438_v12, 4 }
 0x19c   : > { %v735_v32 = vpop.permute.xlu2 %734 }
 0x19d   : > { %v973_v44 = vrot.slane %v735_v32, 4  ;;  %v748_v47 = vshrl.u32 %v735_v32, 16  ;;  %v1089_v33 = vrot.slane %v3445_v16, 4 }
 0x19f   : > { %v985_v62 = vshrl.u32 %v973_v44, 16 }
 0x1a3   : > { %v731_v46 = vpop.permute.xlu0 %730 }
 0x1a4   : > { %v746_v48 = vpack.i.b16 %v735_v32, %v731_v46  ;;  %v747_v49 = vshrl.u32 %v731_v46, 16  ;;  %v971_v50 = vrot.slane %v731_v46, 4  ;;  %v737_v9 = vpop.permute.xlu2 %736  ;;  %v1063_v32 = vrot.slane %v3442_v14, 4 }
 0x1a5   : > { %v974_v22 = vrot.slane %v737_v9, 4  ;;  %v760_v35 = vshrl.u32 %v737_v9, 16 }
 0x1a6   : > { %v749_v56 = vpack.i.b16 %v748_v47, %v747_v49  ;;  %v771_v57 = vperm.slane %v746_v48, %v3421_v25  ;;  %v984_v58 = vshrl.u32 %v971_v50, 16  ;;  %v983_v4 = vpack.i.b16 %v973_v44, %v971_v50 }
 0x1a7   : > { %v997_v39 = vshrl.u32 %v974_v22, 16 }
 0x1a8   : > { %v772_v63 = vrot.slane %v771_v57, 4  ;;  %v776_v0 = vsel %vm773_vm7, %v771_v57, %v775_v51  ;;  %v798_v2 = vperm.slane %v749_v56, %v3421_v25  ;;  %v986_v8 = vpack.i.b16 %v985_v62, %v984_v58 }
 0x1a9   : > { %v784_v7 = vperm.slane %v776_v0, %v3426_v45  ;;  %v1008_v21 = vperm.slane %v983_v4, %v3421_v25 }
 0x1aa   : > { %v774_v13 = vsel %vm773_vm7, %v772_v63, %v766_v36  ;;  %v799_v17 = vrot.slane %v798_v2, 4  ;;  %v802_v18 = vsel %vm773_vm7, %v798_v2, %v801_v5  ;;  %v1034_v26 = vperm.slane %v986_v8, %v3421_v25 }
 0x1ab   : > { %v787_v20 = vrot.slane %v784_v7, 4  ;;  %v780_v24 = vperm.slane %v774_v13, %v3426_v45  ;;  %v810_v30 = vperm.slane %v802_v18, %v3426_v45  ;;  %v733_v31 = vpop.permute.xlu1 %732  ;;  %v1009_v37 = vrot.slane %v1008_v21, 4 }
 0x1ac   : > { %v800_v34 = vsel %vm773_vm7, %v799_v17, %v793_v52  ;;  %v1012_v38 = vsel %vm773_vm7, %v1008_v21, %v1011_v23  ;;  %v1035_v41 = vrot.slane %v1034_v26, 4  ;;  %v1038_v42 = vsel %vm773_vm7, %v1034_v26, %v1037_v27 }
 0x1ad   : > { %v3457_v36 = vsel %vm773_vm7, 0, %v787_v20  ;;  %v785_v40 = vrot.slane %v780_v24, 4  ;;  %v758_v43 = vpack.i.b16 %v737_v9, %v733_v31  ;;  %v3462_v44 = vperm.slane %v800_v34, %v3426_v45 }
 0x1ae   : > { %v3464_v46 = vrot.slane %v810_v30, 4  ;;  %v759_v47 = vshrl.u32 %v733_v31, 16  ;;  %v972_v48 = vrot.slane %v733_v31, 4  ;;  %v3467_v49 = vsel %vm773_vm7, %v787_v20, %v780_v24 }
 0x1af   : > { %v872_v50 = vrot.slane %v3457_v36, 4  ;;  %v1020_v51 = vperm.slane %v1012_v38, %v3426_v45  ;;  %v824_v52 = vperm.slane %v758_v43, %v3421_v25  ;;  %v1010_v53 = vsel %vm773_vm7, %v1009_v37, %v1003_v6 }
 0x1b0   : > { %v761_v54 = vpack.i.b16 %v760_v35, %v759_v47  ;;  %v995_v55 = vpack.i.b16 %v974_v22, %v972_v48  ;;  %v996_v56 = vshrl.u32 %v972_v48, 16  ;;  %v1036_v57 = vsel %vm773_vm7, %v1035_v41, %v1029_v10 }
 0x1b1   : > { %v1046_v58 = vperm.slane %v1038_v42, %v3426_v45  ;;  %v825_v60 = vrot.slane %v824_v52, 4  ;;  %v828_v61 = vsel %vm773_vm7, %v824_v52, %v827_v28  ;;  %v811_v62 = vrot.slane %v3462_v44, 4 }
 0x1b2   : > { %v850_v63 = vperm.slane %v761_v54, %v3421_v25  ;;  %v998_v0 = vpack.i.b16 %v997_v39, %v996_v56  ;;  %v1060_v2 = vperm.slane %v995_v55, %v3421_v25  ;;  %v3481_v4 = vsel %vm773_vm7, 0, %v3464_v46 }
 0x1b3   : > { %v1016_v5 = vperm.slane %v1010_v53, %v3426_v45  ;;  %v1023_v6 = vrot.slane %v1020_v51, 4  ;;  %v836_v7 = vperm.slane %v828_v61, %v3426_v45  ;;  %v1042_v8 = vperm.slane %v1036_v57, %v3426_v45 }
 0x1b4   : > { %v826_v9 = vsel %vm773_vm7, %v825_v60, %v819_v11  ;;  %v851_v10 = vrot.slane %v850_v63, 4  ;;  %v854_v13 = vsel %vm773_vm7, %v850_v63, %v853_v29  ;;  %v1049_v17 = vrot.slane %v1046_v58, 4 }
 0x1b5   : > { %v1061_v18 = vrot.slane %v1060_v2, 4  ;;  %v1064_v20 = vsel %vm773_vm7, %v1060_v2, %v1063_v32  ;;  %v1086_v21 = vperm.slane %v998_v0, %v3421_v25  ;;  %v3491_v22 = vsel %vm773_vm7, 0, %v785_v40 }
 0x1b6   : > { %v3494_v23 = vsel %vm773_vm7, 0, %v811_v62  ;;  %v891_v24 = vrot.slane %v3481_v4, 4  ;;  %v862_v26 = vperm.slane %v854_v13, %v3426_v45  ;;  %v832_v11 = vperm.slane %v826_v9, %v3426_v45 }
 0x1b7   : > { %v839_v27 = vrot.slane %v836_v7, 4  ;;  %v852_v28 = vsel %vm773_vm7, %v851_v10, %v3438_v12  ;;  %v1062_v29 = vsel %vm773_vm7, %v1061_v18, %v3442_v14  ;;  %v1021_v30 = vrot.slane %v1016_v5, 4 }
 0x1b8   : > { %v1068_v31 = vperm.slane %v1062_v29, %v3426_v45  ;;  %v1072_v32 = vperm.slane %v1064_v20, %v3426_v45  ;;  %v1087_v34 = vrot.slane %v1086_v21, 4  ;;  %v1024_v35 = vsel %vm773_vm7, 0, %v1023_v6 }
 0x1b9   : > { %v1047_v37 = vrot.slane %v1042_v8, 4  ;;  %v1050_v38 = vsel %vm773_vm7, 0, %v1049_v17  ;;  %v1090_v39 = vsel %vm773_vm7, %v1086_v21, %v1089_v33  ;;  %v3509_v40 = vperm.slane %v852_v28, %v3426_v45 }
 0x1ba   : > { %v3511_v12 = vrot.slane %v862_v26, 4  ;;  %v1075_v41 = vrot.slane %v1072_v32, 4  ;;  %v1088_v14 = vsel %vm773_vm7, %v1087_v34, %v3445_v16  ;;  %v837_v42 = vrot.slane %v832_v11, 4 }
 0x1bb   : > { %v3516_v43 = vsel %vm773_vm7, 0, %v839_v27  ;;  %v1094_v47 = vperm.slane %v1088_v14, %v3426_v45  ;;  %v1098_v48 = vperm.slane %v1090_v39, %v3426_v45  ;;  %v1108_v51 = vrot.slane %v1024_v35, 4 }
 0x1bc   : > { %v1127_v52 = vrot.slane %v1050_v38, 4  ;;  %v1073_v33 = vrot.slane %v1068_v31, 4  ;;  %v1076_v53 = vsel %vm773_vm7, 0, %v1075_v41  ;;  %v3522_v54 = vsel %vm773_vm7, %v839_v27, %v832_v11 }
 0x1bd   : > { %v1099_v55 = vrot.slane %v1094_v47, 4  ;;  %v1101_v56 = vrot.slane %v1098_v48, 4  ;;  %v1022_v16 = vsel %vm773_vm7, 0, %v1021_v30  ;;  %v863_v57 = vrot.slane %v3509_v40, 4 }
 0x1be   : > { %v3528_v58 = vsel %vm773_vm7, 0, %v3511_v12  ;;  %v910_v60 = vrot.slane %v3516_v43, 4  ;;  %v1048_v61 = vsel %vm773_vm7, 0, %v1047_v37  ;;  %v3533_v62 = vsel %vm773_vm7, 0, %v837_v42 }
 0x1bf   : > { %v1102_v63 = vsel %vm773_vm7, 0, %v1101_v56  ;;  %v1146_v0 = vrot.slane %v1076_v53, 4  ;;  %v1103_v2 = vsel %vm773_vm7, %v1023_v6, %v1016_v5  ;;  %v1074_v9 = vsel %vm773_vm7, 0, %v1073_v33 }
 0x1c0   : > { %v1165_v7 = vrot.slane %v1102_v63, 4  ;;  %v1100_v10 = vsel %vm773_vm7, 0, %v1099_v55  ;;  %v1109_v13 = vsel %vm773_vm7, %v1108_v51, %v1022_v16  ;;  %v929_v18 = vrot.slane %v3528_v58, 4 }
 0x1c1   : > { %v1113_v20 = vperm.slane %v1109_v13, %v3421_v25  ;;  %v1122_v21 = vsel %vm773_vm7, %v1049_v17, %v1042_v8  ;;  %v1128_v26 = vsel %vm773_vm7, %v1127_v52, %v1048_v61  ;;  %v3545_v11 = vsel %vm773_vm7, 0, %v863_v57 }
 0x1c2   : > { %v1107_v5 = vperm.slane %v1103_v2, %v3421_v25  ;;  %v1132_v6 = vperm.slane %v1128_v26, %v3421_v25  ;;  %v1141_v27 = vsel %vm773_vm7, %v1075_v41, %v1068_v31  ;;  %v1147_v29 = vsel %vm773_vm7, %v1146_v0, %v1074_v9 }
 0x1c3   : > { %v1114_v28 = vrot.slane %v1113_v20, 4  ;;  %v1160_v30 = vsel %vm773_vm7, %v1101_v56, %v1094_v47  ;;  %v1166_v32 = vsel %vm773_vm7, %v1165_v7, %v1100_v10  ;;  %v1126_v8 = vperm.slane %v1122_v21, %v3421_v25 }
 0x1c4   : > { %v1133_v17 = vrot.slane %v1132_v6, 4  ;;  %v1151_v34 = vperm.slane %v1147_v29, %v3421_v25  ;;  %v1170_v35 = vperm.slane %v1166_v32, %v3421_v25  ;;  %v1145_v38 = vperm.slane %v1141_v27, %v3421_v25 }
 0x1c5   : > { %v1115_v37 = vsel %vm773_vm7, %v1114_v28, %v1107_v5  ;;  %v1164_v31 = vperm.slane %v1160_v30, %v3421_v25  ;;  %v873_v39 = vsel %vm773_vm7, %v872_v50, %v3491_v22  ;;  %v871_v51 = vperm.slane %v3467_v49, %v3421_v25 }
 0x1c6   : > { %v1119_v41 = vperm.slane %v1115_v37, %v3426_v45  ;;  %v1134_v14 = vsel %vm773_vm7, %v1133_v17, %v1126_v8  ;;  %v1152_v42 = vrot.slane %v1151_v34, 4  ;;  %v1171_v47 = vrot.slane %v1170_v35, 4 }
 0x1c7   : > { %v1138_v48 = vperm.slane %v1134_v14, %v3426_v45  ;;  %v877_v52 = vperm.slane %v873_v39, %v3421_v25  ;;  %v886_v49 = vsel %vm773_vm7, %v3464_v46, %v3462_v44  ;;  %v892_v9 = vsel %vm773_vm7, %v891_v24, %v3494_v23 }
 0x1c8   : > { %v1153_v33 = vsel %vm773_vm7, %v1152_v42, %v1145_v38  ;;  %v1172_v36 = vsel %vm773_vm7, %v1171_v47, %v1164_v31  ;;  %v1182_v53 = vshrl.u32 %v1119_v41, 16  ;;  %v1120_v50 = vrot.slane %v1119_v41, 4 }
 0x1c9   : > { %v1157_v22 = vperm.slane %v1153_v33, %v3426_v45  ;;  %v1176_v55 = vperm.slane %v1172_v36, %v3426_v45  ;;  %v1181_v56 = vpack.i.b16 %v1138_v48, %v1119_v41  ;;  %v1183_v16 = vshrl.u32 %v1138_v48, 16 }
 0x1ca   : > { %v3574_v57 = vsel %vm773_vm7, 0, %v1120_v50  ;;  %v1139_v61 = vrot.slane %v1138_v48, 4  ;;  %v878_v63 = vrot.slane %v877_v52, 4  ;;  %v890_v17 = vperm.slane %v886_v49, %v3421_v25 }
 0x1cb   : > { %v1193_v0 = vpack.i.b16 %v1176_v55, %v1157_v22  ;;  %v1184_v2 = vpack.i.b16 %v1183_v16, %v1182_v53  ;;  %v1194_v7 = vshrl.u32 %v1157_v22, 16  ;;  %v1195_v10 = vshrl.u32 %v1176_v55, 16 }
 0x1cc   : > { %v1140_v13 = vsel %vm773_vm7, 0, %v1139_v61  ;;  %v1158_v20 = vrot.slane %v1157_v22, 4  ;;  %v1177_v21 = vrot.slane %v1176_v55, 4  ;;  %v1448_v26 = vunpack.c.l.b16 %v1181_v56 }
 0x1cd   : > { %v1449_v5 = vunpack.c.l.b16 %v1193_v0  ;;  %v1188_v6 = vshrl.u32 %v3574_v57, 16  ;;  %v1189_v27 = vshrl.u32 %v1140_v13, 16  ;;  %v1196_v28 = vpack.i.b16 %v1195_v10, %v1194_v7 }
 0x1ce   : > { %v1159_v44 = vsel %vm773_vm7, 0, %v1158_v20  ;;  %v1178_v46 = vsel %vm773_vm7, 0, %v1177_v21  ;;  %v879_v29 = vsel %vm773_vm7, %v878_v63, %v871_v51  ;;  %v1475_v32 = vunpack.c.l.b16 %v1184_v2 }
 0x1cf   : > { %v1450_v4 = vpack.c.b16 %v1449_v5, %v1448_v26  ;;  %v1190_v30 = vpack.i.b16 %v1189_v27, %v1188_v6  ;;  %v1200_v23 = vshrl.u32 %v1159_v44, 16  ;;  %v1201_v24 = vshrl.u32 %v1178_v46, 16 }
 0x1d0   : > { %v1476_v8 = vunpack.c.l.b16 %v1196_v28  ;;  %v896_v34 = vperm.slane %v892_v9, %v3421_v25  ;;  %v3592_v38 = vperm.slane %v879_v29, %v3426_v45  ;;  %v911_v31 = vsel %vm773_vm7, %v910_v60, %v3533_v62 }
 0x1d1   : > { %v1456_v35 = vsel %vm1451_vm8, %v1450_v4, 0  ;;  %v1202_v37 = vpack.i.b16 %v1201_v24, %v1200_v23  ;;  %v909_v14 = vperm.slane %v3522_v54, %v3421_v25  ;;  %v915_v42 = vperm.slane %v911_v31, %v3421_v25 }
 0x1d2   : > { %1465 = vmatpush.bf16.xpose.msra.mxu3 %v1456_v35  ;;  %v1477_v39 = vpack.c.b16 %v1476_v8, %v1475_v32  ;;  %v897_v41 = vrot.slane %v896_v34, 4  ;;  %v1527_v47 = vunpack.c.l.b16 %v1190_v30  ;;  %v924_v51 = vsel %vm773_vm7, %v3511_v12, %v3509_v40 }
 0x1d3   : > { %v1528_v48 = vunpack.c.l.b16 %v1202_v37  ;;  %v930_v43 = vsel %vm773_vm7, %v929_v18, %v3545_v11  ;;  %v916_v52 = vrot.slane %v915_v42, 4  ;;  %v1199_v53 = vpack.i.b16 %v1178_v46, %v1159_v44 }
 0x1d4   : > { %v1482_v60 = vsel %vm1451_vm8, %v1477_v39, 0  ;;  %v898_v62 = vsel %vm773_vm7, %v897_v41, %v890_v17  ;;  %v934_v54 = vperm.slane %v930_v43, %v3421_v25  ;;  %v928_v40 = vperm.slane %v924_v51, %v3421_v25 }
 0x1d5   : > { %v1529_v33 = vpack.c.b16 %v1528_v48, %v1527_v47  ;;  %v902_v36 = vperm.slane %v898_v62, %v3426_v45  ;;  %v917_v50 = vsel %vm773_vm7, %v916_v52, %v909_v14  ;;  %v884_v58 = vrot.slane %v3592_v38, 4 }
 0x1d6   : > { %v935_v12 = vrot.slane %v934_v54, 4  ;;  %v921_v11 = vperm.slane %v917_v50, %v3426_v45  ;;  %v1187_v22 = vpack.i.b16 %v1140_v13, %v3574_v57  ;;  %v1502_v63 = vunpack.c.l.b16 %v1199_v53 }
 0x1d7   : > { %v1534_v18 = vsel %vm1451_vm8, %v1529_v33, 0  ;;  %v945_v56 = vpack.i.b16 %v902_v36, %v3592_v38  ;;  %v903_v16 = vrot.slane %v902_v36, 4  ;;  %v885_v49 = vsel %vm773_vm7, 0, %v884_v58 }
 0x1d8   : > { %1543 = vmatpush.bf16.xpose.msrb.mxu0 %v1534_v18  ;;  %v936_v55 = vsel %vm773_vm7, %v935_v12, %v928_v40  ;;  %v922_v0 = vrot.slane %v921_v11, 4  ;;  %v1501_v9 = vunpack.c.l.b16 %v1187_v22  ;;  %v952_v57 = vshrl.u32 %v885_v49, 16 }
 0x1d9   : > { %v940_v61 = vperm.slane %v936_v55, %v3426_v45  ;;  %v904_v2 = vsel %vm773_vm7, 0, %v903_v16  ;;  %v1445_v21 = vunpack.c.l.b16 %v945_v56  ;;  %v947_v8 = vshrl.u32 %v902_v36, 16 }
 0x1da   : > { %1491 = vmatpush.bf16.xpose.msrb.mxu3 %v1482_v60  ;;  %v923_v10 = vsel %vm773_vm7, 0, %v922_v0  ;;  %v953_v13 = vshrl.u32 %v904_v2, 16  ;;  %v1503_v5 = vpack.c.b16 %v1502_v63, %v1501_v9  ;;  %v958_v17 = vshrl.u32 %v921_v11, 16  ;;  %v1210_v9 = vpop.permute.xlu0 %1209 }
 0x1db   : > { %v957_v7 = vpack.i.b16 %v940_v61, %v921_v11  ;;  %v941_v20 = vrot.slane %v940_v61, 4  ;;  %v964_v28 = vshrl.u32 %v923_v10, 16  ;;  %v959_v24 = vshrl.u32 %v940_v61, 16 }
 0x1dc   : > { %v954_v27 = vpack.i.b16 %v953_v13, %v952_v57  ;;  %v1508_v4 = vsel %vm1451_vm8, %v1503_v5, 0  ;;  %v946_v34 = vshrl.u32 %v3592_v38, 16  ;;  %v951_v42 = vpack.i.b16 %v904_v2, %v885_v49 }
 0x1dd   : > { %v1446_v26 = vunpack.c.l.b16 %v957_v7  ;;  %v942_v6 = vsel %vm773_vm7, 0, %v941_v20  ;;  %v960_v35 = vpack.i.b16 %v959_v24, %v958_v17  ;;  %v1206_v7 = vpop.permute.xlu2 %1205 }
 0x1de   : > { %v965_v44 = vshrl.u32 %v942_v6, 16  ;;  %v1524_v30 = vunpack.c.l.b16 %v954_v27  ;;  %v948_v37 = vpack.i.b16 %v947_v8, %v946_v34  ;;  %v963_v14 = vpack.i.b16 %v942_v6, %v923_v10  ;;  %v3652_v6 = vpop.permute.xlu1 %1207 }
 0x1df   : > { %v1447_v46 = vpack.c.b16 %v1446_v26, %v1445_v21  ;;  %v1473_v31 = vunpack.c.l.b16 %v960_v35  ;;  %v1498_v48 = vunpack.c.l.b16 %v951_v42  ;;  %v1219_v42 = vpack.i.b16 %v1206_v7, %v3402_v15 }
 0x1e0   : > { %v966_v29 = vpack.i.b16 %v965_v44, %v964_v28  ;;  %v1472_v39 = vunpack.c.l.b16 %v948_v37  ;;  %v1499_v47 = vunpack.c.l.b16 %v963_v14  ;;  %v1221_v37 = vshrl.u32 %v1206_v7, 16 }
 0x1e1   : > { %2788 = vmatmul.msk.bf16.vlgmr.msra.gmra.mxu3 %vm1451_vm8, %v1447_v46  ;;  %v1220_v14 = vshrl.u32 %v3402_v15, 16 }
 0x1e2   : > { %1517 = vmatpush.bf16.xpose.msra.mxu3 %v1508_v4  ;;  %v1525_v23 = vunpack.c.l.b16 %v966_v29  ;;  %v1474_v41 = vpack.c.b16 %v1473_v31, %v1472_v39  ;;  %v1500_v51 = vpack.c.b16 %v1499_v47, %v1498_v48 }
 0x1e3   : > { %v1222_v47 = vpack.i.b16 %v1221_v37, %v1220_v14 }
 0x1e4   : > { %v1526_v32 = vpack.c.b16 %v1525_v23, %v1524_v30 }
 0x1e6   : > { %2791 = vmatmul.msk.bf16.vlgmr.msrb.gmra.mxu0 %vm1451_vm8, %v1526_v32 }
 0x1f1   : > { %2789 = vmatmul.msk.bf16.vlgmr.msrb.gmra.mxu3 %vm1451_vm8, %v1474_v41 }
 0x201   : > { %2790 = vmatmul.msk.bf16.vlgmr.msra.gmra.mxu3 %vm1451_vm8, %v1500_v51 }
 0x263   : > { %v1545_v43 = vpop.f32.mrf.mxu0 }
 0x264   : > { %v3631_v60 = vmul.f32 0.17677669, %v1545_v43  ;;  %v1467_v62 = vpop.f32.mrf.mxu3 }
 0x265   : > { %v1550_v38 = vmul.f32 0.17677669, %v1467_v62  ;;  %v1245_v62 = vperm.slane %v1219_v42, %v3421_v25 }
 0x266   : > { %v1577_v52 = vsel %vm1558_vm9, %v3631_v60, -inf }
 0x267   : > { %1578 = vmax.xlane.f32.xlu1 %v1577_v52  ;;  %v1559_v54 = vsel %vm1558_vm9, %v1550_v38, -inf  ;;  %v1226_v52 = vshrl.u32 %v1210_v9, 16 }
 0x268   : > { %1560 = vmax.xlane.f32.xlu2 %v1559_v54  ;;  %v1271_v54 = vperm.slane %v1222_v47, %v3421_v25 }
 0x26b   : > { %v1547_v33 = vpop.f32.mrf.mxu0 }
 0x26c   : > { %v1557_v36 = vmul.f32 0.17677669, %v1547_v33  ;;  %v1469_v53 = vpop.f32.mrf.mxu3 }
 0x26d   : > { %v1551_v40 = vmul.f32 0.17677669, %v1469_v53 }
 0x26e   : > { %v1580_v50 = vsel %vm1558_vm9, %v1557_v36, -inf }
 0x26f   : > { %1581 = vmax.xlane.f32.xlu0 %v1580_v50  ;;  %v1562_v58 = vsel %vm1558_vm9, %v1551_v40, -inf }
 0x274   : > { %v1493_v12 = vpop.f32.mrf.mxu3 }
 0x275   : > { %v1552_v18 = vmul.f32 0.17677669, %v1493_v12 }
 0x277   : > { %1563 = vmax.xlane.f32.xlu0 %v1562_v58  ;;  %v1565_v55 = vsel %vm1558_vm9, %v1552_v18, -inf }
 0x27c   : > { %v1495_v11 = vpop.f32.mrf.mxu3 }
 0x27d   : > { %v1553_v22 = vmul.f32 0.17677669, %v1495_v11 }
 0x27f   : > { %1566 = vmax.xlane.f32.xlu0 %v1565_v55  ;;  %v1568_v56 = vsel %vm1558_vm9, %v1553_v22, -inf  ;;  %v1233_v55 = vshrl.u32 %v3652_v6, 16 }
 0x280   : > { %1569 = vmax.xlane.f32.xlu2 %v1568_v56 }
 0x284   : > { %v1519_v16 = vpop.f32.mrf.mxu3 }
 0x285   : > { %v1554_v61 = vmul.f32 0.17677669, %v1519_v16 }
 0x287   : > { %v1571_v63 = vsel %vm1558_vm9, %v1554_v61, -inf }
 0x288   : > { %1572 = vmax.xlane.f32.xlu1 %v1571_v63 }
 0x28c   : > { %v1521_v49 = vpop.f32.mrf.mxu3 }
 0x28d   : > { %v1555_v0 = vmul.f32 0.17677669, %v1521_v49 }
 0x28f   : > { %v1574_v2 = vsel %vm1558_vm9, %v1555_v0, -inf }
 0x290   : > { %1575 = vmax.xlane.f32.xlu2 %v1574_v2  ;;  %v1232_v2 = vshrl.u32 %v3412_v19, 16 }
 0x293   : > { %1213 = vrot.lane.b32.xlu0 %v3402_v15, %s3133_s20 }
 0x2a1   : > { %1215 = vrot.lane.b32.xlu1 %v3412_v19, %s3133_s20 }
 0x2a8   : > { %1211 = vrot.lane.b32.xlu2 %v3412_v19, %s3131_s18 }
 0x2da   : > { %v1579_v46 = vpop.xlane.xlu1 %1578 }
 0x2db   : > { %v1561_v10 = vpop.xlane.xlu2 %1560  ;;  %v1589_v33 = vsub.f32 %v3631_v60, %v1579_v46  ;;  %v1279_v60 = vrot.slane %v1271_v54, 4 }
 0x2dc   : > { %v1583_v20 = vsub.f32 %v1550_v38, %v1561_v10 }
 0x2dd   : > { %v1603_v56 = vmul.f32 1.442695, %v1589_v33 }
 0x2de   : > { %v1591_v57 = vmul.f32 1.442695, %v1583_v20  ;;  %v1231_v20 = vpack.i.b16 %v3652_v6, %v3412_v19 }
 0x2e0   : > { %3078 = vpow2.f32 %v1591_v57 }
 0x2e2   : > { %v1582_v13 = vpop.xlane.xlu0 %1581 }
 0x2e3   : > { %v1590_v30 = vsub.f32 %v1557_v36, %v1582_v13 }
 0x2e5   : > { %v1605_v32 = vmul.f32 1.442695, %v1590_v30 }
 0x2e6   : > { %v3648_v21 = vpop.eup %3078 }
 0x2e7   : > { %v1607_v26 = vsel %vm1558_vm9, %v3648_v21, 0.0 }
 0x2e8   : > { %1608 = vadd.xlane.f32.xlu2 %v1607_v26 }
 0x2ea   : > { %v1564_v5 = vpop.xlane.xlu0 %1563 }
 0x2eb   : > { %v1584_v27 = vsub.f32 %v1551_v40, %v1564_v5 }
 0x2ed   : > { %v1593_v28 = vmul.f32 1.442695, %v1584_v27  ;;  %v1234_v27 = vpack.i.b16 %v1233_v55, %v1232_v2 }
 0x2ef   : > { %3080 = vpow2.f32 %v1593_v28 }
 0x2f2   : > { %v1567_v44 = vpop.xlane.xlu0 %1566 }
 0x2f3   : > { %v1585_v29 = vsub.f32 %v1552_v18, %v1567_v44  ;;  %v1570_v8 = vpop.xlane.xlu2 %1569  ;;  %v1253_v18 = vrot.slane %v1245_v62, 4 }
 0x2f4   : > { %v1586_v31 = vsub.f32 %v1553_v22, %v1570_v8 }
 0x2f5   : > { %v3654_v4 = vpop.eup %3080  ;;  %v1595_v23 = vmul.f32 1.442695, %v1585_v29 }
 0x2f6   : > { %v1610_v24 = vsel %vm1558_vm9, %v3654_v4, 0.0  ;;  %v1597_v48 = vmul.f32 1.442695, %v1586_v31 }
 0x2f7   : > { %3082 = vpow2.f32 %v1595_v23  ;;  %1611 = vadd.xlane.f32.xlu0 %v1610_v24 }
 0x2f8   : > { %3084 = vpow2.f32 %v1605_v32 }
 0x2fb   : > { %v1573_v17 = vpop.xlane.xlu1 %1572 }
 0x2fc   : > { %v1587_v34 = vsub.f32 %v1554_v61, %v1573_v17 }
 0x2fd   : > { %v3658_v35 = vpop.eup %3082 }
 0x2fe   : > { %v1599_v39 = vmul.f32 1.442695, %v1587_v34  ;;  %v1613_v41 = vsel %vm1558_vm9, %v3658_v35, 0.0  ;;  %v3664_v51 = vpop.eup %3084  ;;  %v1297_v34 = vperm.slane %v1231_v20, %v3421_v25 }
 0x2ff   : > { %1614 = vadd.xlane.f32.xlu0 %v1613_v41  ;;  %v1628_v12 = vsel %vm1558_vm9, %v3664_v51, 0.0 }
 0x300   : > { %3086 = vpow2.f32 %v1599_v39  ;;  %v1323_v39 = vperm.slane %v1234_v27, %v3421_v25 }
 0x301   : > { %3088 = vpow2.f32 %v1597_v48 }
 0x303   : > { %v1576_v43 = vpop.xlane.xlu2 %1575 }
 0x304   : > { %v1588_v38 = vsub.f32 %v1555_v0, %v1576_v43 }
 0x305   : > { %v1214_v36 = vpop.permute.xlu0 %1213 }
 0x306   : > { %v3669_v53 = vpop.eup %3086  ;;  %v1601_v50 = vmul.f32 1.442695, %v1588_v38  ;;  %v1225_v15 = vpack.i.b16 %v1214_v36, %v1210_v9  ;;  %v1227_v40 = vshrl.u32 %v1214_v36, 16 }
 0x307   : > { %1629 = vadd.xlane.f32.xlu0 %v1628_v12  ;;  %v1619_v58 = vsel %vm1558_vm9, %v3669_v53, 0.0  ;;  %v3679_v49 = vpop.eup %3088 }
 0x308   : > { %3090 = vpow2.f32 %v1601_v50  ;;  %v1228_v11 = vpack.i.b16 %v1227_v40, %v1226_v52  ;;  %v1250_v22 = vperm.slane %v1225_v15, %v3421_v25  ;;  %1620 = vadd.xlane.f32.xlu1 %v1619_v58  ;;  %v1616_v44 = vsel %vm1558_vm9, %v3679_v49, 0.0 }
 0x309   : > { %3092 = vpow2.f32 %v1603_v56  ;;  %v1331_v15 = vrot.slane %v1323_v39, 4 }
 0x30a   : > { %v1251_v16 = vrot.slane %v1250_v22, 4  ;;  %v1254_v61 = vsel %vm773_vm7, %v1250_v22, %v1253_v18  ;;  %v1276_v63 = vperm.slane %v1228_v11, %v3421_v25 }
 0x30b   : > { %v1262_v0 = vperm.slane %v1254_v61, %v3426_v45  ;;  %v1212_v23 = vpop.permute.xlu2 %1211 }
 0x30c   : > { %v1252_v7 = vsel %vm773_vm7, %v1251_v16, %v1245_v62  ;;  %v1277_v9 = vrot.slane %v1276_v63, 4  ;;  %v1280_v10 = vsel %vm773_vm7, %v1276_v63, %v1279_v60  ;;  %v1238_v14 = vshrl.u32 %v1212_v23, 16 }
 0x30d   : > { %v1258_v57 = vperm.slane %v1252_v7, %v3426_v45  ;;  %v1265_v13 = vrot.slane %v1262_v0, 4  ;;  %v1288_v26 = vperm.slane %v1280_v10, %v3426_v45 }
 0x30e   : > { %v3689_v5 = vpop.eup %3090  ;;  %v1278_v28 = vsel %vm773_vm7, %v1277_v9, %v1271_v54  ;;  %v1305_v54 = vrot.slane %v1297_v34, 4 }
 0x30f   : > { %v1263_v46 = vrot.slane %v1258_v57, 4  ;;  %v1266_v29 = vsel %vm773_vm7, 0, %v1265_v13  ;;  %v1284_v30 = vperm.slane %v1278_v28, %v3426_v45  ;;  %v1291_v19 = vrot.slane %v1288_v26, 4  ;;  %v3704_v47 = vpop.eup %3092 }
 0x310   : > { %v1350_v6 = vrot.slane %v1266_v29, 4  ;;  %1617 = vadd.xlane.f32.xlu1 %v1616_v44  ;;  %v1622_v24 = vsel %vm1558_vm9, %v3689_v5, 0.0  ;;  %v1345_v40 = vsel %vm773_vm7, %v1265_v13, %v1258_v57  ;;  %v1625_v12 = vsel %vm1558_vm9, %v3704_v47, 0.0 }
 0x311   : > { %v1264_v32 = vsel %vm773_vm7, 0, %v1263_v46  ;;  %v1289_v8 = vrot.slane %v1284_v30, 4  ;;  %v1292_v17 = vsel %vm773_vm7, 0, %v1291_v19  ;;  %1623 = vadd.xlane.f32.xlu2 %v1622_v24  ;;  %v1364_v50 = vsel %vm773_vm7, %v1291_v19, %v1284_v30 }
 0x312   : > { %v1369_v37 = vrot.slane %v1292_v17, 4  ;;  %v1351_v31 = vsel %vm773_vm7, %v1350_v6, %v1264_v32  ;;  %v1368_v56 = vperm.slane %v1364_v50, %v3421_v25  ;;  %v1349_v0 = vperm.slane %v1345_v40, %v3421_v25 }
 0x313   : > { %v1290_v41 = vsel %vm773_vm7, 0, %v1289_v8  ;;  %v1216_v42 = vpop.permute.xlu1 %1215  ;;  %v1355_v62 = vperm.slane %v1351_v31, %v3421_v25 }
 0x314   : > { %v1237_v48 = vpack.i.b16 %v1216_v42, %v1212_v23  ;;  %v1239_v43 = vshrl.u32 %v1216_v42, 16  ;;  %v1370_v38 = vsel %vm773_vm7, %v1369_v37, %v1290_v41 }
 0x315   : > { %v1374_v52 = vperm.slane %v1370_v38, %v3421_v25  ;;  %v1356_v60 = vrot.slane %v1355_v62, 4 }
 0x316   : > { %v1240_v33 = vpack.i.b16 %v1239_v43, %v1238_v14  ;;  %v1302_v36 = vperm.slane %v1237_v48, %v3421_v25 }
 0x317   : > { %v1375_v58 = vrot.slane %v1374_v52, 4  ;;  %v1357_v57 = vsel %vm773_vm7, %v1356_v60, %v1349_v0 }
 0x318   : > { %v1303_v18 = vrot.slane %v1302_v36, 4  ;;  %v1306_v11 = vsel %vm773_vm7, %v1302_v36, %v1305_v54  ;;  %v1328_v22 = vperm.slane %v1240_v33, %v3421_v25  ;;  %v1361_v24 = vperm.slane %v1357_v57, %v3426_v45 }
 0x319   : > { %v1314_v55 = vperm.slane %v1306_v11, %v3426_v45  ;;  %1626 = vadd.xlane.f32.xlu2 %v1625_v12  ;;  %v1376_v10 = vsel %vm773_vm7, %v1375_v58, %v1368_v56 }
 0x31a   : > { %v1304_v16 = vsel %vm773_vm7, %v1303_v18, %v1297_v34  ;;  %v1329_v61 = vrot.slane %v1328_v22, 4  ;;  %v1332_v63 = vsel %vm773_vm7, %v1328_v22, %v1331_v15  ;;  %v1380_v46 = vperm.slane %v1376_v10, %v3426_v45 }
 0x31b   : > { %v1310_v2 = vperm.slane %v1304_v16, %v3426_v45  ;;  %v1317_v7 = vrot.slane %v1314_v55, 4  ;;  %v1340_v9 = vperm.slane %v1332_v63, %v3426_v45  ;;  %v1362_v42 = vrot.slane %v1361_v24, 4 }
 0x31c   : > { %v1330_v20 = vsel %vm773_vm7, %v1329_v61, %v1323_v39  ;;  %v1381_v31 = vrot.slane %v1380_v46, 4  ;;  %v1425_v38 = vshrl.u32 %v1380_v46, 16  ;;  %v1424_v36 = vshrl.u32 %v1361_v24, 16 }
 0x31d   : > { %v1315_v13 = vrot.slane %v1310_v2, 4  ;;  %v1318_v26 = vsel %vm773_vm7, 0, %v1317_v7  ;;  %v1336_v27 = vperm.slane %v1330_v20, %v3426_v45  ;;  %v1343_v28 = vrot.slane %v1340_v9, 4 }
 0x31e   : > { %v1388_v44 = vrot.slane %v1318_v26, 4  ;;  %v1383_v6 = vsel %vm773_vm7, %v1317_v7, %v1310_v2  ;;  %v1382_v54 = vsel %vm773_vm7, 0, %v1381_v31  ;;  %v1423_v15 = vpack.i.b16 %v1380_v46, %v1361_v24 }
 0x31f   : > { %v1316_v29 = vsel %vm773_vm7, 0, %v1315_v13  ;;  %v1341_v30 = vrot.slane %v1336_v27, 4  ;;  %v1344_v19 = vsel %vm773_vm7, 0, %v1343_v28  ;;  %v1402_v34 = vsel %vm773_vm7, %v1343_v28, %v1336_v27 }
 0x320   : > { %v1407_v23 = vrot.slane %v1344_v19, 4  ;;  %v1389_v32 = vsel %vm773_vm7, %v1388_v44, %v1316_v29  ;;  %v1387_v39 = vperm.slane %v1383_v6, %v3421_v25  ;;  %v1406_v43 = vperm.slane %v1402_v34, %v3421_v25 }
 0x321   : > { %v1342_v8 = vsel %vm773_vm7, 0, %v1341_v30  ;;  %v1393_v17 = vperm.slane %v1389_v32, %v3421_v25  ;;  %v1363_v40 = vsel %vm773_vm7, 0, %v1362_v42  ;;  %v1426_v58 = vpack.i.b16 %v1425_v38, %v1424_v36 }
 0x322   : > { %v1408_v37 = vsel %vm773_vm7, %v1407_v23, %v1342_v8  ;;  %v1431_v11 = vshrl.u32 %v1382_v54, 16  ;;  %v1429_v16 = vpack.i.b16 %v1382_v54, %v1363_v40  ;;  %v1430_v61 = vshrl.u32 %v1363_v40, 16 }
 0x323   : > { %v1394_v41 = vrot.slane %v1393_v17, 4  ;;  %v1412_v14 = vperm.slane %v1408_v37, %v3421_v25  ;;  %v1660_v63 = vunpack.c.l.b16 %v1423_v15  ;;  %v1686_v26 = vunpack.c.l.b16 %v1426_v58 }
 0x324   : > { %v1432_v10 = vpack.i.b16 %v1431_v11, %v1430_v61  ;;  %v1712_v28 = vunpack.c.l.b16 %v1429_v16 }
 0x325   : > { %v1395_v48 = vsel %vm773_vm7, %v1394_v41, %v1387_v39  ;;  %v1413_v62 = vrot.slane %v1412_v14, 4 }
 0x326   : > { %v1399_v52 = vperm.slane %v1395_v48, %v3426_v45  ;;  %v1738_v19 = vunpack.c.l.b16 %v1432_v10 }
 0x327   : > { %v1414_v33 = vsel %vm773_vm7, %v1413_v62, %v1406_v43 }
 0x328   : > { %v1418_v50 = vperm.slane %v1414_v33, %v3426_v45  ;;  %v1400_v12 = vrot.slane %v1399_v52, 4  ;;  %v1436_v18 = vshrl.u32 %v1399_v52, 16 }
 0x32a   : > { %v1435_v22 = vpack.i.b16 %v1418_v50, %v1399_v52  ;;  %v1437_v60 = vshrl.u32 %v1418_v50, 16  ;;  %v1401_v55 = vsel %vm773_vm7, 0, %v1400_v12  ;;  %v1419_v56 = vrot.slane %v1418_v50, 4 }
 0x32b   : > { %v1442_v20 = vshrl.u32 %v1401_v55, 16 }
 0x32c   : > { %v1661_v0 = vunpack.c.l.b16 %v1435_v22  ;;  %v1438_v2 = vpack.i.b16 %v1437_v60, %v1436_v18  ;;  %v1420_v7 = vsel %vm773_vm7, 0, %v1419_v56 }
 0x32d   : > { %v1441_v9 = vpack.i.b16 %v1420_v7, %v1401_v55  ;;  %v1443_v57 = vshrl.u32 %v1420_v7, 16 }
 0x32e   : > { %v1662_v13 = vpack.c.b16 %v1661_v0, %v1660_v63  ;;  %v1687_v27 = vunpack.c.l.b16 %v1438_v2 }
 0x32f   : > { %v1713_v44 = vunpack.c.l.b16 %v1441_v9  ;;  %v1444_v46 = vpack.i.b16 %v1443_v57, %v1442_v20 }
 0x330   : > { %1674 = vmatpush.bf16.msrb.mxu2 %v1662_v13  ;;  %v1688_v29 = vpack.c.b16 %v1687_v27, %v1686_v26 }
 0x331   : > { %v1714_v30 = vpack.c.b16 %v1713_v44, %v1712_v28  ;;  %v1739_v6 = vunpack.c.l.b16 %v1444_v46 }
 0x333   : > { %1726 = vmatpush.bf16.msrb.mxu3 %v1714_v30  ;;  %v1740_v23 = vpack.c.b16 %v1739_v6, %v1738_v19 }
 0x334   : > { %1700 = vmatpush.bf16.msra.mxu2 %v1688_v29 }
 0x335   : > { %1752 = vmatpush.bf16.msra.mxu0 %v1740_v23 }
 0x35b   : > { %v1609_v24 = vpop.xlane.xlu2 %1608 }
 0x35c   : > { %3094 = vrcp.f32 %v1609_v24 }
 0x362   : > { %v3095_v8 = vpop.eup %3094 }
 0x363   : > { %v1639_v17 = vmul.f32 %v3095_v8, %v3648_v21 }
 0x365   : > { %v1647_v37 = vpack.c.bf16 %v1639_v17, %v1639_v17 }
 0x367   : > { %v1657_v41 = vunpack.c.l.b16 %v1647_v37 }
 0x36a   : > { %v1612_v32 = vpop.xlane.xlu0 %1611 }
 0x36b   : > { %3096 = vrcp.f32 %v1612_v32 }
 0x371   : > { %v3097_v34 = vpop.eup %3096 }
 0x372   : > { %v1640_v31 = vmul.f32 %v3097_v34, %v3654_v4  ;;  %v1615_v48 = vpop.xlane.xlu0 %1614 }
 0x373   : > { %3098 = vrcp.f32 %v1615_v48 }
 0x374   : > { %v1648_v39 = vpack.c.bf16 %v1640_v31, %v1640_v31 }
 0x376   : > { %v1658_v14 = vunpack.c.l.b16 %v1648_v39 }
 0x378   : > { %v1659_v42 = vpack.c.b16 %v1658_v14, %v1657_v41 }
 0x379   : > { %v3099_v38 = vpop.eup %3098 }
 0x37a   : > { %2792 = vmatmul.msk.bf16.vlgmr.msrb.gmra.mxu2 %vm1558_vm9, %v1659_v42  ;;  %v1630_v52 = vpop.xlane.xlu0 %1629  ;;  %v1641_v33 = vmul.f32 %v3099_v38, %v3658_v35 }
 0x37b   : > { %v1621_v43 = vpop.xlane.xlu1 %1620 }
 0x37c   : > { %3100 = vrcp.f32 %v1621_v43  ;;  %v1649_v15 = vpack.c.bf16 %v1641_v33, %v1641_v33 }
 0x37e   : > { %v1683_v55 = vunpack.c.l.b16 %v1649_v15 }
 0x382   : > { %v3101_v21 = vpop.eup %3100 }
 0x383   : > { %v1618_v62 = vpop.xlane.xlu1 %1617  ;;  %v1643_v4 = vmul.f32 %v3101_v21, %v3669_v53 }
 0x384   : > { %3102 = vrcp.f32 %v1618_v62  ;;  %v1624_v54 = vpop.xlane.xlu2 %1623 }
 0x385   : > { %3104 = vrcp.f32 %v1624_v54  ;;  %v1651_v12 = vpack.c.bf16 %v1643_v4, %v1643_v4 }
 0x386   : > { %3106 = vrcp.f32 %v1630_v52 }
 0x387   : > { %v1709_v16 = vunpack.c.l.b16 %v1651_v12 }
 0x38a   : > { %v3103_v36 = vpop.eup %3102 }
 0x38b   : > { %v3105_v50 = vpop.eup %3104  ;;  %v1642_v40 = vmul.f32 %v3103_v36, %v3679_v49 }
 0x38c   : > { %v1644_v58 = vmul.f32 %v3105_v50, %v3689_v5  ;;  %v1627_v18 = vpop.xlane.xlu2 %1626  ;;  %v3107_v11 = vpop.eup %3106 }
 0x38d   : > { %v1650_v22 = vpack.c.bf16 %v1642_v40, %v1642_v40  ;;  %3108 = vrcp.f32 %v1627_v18  ;;  %v1646_v35 = vmul.f32 %v3107_v11, %v3664_v51 }
 0x38e   : > { %v1652_v60 = vpack.c.bf16 %v1644_v58, %v1644_v58 }
 0x38f   : > { %v1684_v56 = vunpack.c.l.b16 %v1650_v22  ;;  %v1654_v49 = vpack.c.bf16 %v1646_v35, %v1646_v35 }
 0x390   : > { %v1710_v61 = vunpack.c.l.b16 %v1652_v60 }
 0x391   : > { %v1685_v53 = vpack.c.b16 %v1684_v56, %v1683_v55  ;;  %v1736_v7 = vunpack.c.l.b16 %v1654_v49 }
 0x392   : > { %v1711_v63 = vpack.c.b16 %v1710_v61, %v1709_v16 }
 0x393   : > { %v3109_v0 = vpop.eup %3108  ;;  %2793 = vmatmul.msk.bf16.vlgmr.msra.gmra.mxu2 %vm1558_vm9, %v1685_v53 }
 0x394   : > { %v1645_v2 = vmul.f32 %v3109_v0, %v3704_v47  ;;  %2794 = vmatmul.msk.bf16.vlgmr.msrb.gmra.mxu3 %vm1558_vm9, %v1711_v63 }
 0x396   : > { %v1653_v5 = vpack.c.bf16 %v1645_v2, %v1645_v2 }
 0x398   : > { %v1735_v9 = vunpack.c.l.b16 %v1653_v5 }
 0x39a   : > { %v1737_v10 = vpack.c.b16 %v1736_v7, %v1735_v9 }
 0x39c   : > { %2795 = vmatmul.msk.bf16.vlgmr.msra.gmra.mxu0 %vm1558_vm9, %v1737_v10 }
 0x3fd   : > { %v1676_v20 = vpop.f32.mrf.mxu2 }
 0x3fe   : > { %v1762_v57 = vrot.slane %v1676_v20, 4 }
 0x405   : > { %v1678_v51 = vpop.f32.mrf.mxu2 }
 0x406   : > { %v1818_v41 = vrot.slane %v1678_v51, 4 }
 0x416   : > { %v1702_v13 = vpop.f32.mrf.mxu2 }
 0x417   : > { %v1774_v26 = vrot.slane %v1702_v13, 4  ;;  %v1728_v27 = vpop.f32.mrf.mxu3 }
 0x418   : > { %v1759_v28 = vrot.slane %v1728_v27, 4  ;;  %v1763_v44 = vsel %vm773_vm7, %v1728_v27, %v1762_v57 }
 0x419   : > { %v1771_v46 = vperm.slane %v1763_v44, %v3421_v25  ;;  %v1754_v47 = vpop.f32.mrf.mxu0 }
 0x41a   : > { %v1761_v29 = vsel %vm773_vm7, %v1759_v28, %v1676_v20  ;;  %v1772_v30 = vrot.slane %v1754_v47, 4  ;;  %v1775_v19 = vsel %vm773_vm7, %v1754_v47, %v1774_v26 }
 0x41b   : > { %v1767_v6 = vperm.slane %v1761_v29, %v3421_v25  ;;  %v1798_v23 = vrot.slane %v1771_v46, 4  ;;  %v1783_v24 = vperm.slane %v1775_v19, %v3421_v25 }
 0x41c   : > { %v1773_v32 = vsel %vm773_vm7, %v1772_v30, %v1702_v13 }
 0x41d   : > { %v1786_v8 = vrot.slane %v1767_v6, 4  ;;  %v1779_v17 = vperm.slane %v1773_v32, %v3421_v25  ;;  %v1796_v34 = vrot.slane %v1783_v24, 4  ;;  %v1799_v37 = vsel %vm773_vm7, %v1783_v24, %v1798_v23 }
 0x41e   : > { %v1807_v31 = vperm.slane %v1799_v37, %v3426_v45  ;;  %v1704_v39 = vpop.f32.mrf.mxu2 }
 0x41f   : > { %v1784_v14 = vrot.slane %v1779_v17, 4  ;;  %v1787_v42 = vsel %vm773_vm7, %v1779_v17, %v1786_v8  ;;  %v1797_v48 = vsel %vm773_vm7, %v1796_v34, %v1771_v46  ;;  %v1730_v43 = vpop.f32.mrf.mxu3  ;;  %v1830_v33 = vrot.slane %v1704_v39, 4 }
 0x420   : > { %v1795_v62 = vperm.slane %v1787_v42, %v3426_v45  ;;  %v1803_v38 = vperm.slane %v1797_v48, %v3426_v45  ;;  %v1814_v52 = vrot.slane %v1807_v31, 4  ;;  %v1816_v54 = vrot.slane %v1730_v43, 4 }
 0x421   : > { %v1785_v21 = vsel %vm773_vm7, %v1784_v14, %v1767_v6  ;;  %v1819_v4 = vsel %vm773_vm7, %v1730_v43, %v1818_v41  ;;  %v1756_v22 = vpop.f32.mrf.mxu0 }
 0x422   : > { %v1791_v36 = vperm.slane %v1785_v21, %v3426_v45  ;;  %v1810_v50 = vrot.slane %v1795_v62, 4  ;;  %v1812_v15 = vrot.slane %v1803_v38, 4  ;;  %v1815_v40 = vsel %vm773_vm7, 0.0, %v1814_v52 }
 0x423   : > { %v1883_v12 = vsel %vm773_vm7, %v1814_v52, %v1803_v38  ;;  %v1888_v58 = vrot.slane %v1815_v40, 4  ;;  %v1817_v18 = vsel %vm773_vm7, %v1816_v54, %v1678_v51  ;;  %v1827_v11 = vperm.slane %v1819_v4, %v3421_v25 }
 0x424   : > { %v1808_v60 = vrot.slane %v1791_v36, 4  ;;  %v1811_v55 = vsel %vm773_vm7, 0.0, %v1810_v50  ;;  %v1813_v56 = vsel %vm773_vm7, 0.0, %v1812_v15  ;;  %v1872_v35 = vsel %vm773_vm7, %v1810_v50, %v1791_v36 }
 0x425   : > { %v1877_v16 = vrot.slane %v1811_v55, 4  ;;  %v1887_v61 = vperm.slane %v1883_v12, %v3421_v25  ;;  %v1889_v53 = vsel %vm773_vm7, %v1888_v58, %v1813_v56  ;;  %v1823_v63 = vperm.slane %v1817_v18, %v3421_v25 }
 0x426   : > { %v1893_v0 = vperm.slane %v1889_v53, %v3421_v25  ;;  %v1854_v49 = vrot.slane %v1827_v11, 4  ;;  %v1828_v2 = vrot.slane %v1756_v22, 4  ;;  %v1831_v5 = vsel %vm773_vm7, %v1756_v22, %v1830_v33 }
 0x427   : > { %v1908_v7 = vrot.slane %v1887_v61, 4  ;;  %v1842_v9 = vrot.slane %v1823_v63, 4  ;;  %v1839_v10 = vperm.slane %v1831_v5, %v3421_v25  ;;  %v1809_v20 = vsel %vm773_vm7, 0.0, %v1808_v60 }
 0x428   : > { %v1829_v51 = vsel %vm773_vm7, %v1828_v2, %v1704_v39  ;;  %v1876_v57 = vperm.slane %v1872_v35, %v3421_v25  ;;  %v1878_v13 = vsel %vm773_vm7, %v1877_v16, %v1809_v20  ;;  %v1906_v26 = vrot.slane %v1893_v0, 4 }
 0x429   : > { %v1835_v27 = vperm.slane %v1829_v51, %v3421_v25  ;;  %v1852_v28 = vrot.slane %v1839_v10, 4  ;;  %v1855_v44 = vsel %vm773_vm7, %v1839_v10, %v1854_v49  ;;  %v1882_v46 = vperm.slane %v1878_v13, %v3421_v25 }
 0x42a   : > { %v1863_v47 = vperm.slane %v1855_v44, %v3426_v45  ;;  %v1896_v6 = vrot.slane %v1876_v57, 4  ;;  %v1909_v8 = vsel %vm773_vm7, %v1893_v0, %v1908_v7  ;;  %v1907_v37 = vsel %vm773_vm7, %v1906_v26, %v1887_v61 }
 0x42b   : > { %v1840_v29 = vrot.slane %v1835_v27, 4  ;;  %v1843_v30 = vsel %vm773_vm7, %v1835_v27, %v1842_v9  ;;  %v1853_v19 = vsel %vm773_vm7, %v1852_v28, %v1827_v11  ;;  %v1894_v34 = vrot.slane %v1882_v46, 4 }
 0x42c   : > { %v1851_v23 = vperm.slane %v1843_v30, %v3426_v45  ;;  %v1859_v24 = vperm.slane %v1853_v19, %v3426_v45  ;;  %v1870_v32 = vrot.slane %v1863_v47, 4  ;;  %v1897_v43 = vsel %vm773_vm7, %v1882_v46, %v1896_v6 }
 0x42d   : > { %v1841_v17 = vsel %vm773_vm7, %v1840_v29, %v1823_v63  ;;  %v1917_v62 = vperm.slane %v1909_v8, %v3426_v45  ;;  %v1895_v12 = vsel %vm773_vm7, %v1894_v34, %v1876_v57  ;;  %v1905_v18 = vperm.slane %v1897_v43, %v3426_v45  ;;  %v2993_v8 = vld [vmem:[%s4185_s5 + $0x28] sm:$0xff]  ;;  %v2991_v34 = vld [vmem:[%s4185_s5 + $0x18] sm:$0xff] }
 0x42e   : > { %v1847_v31 = vperm.slane %v1841_v17, %v3426_v45  ;;  %v1866_v39 = vrot.slane %v1851_v23, 4  ;;  %v1868_v41 = vrot.slane %v1859_v24, 4  ;;  %v1871_v14 = vsel %vm773_vm7, 0.0, %v1870_v32  ;;  %v2992_v17 = vld [vmem:[%s4185_s5 + $0x20] sm:$0xff] }
 0x42f   : > { %v1937_v42 = vsel %vm773_vm7, %v1870_v32, %v1859_v24  ;;  %v1942_v48 = vrot.slane %v1871_v14, 4  ;;  %v1901_v55 = vperm.slane %v1895_v12, %v3426_v45  ;;  %v1913_v56 = vperm.slane %v1907_v37, %v3426_v45  ;;  %v2995_v24 = vld [vmem:[%s4185_s5 + $0x38] sm:$0xff]  ;;  %v2994_v32 = vld [vmem:[%s4185_s5 + $0x30] sm:$0xff]  ;;  %v3068_v12 = vld [vmem:[%s4186_s6] ss:$0 sm:$0xff] }
 0x430   : > { %v1864_v38 = vrot.slane %v1847_v31, 4  ;;  %v1867_v52 = vsel %vm773_vm7, 0.0, %v1866_v39  ;;  %v1869_v54 = vsel %vm773_vm7, 0.0, %v1868_v41  ;;  %v1926_v21 = vsel %vm773_vm7, %v1866_v39, %v1847_v31  ;;  %2081 = vmatpush.bf16.msrb.mxu1 %v2995_v24  ;;  %v2990_v37 = vld [vmem:[%s4185_s5 + $0x10] sm:$0xff]  ;;  %v2989_v31 = vld [vmem:[%s4185_s5 + $0x8] sm:$0xff]  ;;  %v2988_v39 = vld [vmem:[%s4185_s5] sm:$0xff] }
 0x431   : > { %v1931_v33 = vrot.slane %v1867_v52, 4  ;;  %v1941_v4 = vperm.slane %v1937_v42, %v3421_v25  ;;  %v1943_v36 = vsel %vm773_vm7, %v1942_v48, %v1869_v54  ;;  %v1930_v50 = vperm.slane %v1926_v21, %v3421_v25  ;;  %v3003_v24 = vld [vmem:[%s4189_s9 + $0x34] sm:$0xf0] }
 0x432   : > { %v1947_v15 = vperm.slane %v1943_v36, %v3421_v25  ;;  %v1865_v40 = vsel %vm773_vm7, 0.0, %v1864_v38  ;;  %v1922_v16 = vrot.slane %v1917_v62, 4  ;;  %v1918_v0 = vrot.slane %v1913_v56, 4 }
 0x433   : > { %v1962_v58 = vrot.slane %v1941_v4, 4  ;;  %v1932_v11 = vsel %vm773_vm7, %v1931_v33, %v1865_v40  ;;  %v1950_v22 = vrot.slane %v1930_v50, 4  ;;  %v1924_v5 = vrot.slane %v1905_v18, 4 }
 0x434   : > { %v1936_v60 = vperm.slane %v1932_v11, %v3421_v25  ;;  %v1960_v35 = vrot.slane %v1947_v15, 4  ;;  %v1919_v20 = vsel %vm773_vm7, %v1918_v0, %v1901_v55  ;;  %v1920_v57 = vrot.slane %v1901_v55, 4  ;;  %2082 = vmatpush.bf16.msrb.mxu1 %v2994_v32  ;;  %v2878_v0 = vld [vmem:[%s4189_s9 + $0x60] sm:$0xf]  ;;  %v3002_v32 = vld [vmem:[%s4189_s9 + $0x34] sm:$0xf] }
 0x435   : > { %v1963_v61 = vsel %vm773_vm7, %v1947_v15, %v1962_v58  ;;  %v1923_v26 = vsel %vm773_vm7, %v1922_v16, %v1905_v18  ;;  %v1925_v46 = vsel %vm773_vm7, %v1917_v62, %v1924_v5  ;;  %v3011_v16 = vld [vmem:[%s4189_s9 + $0x74] sm:$0xf0] }
 0x436   : > { %v1951_v53 = vsel %vm773_vm7, %v1936_v60, %v1950_v22  ;;  %v1971_v63 = vperm.slane %v1963_v61, %v3426_v45  ;;  %v1948_v49 = vrot.slane %v1936_v60, 4  ;;  %v1961_v7 = vsel %vm773_vm7, %v1960_v35, %v1941_v4  ;;  %v3010_v61 = vld [vmem:[%s4189_s9 + $0x74] sm:$0xf] }
 0x437   : > { %v1959_v2 = vperm.slane %v1951_v53, %v3426_v45  ;;  %v1967_v10 = vperm.slane %v1961_v7, %v3426_v45  ;;  %v1921_v6 = vsel %vm773_vm7, %v1913_v56, %v1920_v57  ;;  %v2888_v53 = vld [vmem:[%s4189_s9 + $0x78] sm:$0xf0]  ;;  %v2880_v7 = vld [vmem:[%s4189_s9 + $0x68] sm:$0xf0] }
 0x438   : > { %v1976_v25 = vrot.slane %v1971_v63, 4  ;;  %v1949_v9 = vsel %vm773_vm7, %v1948_v49, %v1930_v50  ;;  %2083 = vmatpush.bf16.msrb.mxu1 %v2993_v8  ;;  %v3009_v49 = vld [vmem:[%s4189_s9 + $0x64] sm:$0xf0]  ;;  %v2872_v57 = vld [vmem:[%s4189_s9 + $0x58] sm:$0xf0] }
 0x439   : > { %v1978_v51 = vrot.slane %v1959_v2, 4  ;;  %v1955_v13 = vperm.slane %v1949_v9, %v3426_v45  ;;  %v1972_v28 = vrot.slane %v1967_v10, 4  ;;  %v2879_v5 = vor.u32 %v3009_v49, %v2878_v0  ;;  %v2870_v9 = vld [vmem:[%s4189_s9 + $0x50] sm:$0xf] }
 0x43a   : > { %v1977_v27 = vsel %vm773_vm7, %v1976_v25, %v1959_v2  ;;  %v3008_v2 = vld [vmem:[%s4189_s9 + $0x64] sm:$0xf] }
 0x43b   : > { %v3056_v44 = vpack.i.bf16 %v1977_v27, %v1923_v26  ;;  %v1979_v47 = vsel %vm773_vm7, %v1971_v63, %v1978_v51  ;;  %v1974_v29 = vrot.slane %v1955_v13, 4  ;;  %v1973_v19 = vsel %vm773_vm7, %v1972_v28, %v1955_v13  ;;  %v2862_v28 = vld [vmem:[%s4189_s9 + $0x40] sm:$0xf] }
 0x43c   : > { %v3061_v30 = vpack.i.bf16 %v1979_v47, %v1925_v46  ;;  %2084 = vmatpush.bf16.msrb.mxu1 %v2992_v17  ;;  %v2891_v63 = vor.u32 %v3010_v61, %v2888_v53  ;;  %v2883_v25 = vor.u32 %v3008_v2, %v2880_v7  ;;  %v3004_v46 = vld [vmem:[%s4189_s9 + $0x44] sm:$0xf]  ;;  %v2856_v17 = vld [vmem:[%s4189_s9 + $0x38] sm:$0xf0] }
 0x43d   : > { %3057 = vrot.lane.b32.xlu2 %v3056_v44, %s3131_s18  ;;  %v1975_v45 = vsel %vm773_vm7, %v1967_v10, %v1974_v29  ;;  %v3007_v10 = vld [vmem:[%s4189_s9 + $0x54] sm:$0xf0]  ;;  %v3005_v44 = vld [vmem:[%s4189_s9 + $0x44] sm:$0xf0] }
 0x43e   : > { %3062 = vrot.lane.b32.xlu0 %v3061_v30, %s3132_s19  ;;  %v3051_v23 = vpack.i.bf16 %v1975_v45, %v1921_v6  ;;  %2270 = vmatpush.bf16.msra.mxu3 %v2891_v63  ;;  %v2871_v51 = vor.u32 %v3007_v10, %v2870_v9  ;;  %v2863_v29 = vor.u32 %v3005_v44, %v2862_v28  ;;  %v2864_v30 = vld [vmem:[%s4189_s9 + $0x48] sm:$0xf0]  ;;  %v3070_v44 = vld [vmem:[%s4188_s8] ss:$0 sm:$0xff]  ;;  %s440_s19 = scalar_lea.vmem %s4193_s13, %s2962_s27 }
 0x43f   : > { %v2867_v45 = vor.u32 %v3004_v46, %v2864_v30  ;;  %v2170_v30 = vld [vmem:[%s4190_s10] sm:$0x3] }
 0x440   : > { %3052 = vrot.lane.b32.xlu1 %v3051_v23, %s3133_s20  ;;  %2085 = vmatpush.bf16.msrb.mxu1 %v2991_v34  ;;  %v2854_v23 = vld [vmem:[%s4189_s9 + $0x30] sm:$0xf] }
 0x441   : > { %v2855_v8 = vor.u32 %v3003_v24, %v2854_v23 }
 0x442   : > { %2271 = vmatpush.bf16.msra.mxu3 %v2883_v25 }
 0x444   : > { %2086 = vmatpush.bf16.msrb.mxu1 %v2990_v37  ;;  %v2859_v37 = vor.u32 %v3002_v32, %v2856_v17 }
 0x448   : > { %2087 = vmatpush.bf16.msrb.mxu1 %v2989_v31  ;;  %v2846_v31 = vld [vmem:[%s4189_s9 + $0x20] sm:$0xf] }
 0x44c   : > { %2088 = vmatpush.bf16.msrb.mxu1 %v2988_v39  ;;  %v3001_v39 = vld [vmem:[%s4189_s9 + $0x24] sm:$0xf0] }
 0x497   : > { %v3058_v41 = vpop.permute.xlu2 %3057 }
 0x498   : > { %v3060_v62 = vunpack.i.h.bf16 %v3058_v41  ;;  %v3059_v38 = vunpack.i.l.bf16 %v3058_v41  ;;  %v3000_v41 = vld [vmem:[%s4189_s9 + $0x24] sm:$0xf] }
 0x4b0   : > { %v3063_v14 = vpop.permute.xlu0 %3062 }
 0x4b1   : > { %v3065_v52 = vunpack.i.h.bf16 %v3063_v14  ;;  %v3064_v54 = vunpack.i.l.bf16 %v3063_v14  ;;  %v2848_v14 = vld [vmem:[%s4189_s9 + $0x28] sm:$0xf0] }
 0x4b2   : > { %v3053_v42 = vpop.permute.xlu1 %3052 }
 0x4b3   : > { %v3055_v48 = vunpack.i.h.bf16 %v3053_v42  ;;  %v3054_v43 = vunpack.i.l.bf16 %v3053_v42 }
 0x4b5   : > { %v2004_v21 = vsel %vm1451_vm8, %v1919_v20, %v3054_v43  ;;  %v2005_v33 = vsel %vm1451_vm8, %v1973_v19, %v3055_v48  ;;  %v3006_v20 = vld [vmem:[%s4189_s9 + $0x54] sm:$0xf]  ;;  %v2847_v43 = vor.u32 %v3001_v39, %v2846_v31 }
 0x4b6   : > { %v2007_v4 = vsel %vm2006_vm10, %v2004_v21, %v3059_v38  ;;  %v2008_v36 = vsel %vm2006_vm10, %v2005_v33, %v3060_v62  ;;  %v2875_v13 = vor.u32 %v3006_v20, %v2872_v57  ;;  %v2851_v38 = vor.u32 %v3000_v41, %v2848_v14  ;;  %v2998_v33 = vld [vmem:[%s4189_s9 + $0x14] sm:$0xf]  ;;  %v3069_v20 = vld [vmem:[%s4187_s7] ss:$0 sm:$0xff] }
 0x4b7   : > { %v2010_v50 = vsel %vm2009_vm11, %v2007_v4, %v3064_v54  ;;  %v2011_v15 = vsel %vm2009_vm11, %v2008_v36, %v3065_v52  ;;  %v2838_v52 = vld [vmem:[%s4189_s9 + $0x10] sm:$0xf]  ;;  %v2999_v54 = vld [vmem:[%s4189_s9 + $0x14] sm:$0xf0]  ;;  %v2840_v4 = vld [vmem:[%s4189_s9 + $0x18] sm:$0xf0] }
 0x4b8   : > { %v2012_v40 = vpack.c.bf16 %v2011_v15, %v2010_v50  ;;  %2272 = vmatpush.bf16.msra.mxu3 %v2875_v13  ;;  %v2839_v15 = vor.u32 %v2999_v54, %v2838_v52 }
 0x4ba   : > { %2089 = vmatmul.bf16.vlgmr.msrb.gmra.mxu1 %v2012_v40 }
 0x4bc   : > { %2273 = vmatpush.bf16.msra.mxu3 %v2867_v45 }
 0x4c0   : > { %2274 = vmatpush.bf16.msra.mxu3 %v2859_v37 }
 0x4c4   : > { %2275 = vmatpush.bf16.msra.mxu3 %v2851_v38 }
 0x537   : > { %v2090_v58 = vpop.f32.mrf.mxu1 }
 0x538   : > { %v2091_v18 = vadd.f32 %v3068_v12, %v2090_v58  ;;  %v2830_v58 = vld [vmem:[%s4189_s9] sm:$0xf] }
 0x53a   : > { %v3874_v11 = vadd.f32 %v3222_v1, %v2091_v18  ;;  %v2886_v1 = vld [vmem:[%s4189_s9 + $0x70] sm:$0xf]  ;;  %v2997_v18 = vld [vmem:[%s4189_s9 + $0x4] sm:$0xf0] }
 0x53c   : > { %2099 = vadd.xlane.f32.xlu1 %v3874_v11  ;;  %v2105_v22 = vmul.f32 %v3874_v11, %v3874_v11 }
 0x53e   : > { %2107 = vadd.xlane.f32.xlu2 %v2105_v22  ;;  %v2996_v22 = vld [vmem:[%s4189_s9 + $0x4] sm:$0xf] }
 0x53f   : > { %v2092_v60 = vpop.f32.mrf.mxu1 }
 0x540   : > { %v2093_v55 = vadd.f32 %v3068_v12, %v2092_v60  ;;  %v2843_v12 = vor.u32 %v2998_v33, %v2840_v4 }
 0x542   : > { %v3880_v56 = vadd.f32 %v3227_v3, %v2093_v55  ;;  %v2887_v3 = vor.u32 %v3011_v16, %v2886_v1  ;;  %v2831_v1 = vor.u32 %v2997_v18, %v2830_v58  ;;  %2276 = vmatpush.bf16.msra.mxu3 %v2843_v12 }
 0x544   : > { %2101 = vadd.xlane.f32.xlu0 %v3880_v56  ;;  %v2106_v35 = vmul.f32 %v3880_v56, %v3880_v56  ;;  %2256 = vmatpush.bf16.msrb.mxu2 %v2887_v3 }
 0x546   : > { %2109 = vadd.xlane.f32.xlu1 %v2106_v35 }
 0x548   : > { %2257 = vmatpush.bf16.msrb.mxu2 %v2879_v5 }
 0x54c   : > { %2258 = vmatpush.bf16.msrb.mxu2 %v2871_v51 }
 0x550   : > { %2259 = vmatpush.bf16.msrb.mxu2 %v2863_v29 }
 0x554   : > { %2260 = vmatpush.bf16.msrb.mxu2 %v2855_v8 }
 0x558   : > { %2261 = vmatpush.bf16.msrb.mxu2 %v2847_v43 }
 0x55c   : > { %2262 = vmatpush.bf16.msrb.mxu2 %v2839_v15  ;;  %v3019_v15 = vld [vmem:[%s4191_s11 + $0x38] sm:$0xff] }
 0x55d   : > { %2594 = vmatpush.bf16.msrb.mxu0 %v3019_v15 }
 0x560   : > { %2263 = vmatpush.bf16.msrb.mxu2 %v2831_v1  ;;  %v3026_v1 = vld [vmem:[%s4191_s11 + $0x70] sm:$0xff] }
 0x5af   : > { %v2100_v26 = vpop.xlane.xlu1 %2099 }
 0x5b0   : > { %v3922_v27 = vmul.f32 %v2100_v26, %v3338_v59 }
 0x5b1   : > { %v2108_v47 = vpop.xlane.xlu2 %2107 }
 0x5b2   : > { %v2113_v19 = vmul.f32 %v3922_v27, %v3922_v27  ;;  %v2111_v6 = vmul.f32 %v2108_v47, %v3338_v59  ;;  %v2117_v25 = vsub.f32 %v3874_v11, %v3922_v27 }
 0x5b4   : > { %v2115_v34 = vsub.f32 %v2111_v6, %v2113_v19  ;;  %v2172_v19 = vperm.slane %v2170_v30, 0  ;;  %v2173_v6 = vperm.slane %v2170_v30, 1 }
 0x5b6   : > { %v2119_v42 = vadd.f32 1e-05, %v2115_v34 }
 0x5b7   : > { %v2102_v48 = vpop.xlane.xlu0 %2101 }
 0x5b8   : > { %3110 = vrsqrt.f32 %v2119_v42  ;;  %v2104_v62 = vmul.f32 %v2102_v48, %v3338_v59  ;;  %vm2127_vm13 = vweird.f32 %v2119_v42 }
 0x5b9   : > { %v2110_v21 = vpop.xlane.xlu1 %2109 }
 0x5ba   : > { %v2114_v36 = vmul.f32 %v2104_v62, %v2104_v62  ;;  %v2112_v50 = vmul.f32 %v2110_v21, %v3338_v59  ;;  %v2832_v59 = vld [vmem:[%s4189_s9 + $0x8] sm:$0xf0]  ;;  %v2118_v57 = vsub.f32 %v3880_v56, %v2104_v62 }
 0x5bb   : > { %v2835_v16 = vor.u32 %v2996_v22, %v2832_v59 }
 0x5bc   : > { %v2116_v40 = vsub.f32 %v2112_v50, %v2114_v36 }
 0x5bd   : > { %2277 = vmatpush.bf16.msra.mxu3 %v2835_v16 }
 0x5be   : > { %v3111_v60 = vpop.eup %3110  ;;  %v2120_v55 = vadd.f32 1e-05, %v2116_v40  ;;  %v3027_v40 = vld [vmem:[%s4191_s11 + $0x78] sm:$0xff] }
 0x5bf   : > { %v2122_v35 = vmul.f32 %v3111_v60, %v2119_v42  ;;  %vm2128_vm12 = vweird.f32 %v3111_v60  ;;  %2608 = vmatpush.bf16.msra.mxu1 %v3027_v40 }
 0x5c0   : > { %3112 = vrsqrt.f32 %v2120_v55  ;;  %vm2129_vm14 = vmor %vm2127_vm13, %vm2128_vm12  ;;  %vm2137_vm0 = vweird.f32 %v2120_v55 }
 0x5c1   : > { %v2123_v61 = vmul.f32 %v3111_v60, %v2122_v35  ;;  %v3018_v35 = vld [vmem:[%s4191_s11 + $0x30] sm:$0xff] }
 0x5c2   : > { %2595 = vmatpush.bf16.msrb.mxu0 %v3018_v35 }
 0x5c3   : > { %v2124_v3 = vmul.f32 0.5, %v2123_v61  ;;  %2609 = vmatpush.bf16.msra.mxu1 %v3026_v1 }
 0x5c5   : > { %v2125_v53 = vsub.f32 1.5, %v2124_v3 }
 0x5c6   : > { %v3113_v63 = vpop.eup %3112 }
 0x5c7   : > { %v2126_v0 = vmul.f32 %v3111_v60, %v2125_v53  ;;  %v2132_v49 = vmul.f32 %v3113_v63, %v2120_v55  ;;  %vm2138_vm15 = vweird.f32 %v3113_v63 }
 0x5c8   : > { %vm2139_vm1 = vmor %vm2137_vm0, %vm2138_vm15 }
 0x5c9   : > { %v2133_v2 = vmul.f32 %v3113_v63, %v2132_v49  ;;  %v2130_v5 = vsel %vm2129_vm14, %v3111_v60, %v2126_v0 }
 0x5ca   : > { %v2141_v10 = vmul.f32 %v2130_v5, %v2117_v25 }
 0x5cb   : > { %v2134_v7 = vmul.f32 0.5, %v2133_v2 }
 0x5cc   : > { %v2146_v28 = vmul.f32 %v3069_v20, %v2141_v10 }
 0x5cd   : > { %v2135_v9 = vsub.f32 1.5, %v2134_v7 }
 0x5ce   : > { %v2151_v46 = vadd.f32 %v3070_v44, %v2146_v28 }
 0x5cf   : > { %v2136_v51 = vmul.f32 %v3113_v63, %v2135_v9 }
 0x5d1   : > { %v2140_v13 = vsel %vm2139_vm1, %v3113_v63, %v2136_v51  ;;  %v3017_v51 = vld [vmem:[%s4191_s11 + $0x28] sm:$0xff] }
 0x5d2   : > { %v2142_v26 = vmul.f32 %v2140_v13, %v2118_v57  ;;  %v3025_v57 = vld [vmem:[%s4191_s11 + $0x68] sm:$0xff]  ;;  %2596 = vmatpush.bf16.msrb.mxu0 %v3017_v51 }
 0x5d3   : > { %2610 = vmatpush.bf16.msra.mxu1 %v3025_v57 }
 0x5d4   : > { %v2147_v27 = vmul.f32 %v3069_v20, %v2142_v26 }
 0x5d6   : > { %v2152_v47 = vadd.f32 %v3070_v44, %v2147_v27 }
 0x5d8   : > { %v2153_v29 = vpack.c.bf16 %v2152_v47, %v2151_v46 }
 0x5da   : > { %2264 = vmatmul.bf16.vlgmr.msrb.gmra.mxu2 %v2153_v29  ;;  %2278 = vmatmul.bf16.vlgmr.msra.gmra.mxu3 %v2153_v29 }
 0x65d   : > { %v2265_v45 = vpop.f32.mrf.mxu2  ;;  %v2279_v23 = vpop.f32.mrf.mxu3 }
 0x65e   : > { %v4001_v24 = vadd.f32 %v2265_v45, %v2172_v19  ;;  %v4003_v32 = vadd.f32 %v2279_v23, %v2173_v6  ;;  %v3016_v45 = vld [vmem:[%s4191_s11 + $0x20] sm:$0xff] }
 0x65f   : > { %v3024_v23 = vld [vmem:[%s4191_s11 + $0x60] sm:$0xff]  ;;  %2597 = vmatpush.bf16.msrb.mxu0 %v3016_v45 }
 0x660   : > { %v4006_v8 = vmul.f32 0.70710677, %v4001_v24  ;;  %v4009_v17 = vmul.f32 0.70710677, %v4003_v32  ;;  %2611 = vmatpush.bf16.msra.mxu1 %v3024_v23 }
 0x662   : > { %v2292_v34 = vmul.f32 %v4006_v8, %v4006_v8  ;;  %v2332_v37 = vmul.f32 %v4009_v17, %v4009_v17 }
 0x664   : > { %v4015_v31 = vmin.f32 %v2292_v34, 16.0  ;;  %v4017_v39 = vmin.f32 %v2332_v37, 16.0 }
 0x665   : > { %v2267_v41 = vpop.f32.mrf.mxu2  ;;  %v2281_v14 = vpop.f32.mrf.mxu3 }
 0x666   : > { %v2294_v42 = vmul.f32 2.1237322e-06, %v4015_v31  ;;  %v2305_v48 = vmul.f32 3.8918573e-05, %v4015_v31  ;;  %v4021_v43 = vadd.f32 %v2267_v41, %v2172_v19  ;;  %v2345_v62 = vmul.f32 3.8918573e-05, %v4017_v39 }
 0x667   : > { %v4024_v38 = vadd.f32 %v2281_v14, %v2173_v6  ;;  %v2334_v36 = vmul.f32 2.1237322e-06, %v4017_v39 }
 0x668   : > { %v2295_v52 = vadd.f32 0.00028619796, %v2294_v42  ;;  %v2306_v54 = vadd.f32 0.001143296, %v2305_v48  ;;  %v2346_v21 = vadd.f32 0.001143296, %v2345_v62 }
 0x669   : > { %v4027_v33 = vmul.f32 0.70710677, %v4021_v43  ;;  %v4032_v50 = vmul.f32 0.70710677, %v4024_v38  ;;  %v2335_v61 = vadd.f32 0.00028619796, %v2334_v36 }
 0x66a   : > { %v2307_v4 = vmul.f32 %v2306_v54, %v4015_v31  ;;  %v2347_v12 = vmul.f32 %v2346_v21, %v4017_v39  ;;  %v2296_v18 = vmul.f32 %v2295_v52, %v4015_v31  ;;  %v3015_v62 = vld [vmem:[%s4191_s11 + $0x18] sm:$0xff] }
 0x66b   : > { %v2372_v58 = vmul.f32 %v4027_v33, %v4027_v33  ;;  %v2412_v59 = vmul.f32 %v4032_v50, %v4032_v50  ;;  %v2336_v10 = vmul.f32 %v2335_v61, %v4017_v39  ;;  %2598 = vmatpush.bf16.msrb.mxu0 %v3015_v62 }
 0x66c   : > { %v2308_v22 = vadd.f32 0.014752088, %v2307_v4  ;;  %v2348_v60 = vadd.f32 0.014752088, %v2347_v12  ;;  %v2297_v49 = vadd.f32 0.0036580483, %v2296_v18 }
 0x66d   : > { %v4046_v55 = vmin.f32 %v2372_v58, 16.0  ;;  %v4055_v3 = vmin.f32 %v2412_v59, 16.0  ;;  %v2337_v19 = vadd.f32 0.0036580483, %v2336_v10  ;;  %v3023_v4 = vld [vmem:[%s4191_s11 + $0x58] sm:$0xff]  ;;  %v3014_v58 = vld [vmem:[%s4191_s11 + $0x10] sm:$0xff] }
 0x66e   : > { %v2309_v16 = vmul.f32 %v2308_v22, %v4015_v31  ;;  %v2349_v53 = vmul.f32 %v2348_v60, %v4017_v39  ;;  %v2298_v27 = vmul.f32 %v2297_v49, %v4015_v31  ;;  %2612 = vmatpush.bf16.msra.mxu1 %v3023_v4  ;;  %v3022_v18 = vld [vmem:[%s4191_s11 + $0x50] sm:$0xff]  ;;  %v3021_v49 = vld [vmem:[%s4191_s11 + $0x48] sm:$0xff] }
 0x66f   : > { %v2374_v63 = vmul.f32 2.1237322e-06, %v4046_v55  ;;  %v2385_v0 = vmul.f32 3.8918573e-05, %v4046_v55  ;;  %v2414_v20 = vmul.f32 2.1237322e-06, %v4055_v3  ;;  %v2338_v15 = vmul.f32 %v2337_v19, %v4017_v39  ;;  %2599 = vmatpush.bf16.msrb.mxu0 %v3014_v58 }
 0x670   : > { %v2310_v2 = vadd.f32 0.112945676, %v2309_v16  ;;  %v2350_v5 = vadd.f32 0.112945676, %v2349_v53  ;;  %v2425_v44 = vmul.f32 3.8918573e-05, %v4055_v3 }
 0x671   : > { %v2375_v7 = vadd.f32 0.00028619796, %v2374_v63  ;;  %v2386_v25 = vadd.f32 0.001143296, %v2385_v0  ;;  %v2415_v41 = vadd.f32 0.00028619796, %v2414_v20 }
 0x672   : > { %v2311_v9 = vmul.f32 %v2310_v2, %v4015_v31  ;;  %v2351_v13 = vmul.f32 %v2350_v5, %v4017_v39  ;;  %v2426_v14 = vadd.f32 0.001143296, %v2425_v44  ;;  %v2299_v42 = vadd.f32 0.05243302, %v2298_v27  ;;  %2613 = vmatpush.bf16.msra.mxu1 %v3022_v18  ;;  %v3013_v0 = vld [vmem:[%s4191_s11 + $0x8] sm:$0xff]  ;;  %v3012_v44 = vld [vmem:[%s4191_s11] sm:$0xff] }
 0x673   : > { %v2376_v26 = vmul.f32 %v2375_v7, %v4046_v55  ;;  %v2387_v28 = vmul.f32 %v2386_v25, %v4046_v55  ;;  %v2416_v40 = vmul.f32 %v2415_v41, %v4055_v3  ;;  %v2339_v35 = vadd.f32 0.05243302, %v2338_v15  ;;  %2600 = vmatpush.bf16.msrb.mxu0 %v3013_v0  ;;  %v3020_v27 = vld [vmem:[%s4191_s11 + $0x40] sm:$0xff] }
 0x674   : > { %v2312_v46 = vadd.f32 0.4994258, %v2311_v9  ;;  %v2352_v47 = vadd.f32 0.4994258, %v2351_v13  ;;  %v2427_v21 = vmul.f32 %v2426_v14, %v4055_v3  ;;  %v2300_v12 = vmul.f32 %v2299_v42, %v4015_v31 }
 0x675   : > { %v2388_v29 = vadd.f32 0.014752088, %v2387_v28  ;;  %v2377_v6 = vadd.f32 0.0036580483, %v2376_v26  ;;  %v2417_v16 = vadd.f32 0.0036580483, %v2416_v40  ;;  %v2340_v51 = vmul.f32 %v2339_v35, %v4017_v39 }
 0x676   : > { %v2313_v30 = vmul.f32 %v2312_v46, %v4015_v31  ;;  %v2353_v34 = vmul.f32 %v2352_v47, %v4017_v39  ;;  %v2428_v59 = vadd.f32 0.014752088, %v2427_v21  ;;  %v2301_v63 = vadd.f32 0.18741608, %v2300_v12  ;;  %2614 = vmatpush.bf16.msra.mxu1 %v3021_v49 }
 0x677   : > { %v2389_v37 = vmul.f32 %v2388_v29, %v4046_v55  ;;  %v2378_v36 = vmul.f32 %v2377_v6, %v4046_v55  ;;  %v2418_v13 = vmul.f32 %v2417_v16, %v4055_v3  ;;  %v2341_v6 = vadd.f32 0.18741608, %v2340_v51  ;;  %2601 = vmatpush.bf16.msrb.mxu0 %v3012_v44 }
 0x678   : > { %v4083_v48 = vadd.f32 1.0, %v2313_v30  ;;  %v4088_v52 = vadd.f32 1.0, %v2353_v34  ;;  %v2429_v61 = vmul.f32 %v2428_v59, %v4055_v3  ;;  %v2302_v26 = vmul.f32 %v2301_v63, %v4015_v31 }
 0x679   : > { %v2390_v54 = vadd.f32 0.112945676, %v2389_v37  ;;  %v2379_v60 = vadd.f32 0.05243302, %v2378_v36  ;;  %v2419_v45 = vadd.f32 0.05243302, %v2418_v13 }
 0x67a   : > { %3114 = vrcp.f32 %v4083_v48  ;;  %v2430_v10 = vadd.f32 0.112945676, %v2429_v61  ;;  %v2326_v31 = vand.u32 2147483648, %v4083_v48  ;;  %v2303_v23 = vadd.f32 1.1283791, %v2302_v26  ;;  %2615 = vmatpush.bf16.msra.mxu1 %v3020_v27 }
 0x67b   : > { %3116 = vrcp.f32 %v4088_v52  ;;  %v2391_v22 = vmul.f32 %v2390_v54, %v4046_v55  ;;  %v2380_v9 = vmul.f32 %v2379_v60, %v4046_v55  ;;  %vm2320_vm3 = vweird.f32 %v4083_v48 }
 0x67c   : > { %v2431_v28 = vmul.f32 %v2430_v10, %v4055_v3  ;;  %v2324_v34 = vand.u32 2147483647, %v4083_v48  ;;  %v2327_v21 = vor.u32 1.1754944e-38, %v2326_v31  ;;  %v2420_v4 = vmul.f32 %v2419_v45, %v4055_v3 }
 0x67d   : > { %v2392_v1 = vadd.f32 0.4994258, %v2391_v22  ;;  %v2381_v29 = vadd.f32 0.18741608, %v2380_v9  ;;  %v2304_v36 = vmul.f32 %v2303_v23, %v4006_v8  ;;  %v2366_v58 = vand.u32 2147483648, %v4088_v52 }
 0x67e   : > { %v2432_v30 = vadd.f32 0.4994258, %v2431_v28  ;;  %vm2325_vm5 = vcmp.eq.f32.partialorder %v2324_v34, 8.507059e+37  ;;  %vm2360_vm7 = vweird.f32 %v4088_v52  ;;  %v2421_v60 = vadd.f32 0.18741608, %v2420_v4 }
 0x67f   : > { %v2393_v7 = vmul.f32 %v2392_v1, %v4046_v55  ;;  %v2382_v42 = vmul.f32 %v2381_v29, %v4046_v55  ;;  %v2364_v55 = vand.u32 2147483647, %v4088_v52 }
 0x680   : > { %v3115_v53 = vpop.eup %3114  ;;  %v2433_v37 = vmul.f32 %v2432_v30, %v4055_v3 }
 0x681   : > { %v4114_v2 = vpop.eup %3116  ;;  %v2316_v5 = vmul.f32 %v3115_v53, %v4083_v48  ;;  %v2394_v57 = vadd.f32 1.0, %v2393_v7  ;;  %vm2321_vm2 = vweird.f32 %v3115_v53  ;;  %v2342_v48 = vmul.f32 %v2341_v6, %v4017_v39 }
 0x682   : > { %v2356_v25 = vmul.f32 %v4114_v2, %v4088_v52  ;;  %vm2322_vm4 = vmor %vm2320_vm3, %vm2321_vm2  ;;  %v4137_v62 = vadd.f32 1.0, %v2433_v37  ;;  %vm2361_vm6 = vweird.f32 %v4114_v2  ;;  %v2383_v18 = vadd.f32 1.1283791, %v2382_v42 }
 0x683   : > { %v2317_v20 = vsub.f32 1.0, %v2316_v5  ;;  %3118 = vrcp.f32 %v2394_v57  ;;  %v2404_v8 = vand.u32 2147483647, %v2394_v57  ;;  %v2406_v59 = vand.u32 2147483648, %v2394_v57  ;;  %vm4148_vm8 = vmor %vm2360_vm7, %vm2361_vm6 }
 0x684   : > { %v2357_v47 = vsub.f32 1.0, %v2356_v25  ;;  %3120 = vrcp.f32 %v4137_v62  ;;  %v2343_v16 = vadd.f32 1.1283791, %v2342_v48  ;;  %vm2365_vm10 = vcmp.eq.f32.partialorder %v2364_v55, 8.507059e+37 }
 0x685   : > { %v2318_v46 = vmul.f32 %v3115_v53, %v2317_v20  ;;  %vm2400_vm11 = vweird.f32 %v2394_v57  ;;  %v2384_v0 = vmul.f32 %v2383_v18, %v4027_v33  ;;  %vm2405_vm13 = vcmp.eq.f32.partialorder %v2404_v8, 8.507059e+37 }
 0x686   : > { %v2358_v41 = vmul.f32 %v4114_v2, %v2357_v47  ;;  %v2407_v49 = vor.u32 1.1754944e-38, %v2406_v59  ;;  %v2422_v5 = vmul.f32 %v2421_v60, %v4055_v3  ;;  %v2344_v20 = vmul.f32 %v2343_v16, %v4009_v17 }
 0x687   : > { %v2319_v19 = vadd.f32 %v3115_v53, %v2318_v46  ;;  %v2444_v28 = vand.u32 2147483647, %v4137_v62  ;;  %v2446_v33 = vand.u32 2147483648, %v4137_v62  ;;  %v2284_v3 = vmul.f32 0.5, %v4001_v24 }
 0x688   : > { %v2359_v12 = vadd.f32 %v4114_v2, %v2358_v41  ;;  %v2286_v47 = vmul.f32 0.5, %v4021_v43  ;;  %vm2440_vm15 = vweird.f32 %v4137_v62  ;;  %v2285_v43 = vmul.f32 0.5, %v4003_v32 }
 0x689   : > { %v2323_v14 = vsel %vm2322_vm4, %v3115_v53, %v2319_v19  ;;  %v3119_v54 = vpop.eup %3118  ;;  %v2367_v53 = vor.u32 1.1754944e-38, %v2366_v58  ;;  %v2447_v31 = vor.u32 1.1754944e-38, %v2446_v33  ;;  %vm2445_vm1 = vcmp.eq.f32.partialorder %v2444_v28, 8.507059e+37 }
 0x68a   : > { %v2396_v15 = vmul.f32 %v3119_v54, %v2394_v57  ;;  %v2328_v40 = vsel %vm2325_vm5, %v2327_v21, %v2323_v14  ;;  %vm2401_vm9 = vweird.f32 %v3119_v54  ;;  %v2363_v61 = vsel %vm4148_vm8, %v4114_v2, %v2359_v12  ;;  %v3121_v52 = vpop.eup %3120 }
 0x68b   : > { %v2329_v39 = vmul.f32 %v2328_v40, %v2304_v36  ;;  %vm2402_vm12 = vmor %vm2400_vm11, %vm2401_vm9  ;;  %v2368_v25 = vsel %vm2365_vm10, %v2367_v53, %v2363_v61  ;;  %v2436_v10 = vmul.f32 %v3121_v52, %v4137_v62  ;;  %v2423_v57 = vadd.f32 1.1283791, %v2422_v5  ;;  %v3071_v36 = vld [vmem:[%s4192_s12] ss:$0 sm:$0xff] }
 0x68c   : > { %v2397_v22 = vsub.f32 1.0, %v2396_v15  ;;  %v2369_v26 = vmul.f32 %v2368_v25, %v2344_v20  ;;  %vm2441_vm14 = vweird.f32 %v3121_v52  ;;  %v2287_v42 = vmul.f32 0.5, %v4024_v38 }
 0x68d   : > { %v2892_v7 = vclamps-f32 %v2329_v39, 1.0  ;;  %v2437_v13 = vsub.f32 1.0, %v2436_v10  ;;  %v2424_v19 = vmul.f32 %v2423_v57, %v4032_v50  ;;  %vm2442_vm0 = vmor %vm2440_vm15, %vm2441_vm14 }
 0x68e   : > { %v2398_v1 = vmul.f32 %v3119_v54, %v2397_v22  ;;  %v2893_v17 = vclamps-f32 %v2369_v26, 1.0 }
 0x68f   : > { %v2452_v44 = vadd.f32 1.0, %v2892_v7  ;;  %v2438_v46 = vmul.f32 %v3121_v52, %v2437_v13 }
 0x690   : > { %v2399_v63 = vadd.f32 %v3119_v54, %v2398_v1  ;;  %v2453_v14 = vadd.f32 1.0, %v2893_v17 }
 0x691   : > { %v2439_v30 = vadd.f32 %v3121_v52, %v2438_v46  ;;  %v2456_v6 = vmul.f32 %v2452_v44, %v2284_v3 }
 0x692   : > { %v2403_v9 = vsel %vm2402_vm12, %v3119_v54, %v2399_v63  ;;  %v2457_v54 = vmul.f32 %v2453_v14, %v2285_v43 }
 0x693   : > { %v2408_v2 = vsel %vm2405_vm13, %v2407_v49, %v2403_v9  ;;  %v2443_v23 = vsel %vm2442_vm0, %v3121_v52, %v2439_v30 }
 0x694   : > { %v2409_v51 = vmul.f32 %v2408_v2, %v2384_v0  ;;  %v2448_v34 = vsel %vm2445_vm1, %v2447_v31, %v2443_v23 }
 0x695   : > { %v2449_v41 = vmul.f32 %v2448_v34, %v2424_v19 }
 0x696   : > { %v2894_v27 = vclamps-f32 %v2409_v51, 1.0 }
 0x697   : > { %v2895_v24 = vclamps-f32 %v2449_v41, 1.0 }
 0x698   : > { %v2454_v29 = vadd.f32 1.0, %v2894_v27 }
 0x699   : > { %v2455_v62 = vadd.f32 1.0, %v2895_v24 }
 0x69a   : > { %v2458_v45 = vmul.f32 %v2454_v29, %v2286_v47 }
 0x69b   : > { %v2459_v50 = vmul.f32 %v2455_v62, %v2287_v42 }
 0x69c   : > { %v2460_v37 = vpack.c.bf16 %v2458_v45, %v2456_v6 }
 0x69d   : > { %v2461_v21 = vpack.c.bf16 %v2459_v50, %v2457_v54 }
 0x69e   : > { %2602 = vmatmul.bf16.vlgmr.msrb.gmra.mxu0 %v2460_v37 }
 0x69f   : > { %2616 = vmatmul.bf16.vlgmr.msra.gmra.mxu1 %v2461_v21 }
 0x71b   : > { %v2603_v4 = vpop.f32.mrf.mxu0 }
 0x71c   : > { %v2617_v48 = vpop.f32.mrf.mxu1  ;;  %v2604_v40 = vadd.f32 %v3071_v36, %v2603_v4 }
 0x71e   : > { %v2618_v55 = vadd.f32 %v2617_v48, %v2604_v40 }
 0x720   : > { %v2622_v38 = vadd.f32 %v2618_v55, %v3874_v11 }
 0x723   : > { %v2605_v15 = vpop.f32.mrf.mxu0 }
 0x724   : > { %v2606_v12 = vadd.f32 %v3071_v36, %v2605_v15  ;;  %v2619_v58 = vpop.f32.mrf.mxu1 }
 0x726   : > { %v2620_v32 = vadd.f32 %v2619_v58, %v2606_v12 }
 0x728   : > { %v2623_v18 = vadd.f32 %v2620_v32, %v3880_v56 }
 0x72a   : > { %v3035_v22 = vpack.c.bf16 %v2623_v18, %v2622_v38 }
 0x72c   : > { %3036 = vst [vmem:[%s440_s19] sm:$0xff] %v3035_v22  }
 0x72d PF: > { %s23_s25 = sadd.s32 1, %s3128_s25  }
 0x72e   : > { %p20_p4 = scmp.ge.s32.totalorder %s23_s25, 4  }
 0x730   :  { %22 = sbr.rel (!%p20_p4) target bundleno = 1 (0x1), region = 102 }

// kernel: hierarchical_vit_forward.9
= control target key start
LH: loop header
LB: loop body
LE: loop exit
PB: predicated region body
PF: predicated region fallthrough
CT: control target
= control target key end

     0   :  { %s2202_s25 = smov 0   ;;  %s2737_s0 = inlined_call_operand.vmem [shape: bf16[2,4,128], index: 0, kind: input, shape index: {}]   ;;  %s2738_s1 = inlined_call_operand.vmem [shape: f32[1,128], index: 1, kind: input, shape index: {}]   ;;  %s2739_s2 = inlined_call_operand.vmem [shape: f32[1,128], index: 2, kind: input, shape index: {}]   ;;  %s2740_s3 = inlined_call_operand.vmem [shape: bf16[128,384], index: 3, kind: input, shape index: {}]   ;;  %s2741_s4 = inlined_call_operand.vmem [shape: f32[1,384], index: 4, kind: input, shape index: {}]   ;;  %s2742_s5 = inlined_call_operand.vmem [shape: bf16[128,128], index: 5, kind: input, shape index: {}]   ;;  %s2743_s6 = inlined_call_operand.vmem [shape: f32[1,128], index: 6, kind: input, shape index: {}]   ;;  %s2744_s7 = inlined_call_operand.vmem [shape: f32[1,128], index: 7, kind: input, shape index: {}]   ;;  %s2745_s8 = inlined_call_operand.vmem [shape: f32[1,128], index: 8, kind: input, shape index: {}]   ;;  %s2746_s9 = inlined_call_operand.vmem [shape: bf16[128,256], index: 9, kind: input, shape index: {}]   ;;  %s2747_s10 = inlined_call_operand.vmem [shape: f32[1,256], index: 10, kind: input, shape index: {}]   ;;  %s2748_s11 = inlined_call_operand.vmem [shape: bf16[256,128], index: 11, kind: input, shape index: {}]   ;;  %s2749_s12 = inlined_call_operand.vmem [shape: f32[1,128], index: 12, kind: input, shape index: {}]   ;;  %s2750_s13 = inlined_call_operand.vmem [shape: bf16[2,4,128], index: 13, kind: output, shape index: {}]  }
   0x1 LB: > { %s1731_s26 = sadd.s32 4294967295, %s2124_s25   ;;  %p1735_p0 = scmp.ge.s32.totalorder %s2124_s25, 1  ;;  %s2124_s25 = sphi %s2202_s25, %s23_s25  }
   0x2   : > { %p386_p1 = scmp.lt.s32.totalorder %s2124_s25, 3 }
   0x4   : > { %p387_p2 = pnand %p1735_p0, %p386_p1 }
   0x5   : > { %p428_p3 = scmp.lt.s32.totalorder (!%p387_p2), %s1731_s26, 1  ;;  %s2127_s18 = smov (!%p387_p2), 32  }
   0x6   : > { %390 = sbr.rel (%p387_p2) target bundleno = 1791 (0x6ff), region = 72  ;;  %s2128_s19 = smov (!%p387_p2), 96  }
   0x7   : > { %s2129_s20 = smov (!%p387_p2), 64  }
   0xb   : > { %s2752_s26 = smov (!%p428_p3, %s1731_s26), 1  ;;  %vm441_vm0 = vcmask 1043456   ;;  %v1824_v5 = vld [vmem:[%s2740_s3 + $0xa8] sm:$0xf]  ;;  %v2030_v6 = vld [vmem:[%s2740_s3 + $0xb0] sm:$0xf0] }
   0xc   : > { %s1736_s27 = sshll.u32 %s2752_s26, 1  ;;  %v2029_v7 = vld [vmem:[%s2740_s3 + $0xac] sm:$0xf]  ;;  %v1825_v8 = vor.u32 %v2030_v6, %v1824_v5  ;;  %v1826_v9 = vld [vmem:[%s2740_s3 + $0xb4] sm:$0xf0]  ;;  %v2126_v12 = vmov 128.0  }
   0xd   : > { %s431_s30 = scalar_lea.vmem %s2737_s0, %s1736_s27  ;;  %v1832_v10 = vld [vmem:[%s2740_s3 + $0xb0] sm:$0xf]  ;;  %v2031_v11 = vld [vmem:[%s2740_s3 + $0xb8] sm:$0xf0]  ;;  %2092 = vrcp.f32 %v2126_v12  ;;  %v1829_v13 = vor.u32 %v2029_v7, %v1826_v9  ;;  %v2026_v17 = vld [vmem:[%s2740_s3 + $0x94] sm:$0xf]  ;;  %s435_s22 = scalar_lea.vmem %s2750_s13, %s1736_s27 }
   0xe   : > { %v437_v0 = vld [vmem:[%s431_s30] sm:$0x3]  ;;  %v1833_v14 = vor.u32 %v2031_v11, %v1832_v10  ;;  %650 = vmatpush.bf16.msra.mxu0 %v1825_v8  ;;  %v1812_v15 = vld [vmem:[%s2740_s3 + $0x90] sm:$0xf]  ;;  %v2027_v16 = vld [vmem:[%s2740_s3 + $0x98] sm:$0xf0] }
   0xf   : > { %v2218_v1 = vunpack.c.l.bf16 %v437_v0  ;;  %663 = vmatpush.bf16.msra.mxu1 %v1829_v13  ;;  %v1813_v18 = vor.u32 %v2027_v16, %v1812_v15  ;;  %v1814_v19 = vld [vmem:[%s2740_s3 + $0x9c] sm:$0xf0]  ;;  %v1820_v20 = vld [vmem:[%s2740_s3 + $0x98] sm:$0xf]  ;;  %v2028_v21 = vld [vmem:[%s2740_s3 + $0xa0] sm:$0xf0] }
  0x10   : > { %676 = vmatpush.bf16.msra.mxu2 %v1833_v14  ;;  %v1817_v22 = vor.u32 %v2026_v17, %v1814_v19  ;;  %v1821_v23 = vor.u32 %v2028_v21, %v1820_v20  ;;  %v1800_v25 = vld [vmem:[%s2740_s3 + $0x78] sm:$0xf]  ;;  %v2024_v26 = vld [vmem:[%s2740_s3 + $0x80] sm:$0xf0]  ;;  %v2023_v27 = vld [vmem:[%s2740_s3 + $0x7c] sm:$0xf] }
  0x11   : > { %v442_v2 = vsel %vm441_vm0, %v2218_v1, 0.0  ;;  %v453_v3 = vmul.f32 %v2218_v1, %v2218_v1  ;;  %v1801_v28 = vor.u32 %v2024_v26, %v1800_v25  ;;  %v1802_v29 = vld [vmem:[%s2740_s3 + $0x84] sm:$0xf0]  ;;  %v1808_v30 = vld [vmem:[%s2740_s3 + $0x80] sm:$0xf]  ;;  %vm700_vm5 = vcmask 1047556  }
  0x12   : > { %443 = vadd.xlane.f32.xlu0 %v442_v2  ;;  %651 = vmatpush.bf16.msra.mxu0 %v1813_v18  ;;  %v2025_v31 = vld [vmem:[%s2740_s3 + $0x88] sm:$0xf0]  ;;  %v1805_v32 = vor.u32 %v2023_v27, %v1802_v29  ;;  %v1788_v35 = vld [vmem:[%s2740_s3 + $0x60] sm:$0xf]  ;;  %v2020_v37 = vld [vmem:[%s2740_s3 + $0x64] sm:$0xf] }
  0x13   : > { %v454_v4 = vsel %vm441_vm0, %v453_v3, 0.0  ;;  %v2261_v24 = vpop.eup %2092  ;;  %664 = vmatpush.bf16.msra.mxu1 %v1817_v22  ;;  %v1809_v33 = vor.u32 %v2025_v31, %v1808_v30  ;;  %v2021_v36 = vld [vmem:[%s2740_s3 + $0x68] sm:$0xf0]  ;;  %v1790_v39 = vld [vmem:[%s2740_s3 + $0x6c] sm:$0xf0]  ;;  %vm900_vm6 = vcmask 261120  }
  0x14   : > { %677 = vmatpush.bf16.msra.mxu2 %v1821_v23  ;;  %v446_v34 = vmul.f32 128.0, %v2261_v24  ;;  %v1789_v38 = vor.u32 %v2021_v36, %v1788_v35  ;;  %v1796_v40 = vld [vmem:[%s2740_s3 + $0x68] sm:$0xf]  ;;  %v2022_v41 = vld [vmem:[%s2740_s3 + $0x70] sm:$0xf0]  ;;  %v1793_v42 = vor.u32 %v2020_v37, %v1790_v39  ;;  %vm450_vm1 = vweird.f32 %v2261_v24 }
  0x15   : > { %v1797_v43 = vor.u32 %v2022_v41, %v1796_v40  ;;  %v1776_v45 = vld [vmem:[%s2740_s3 + $0x48] sm:$0xf]  ;;  %v2018_v46 = vld [vmem:[%s2740_s3 + $0x50] sm:$0xf0]  ;;  %v2017_v47 = vld [vmem:[%s2740_s3 + $0x4c] sm:$0xf] }
  0x16   : > { %652 = vmatpush.bf16.msra.mxu0 %v1801_v28  ;;  %v447_v44 = vsub.f32 1.0, %v446_v34  ;;  %v1777_v48 = vor.u32 %v2018_v46, %v1776_v45  ;;  %v1778_v49 = vld [vmem:[%s2740_s3 + $0x54] sm:$0xf0]  ;;  %v1784_v50 = vld [vmem:[%s2740_s3 + $0x50] sm:$0xf]  ;;  %vm981_vm7 = vcmask 27648  }
  0x17   : > { %665 = vmatpush.bf16.msra.mxu1 %v1805_v32  ;;  %v2019_v51 = vld [vmem:[%s2740_s3 + $0x58] sm:$0xf0]  ;;  %v1781_v52 = vor.u32 %v2017_v47, %v1778_v49  ;;  %v1764_v55 = vld [vmem:[%s2740_s3 + $0x30] sm:$0xf]  ;;  %v2014_v57 = vld [vmem:[%s2740_s3 + $0x34] sm:$0xf] }
  0x18   : > { %678 = vmatpush.bf16.msra.mxu2 %v1809_v33  ;;  %v1785_v53 = vor.u32 %v2019_v51, %v1784_v50  ;;  %v448_v54 = vmul.f32 %v2261_v24, %v447_v44  ;;  %v2015_v56 = vld [vmem:[%s2740_s3 + $0x38] sm:$0xf0]  ;;  %v1766_v59 = vld [vmem:[%s2740_s3 + $0x3c] sm:$0xf0]  ;;  %v1772_v60 = vld [vmem:[%s2740_s3 + $0x38] sm:$0xf] }
  0x19   : > { %v1765_v58 = vor.u32 %v2015_v56, %v1764_v55  ;;  %v2016_v61 = vld [vmem:[%s2740_s3 + $0x40] sm:$0xf0]  ;;  %v1769_v62 = vor.u32 %v2014_v57, %v1766_v59  ;;  %v1752_v2 = vld [vmem:[%s2740_s3 + $0x18] sm:$0xf]  ;;  %v1754_v6 = vld [vmem:[%s2740_s3 + $0x24] sm:$0xf0] }
  0x1a   : > { %455 = vadd.xlane.f32.xlu0 %v454_v4  ;;  %653 = vmatpush.bf16.msra.mxu0 %v1789_v38  ;;  %v1773_v63 = vor.u32 %v2016_v61, %v1772_v60  ;;  %v449_v0 = vadd.f32 %v2261_v24, %v448_v54  ;;  %v2012_v3 = vld [vmem:[%s2740_s3 + $0x20] sm:$0xf0]  ;;  %v2011_v4 = vld [vmem:[%s2740_s3 + $0x1c] sm:$0xf]  ;;  %v1760_v7 = vld [vmem:[%s2740_s3 + $0x20] sm:$0xf] }
  0x1b   : > { %666 = vmatpush.bf16.msra.mxu1 %v1793_v42  ;;  %v1753_v5 = vor.u32 %v2012_v3, %v1752_v2  ;;  %v2013_v8 = vld [vmem:[%s2740_s3 + $0x28] sm:$0xf0]  ;;  %v1757_v10 = vor.u32 %v2011_v4, %v1754_v6  ;;  %v1740_v12 = vld [vmem:[%s2740_s3] sm:$0xf]  ;;  %v2008_v14 = vld [vmem:[%s2740_s3 + $0x4] sm:$0xf] }
  0x1c   : > { %679 = vmatpush.bf16.msra.mxu2 %v1797_v43  ;;  %v1761_v11 = vor.u32 %v2013_v8, %v1760_v7  ;;  %v2009_v13 = vld [vmem:[%s2740_s3 + $0x8] sm:$0xf0]  ;;  %v1742_v15 = vld [vmem:[%s2740_s3 + $0xc] sm:$0xf0]  ;;  %v1748_v16 = vld [vmem:[%s2740_s3 + $0x8] sm:$0xf]  ;;  %v2378_v18 = vsel %vm450_vm1, %v2261_v24, %v449_v0 }
  0x1d   : > { %v2010_v17 = vld [vmem:[%s2740_s3 + $0x10] sm:$0xf0]  ;;  %v1741_v19 = vor.u32 %v2009_v13, %v1740_v12  ;;  %v1745_v20 = vor.u32 %v2008_v14, %v1742_v15  ;;  %v2086_v35 = vld [vmem:[%s2738_s1] ss:$0 sm:$0xff]  ;;  %v2130_v55 = vmov 1934713408  }
  0x1e   : > { %654 = vmatpush.bf16.msra.mxu0 %v1777_v48  ;;  %v1749_v21 = vor.u32 %v2010_v17, %v1748_v16  ;;  %v2087_v38 = vld [vmem:[%s2739_s2] ss:$0 sm:$0xff]  ;;  %v703_v56 = vunpack.c.l.s4 %v2130_v55  ;;  %vm1034_vm8 = vcmask 1041408   ;;  %vm1030_vm9 = vcmask 31744  }
  0x1f   : > { %667 = vmatpush.bf16.msra.mxu1 %v1781_v52  ;;  %v2392_v42 = vld [vmem:[%s2741_s4] sm:$0x7]  ;;  %vm1177_vm10 = vcmask 523264   ;;  %vm1179_vm11 = vcmask 785408  }
  0x20   : > { %680 = vmatpush.bf16.msra.mxu2 %v1785_v53  ;;  %v516_v43 = vperm.slane %v2392_v42, 0  ;;  %v517_v44 = vperm.slane %v2392_v42, 1  ;;  %v2401_v59 = vunpack.c.0.s8 %v703_v56 }
  0x22   : > { %655 = vmatpush.bf16.msra.mxu0 %v1765_v58 }
  0x23   : > { %668 = vmatpush.bf16.msra.mxu1 %v1769_v62 }
  0x24   : > { %681 = vmatpush.bf16.msra.mxu2 %v1773_v63 }
  0x26   : > { %656 = vmatpush.bf16.msra.mxu0 %v1753_v5 }
  0x27   : > { %669 = vmatpush.bf16.msra.mxu1 %v1757_v10 }
  0x28   : > { %682 = vmatpush.bf16.msra.mxu2 %v1761_v11 }
  0x2a   : > { %657 = vmatpush.bf16.msra.mxu0 %v1741_v19 }
  0x2b   : > { %670 = vmatpush.bf16.msra.mxu1 %v1745_v20 }
  0x2c   : > { %683 = vmatpush.bf16.msra.mxu2 %v1749_v21 }
  0x85   : > { %v444_v9 = vpop.xlane.xlu0 %443 }
  0x86   : > { %v452_v22 = vmul.f32 %v2378_v18, %v444_v9 }
  0x88   : > { %v458_v25 = vmul.f32 %v452_v22, %v452_v22  ;;  %v460_v34 = vsub.f32 %v2218_v1, %v452_v22 }
  0x8d   : > { %v456_v23 = vpop.xlane.xlu0 %455 }
  0x8e   : > { %v457_v26 = vmul.f32 %v456_v23, %v2378_v18 }
  0x90   : > { %v459_v27 = vsub.f32 %v457_v26, %v458_v25 }
  0x92   : > { %v461_v28 = vadd.f32 1e-05, %v459_v27 }
  0x94   : > { %2094 = vrsqrt.f32 %v461_v28  ;;  %vm468_vm3 = vweird.f32 %v461_v28 }
  0x9a   : > { %v2095_v24 = vpop.eup %2094 }
  0x9b   : > { %v463_v29 = vmul.f32 %v2095_v24, %v461_v28  ;;  %vm469_vm2 = vweird.f32 %v2095_v24 }
  0x9c   : > { %vm470_vm4 = vmor %vm468_vm3, %vm469_vm2 }
  0x9d   : > { %v464_v30 = vmul.f32 %v2095_v24, %v463_v29 }
  0x9f   : > { %v465_v31 = vmul.f32 0.5, %v464_v30 }
  0xa1   : > { %v466_v32 = vsub.f32 1.5, %v465_v31 }
  0xa3   : > { %v467_v33 = vmul.f32 %v2095_v24, %v466_v32 }
  0xa5   : > { %v471_v36 = vsel %vm470_vm4, %v2095_v24, %v467_v33 }
  0xa6   : > { %v472_v37 = vmul.f32 %v471_v36, %v460_v34 }
  0xa8   : > { %v476_v39 = vmul.f32 %v2086_v35, %v472_v37 }
  0xaa   : > { %v480_v40 = vadd.f32 %v2087_v38, %v476_v39 }
  0xac   : > { %v481_v41 = vpack.c.bf16 %v480_v40, %v480_v40 }
  0xae   : > { %658 = vmatmul.bf16.vlgmr.msra.gmra.mxu0 %v481_v41  ;;  %671 = vmatmul.bf16.vlgmr.msra.gmra.mxu1 %v481_v41 }
  0xaf   : > { %684 = vmatmul.bf16.vlgmr.msra.gmra.mxu2 %v481_v41 }
 0x12b   : > { %v659_v45 = vpop.f32.mrf.mxu0  ;;  %v672_v46 = vpop.f32.mrf.mxu1 }
 0x12c   : > { %v660_v47 = vadd.f32 %v659_v45, %v516_v43  ;;  %v673_v48 = vadd.f32 %v672_v46, %v517_v44 }
 0x12e   : > { %v689_v49 = vpack.c.bf16 %v673_v48, %v660_v47 }
 0x130   : > { %696 = vrot.lane.b32.xlu2 %v689_v49, %s2127_s18  ;;  %692 = vrot.lane.b32.xlu1 %v689_v49, %s2128_s19  ;;  %v762_v2 = vrot.slane %v689_v49, 4 }
 0x132   : > { %v2398_v50 = vpop.f32.mrf.mxu2 }
 0x133   : > { %v661_v51 = vpop.f32.mrf.mxu0  ;;  %v674_v52 = vpop.f32.mrf.mxu1 }
 0x138   : > { %694 = vrot.lane.b32.xlu1 %v689_v49, %s2129_s20 }
 0x13a   : > { %v687_v53 = vpop.f32.mrf.mxu2 }
 0x18a   : > { %v697_v54 = vpop.permute.xlu2 %696 }
 0x18b   : > { %v710_v57 = vrot.slane %v697_v54, 4 }
 0x1a2   : > { %v693_v58 = vpop.permute.xlu1 %692 }
 0x1a3   : > { %v763_v60 = vrot.slane %v693_v58, 4  ;;  %v711_v61 = vsel %vm700_vm5, %v710_v57, %v693_v58 }
 0x1a4   : > { %v715_v0 = vperm.slane %v711_v61, %v2401_v59 }
 0x1a5   : > { %v779_v62 = vsel %vm700_vm5, %v697_v54, %v763_v60 }
 0x1a6   : > { %v783_v63 = vperm.slane %v779_v62, %v2401_v59  ;;  %v716_v5 = vrot.slane %v715_v0, 4  ;;  %v722_v30 = vshrl.u32 %v715_v0, 16 }
 0x1a8   : > { %v784_v3 = vrot.slane %v783_v63, 4  ;;  %v717_v13 = vsel %vm700_vm5, 0, %v716_v5  ;;  %v790_v17 = vshrl.u32 %v783_v63, 16 }
 0x1a9   : > { %v728_v22 = vshrl.u32 %v717_v13, 16 }
 0x1aa   : > { %v695_v4 = vpop.permute.xlu1 %694  ;;  %v785_v10 = vsel %vm700_vm5, 0, %v784_v3 }
 0x1ab   : > { %v699_v6 = vrot.slane %v695_v4, 4  ;;  %v769_v7 = vsel %vm700_vm5, %v695_v4, %v762_v2  ;;  %v796_v19 = vshrl.u32 %v785_v10, 16 }
 0x1ac   : > { %v773_v8 = vperm.slane %v769_v7, %v2401_v59 }
 0x1ad   : > { %v701_v9 = vsel %vm700_vm5, %v699_v6, %v689_v49 }
 0x1ae   : > { %v705_v11 = vperm.slane %v701_v9, %v2401_v59  ;;  %v774_v12 = vrot.slane %v773_v8, 4  ;;  %v789_v16 = vshrl.u32 %v773_v8, 16  ;;  %v788_v26 = vpack.i.b16 %v783_v63, %v773_v8 }
 0x1b0   : > { %v706_v14 = vrot.slane %v705_v11, 4  ;;  %v775_v15 = vsel %vm700_vm5, 0, %v774_v12  ;;  %v721_v25 = vshrl.u32 %v705_v11, 16  ;;  %v720_v31 = vpack.i.b16 %v715_v0, %v705_v11 }
 0x1b1   : > { %v794_v20 = vpack.i.b16 %v785_v10, %v775_v15  ;;  %v795_v21 = vshrl.u32 %v775_v15, 16  ;;  %v791_v32 = vpack.i.b16 %v790_v17, %v789_v16 }
 0x1b2   : > { %v707_v23 = vsel %vm700_vm5, 0, %v706_v14  ;;  %v723_v38 = vpack.i.b16 %v722_v30, %v721_v25 }
 0x1b3   : > { %v727_v27 = vshrl.u32 %v707_v23, 16  ;;  %v800_v28 = vrot.slane %v794_v20, 4  ;;  %v797_v24 = vpack.i.b16 %v796_v19, %v795_v21  ;;  %v726_v29 = vpack.i.b16 %v717_v13, %v707_v23 }
 0x1b4   : > { %v518_v23 = vperm.slane %v2392_v42, 2 }
 0x1b5   : > { %v801_v33 = vsel %vm700_vm5, %v800_v28, %v788_v26  ;;  %v810_v34 = vrot.slane %v797_v24, 4  ;;  %v729_v35 = vpack.i.b16 %v728_v22, %v727_v27  ;;  %v732_v36 = vrot.slane %v726_v29, 4 }
 0x1b6   : > { %v805_v37 = vperm.slane %v801_v33, %v2401_v59  ;;  %v686_v26 = vadd.f32 %v2398_v50, %v518_v23 }
 0x1b7   : > { %v811_v39 = vsel %vm700_vm5, %v810_v34, %v791_v32  ;;  %v733_v40 = vsel %vm700_vm5, %v732_v36, %v720_v31  ;;  %v742_v41 = vrot.slane %v729_v35, 4 }
 0x1b8   : > { %v815_v43 = vperm.slane %v811_v39, %v2401_v59  ;;  %v806_v44 = vrot.slane %v805_v37, 4  ;;  %v821_v45 = vshrl.u32 %v805_v37, 16  ;;  %v737_v46 = vperm.slane %v733_v40, %v2401_v59 }
 0x1b9   : > { %v743_v47 = vsel %vm700_vm5, %v742_v41, %v723_v38  ;;  %v690_v24 = vpack.c.bf16 %v686_v26, %v686_v26 }
 0x1ba   : > { %v820_v48 = vpack.i.b16 %v815_v43, %v805_v37  ;;  %v822_v49 = vshrl.u32 %v815_v43, 16  ;;  %v807_v51 = vsel %vm700_vm5, 0, %v806_v44  ;;  %v816_v52 = vrot.slane %v815_v43, 4 }
 0x1bb   : > { %v747_v53 = vperm.slane %v743_v47, %v2401_v59  ;;  %v827_v57 = vshrl.u32 %v807_v51, 16  ;;  %v738_v61 = vrot.slane %v737_v46, 4  ;;  %v753_v11 = vshrl.u32 %v737_v46, 16 }
 0x1bc   : > { %v905_v54 = vsel %vm900_vm6, %v820_v48, 0  ;;  %v823_v55 = vpack.i.b16 %v822_v49, %v821_v45  ;;  %v817_v56 = vsel %vm700_vm5, 0, %v816_v52 }
 0x1bd   : > { %914 = vmatpush.bf16.xpose.msra.mxu3 %v905_v54  ;;  %v828_v58 = vshrl.u32 %v817_v56, 16  ;;  %v748_v62 = vrot.slane %v747_v53, 4  ;;  %v826_v0 = vpack.i.b16 %v817_v56, %v807_v51  ;;  %v752_v4 = vpack.i.b16 %v747_v53, %v737_v46 }
 0x1be   : > { %v924_v60 = vsel %vm900_vm6, %v823_v55, 0  ;;  %v739_v5 = vsel %vm700_vm5, 0, %v738_v61  ;;  %v754_v10 = vshrl.u32 %v747_v53, 16 }
 0x1bf   : > { %v829_v63 = vpack.i.b16 %v828_v58, %v827_v57  ;;  %v749_v2 = vsel %vm700_vm5, 0, %v748_v62  ;;  %v943_v7 = vsel %vm900_vm6, %v826_v0, 0  ;;  %v759_v8 = vshrl.u32 %v739_v5, 16 }
 0x1c0   : > { %v760_v6 = vshrl.u32 %v749_v2, 16  ;;  %v755_v12 = vpack.i.b16 %v754_v10, %v753_v11  ;;  %v758_v13 = vpack.i.b16 %v749_v2, %v739_v5 }
 0x1c1   : > { %v962_v3 = vsel %vm900_vm6, %v829_v63, 0 }
 0x1c2   : > { %971 = vmatpush.bf16.xpose.msrb.mxu0 %v962_v3  ;;  %v761_v9 = vpack.i.b16 %v760_v6, %v759_v8 }
 0x1c4   : > { %1836 = vmatmul.msk.bf16.vlgmr.msra.gmra.mxu3 %vm900_vm6, %v752_v4 }
 0x1c5   : > { %933 = vmatpush.bf16.xpose.msrb.mxu3 %v924_v60 }
 0x1c9   : > { %1839 = vmatmul.msk.bf16.vlgmr.msrb.gmra.mxu0 %vm900_vm6, %v761_v9 }
 0x1cd   : > { %952 = vmatpush.bf16.xpose.msra.mxu3 %v943_v7 }
 0x1d4   : > { %1837 = vmatmul.msk.bf16.vlgmr.msrb.gmra.mxu3 %vm900_vm6, %v755_v12 }
 0x1e4   : > { %1838 = vmatmul.msk.bf16.vlgmr.msra.gmra.mxu3 %vm900_vm6, %v758_v13 }
 0x246   : > { %v973_v14 = vpop.f32.mrf.mxu0 }
 0x247   : > { %v980_v15 = vmul.f32 0.17677669, %v973_v14  ;;  %v916_v16 = vpop.f32.mrf.mxu3 }
 0x248   : > { %v977_v17 = vmul.f32 0.17677669, %v916_v16 }
 0x249   : > { %v991_v19 = vsel %vm981_vm7, %v980_v15, -inf }
 0x24a   : > { %992 = vmax.xlane.f32.xlu0 %v991_v19  ;;  %v982_v20 = vsel %vm981_vm7, %v977_v17, -inf }
 0x24b   : > { %983 = vmax.xlane.f32.xlu2 %v982_v20 }
 0x24e   : > { %v975_v21 = vpop.f32.mrf.mxu0 }
 0x24f   : > { %v918_v22 = vpop.f32.mrf.mxu3 }
 0x257   : > { %v935_v25 = vpop.f32.mrf.mxu3 }
 0x258   : > { %v978_v27 = vmul.f32 0.17677669, %v935_v25 }
 0x25a   : > { %v985_v28 = vsel %vm981_vm7, %v978_v27, -inf }
 0x25b   : > { %986 = vmax.xlane.f32.xlu1 %v985_v28 }
 0x25e   : > { %833 = vrot.lane.b32.xlu0 %v690_v24, %s2129_s20 }
 0x25f   : > { %v937_v29 = vpop.f32.mrf.mxu3 }
 0x263   : > { %835 = vrot.lane.b32.xlu2 %v690_v24, %s2127_s18 }
 0x267   : > { %v954_v30 = vpop.f32.mrf.mxu3 }
 0x268   : > { %v979_v32 = vmul.f32 0.17677669, %v954_v30 }
 0x26a   : > { %v988_v33 = vsel %vm981_vm7, %v979_v32, -inf }
 0x26f   : > { %v956_v31 = vpop.f32.mrf.mxu3 }
 0x288   : > { %989 = vmax.xlane.f32.xlu0 %v988_v33 }
 0x29c   : > { %831 = vrot.lane.b32.xlu0 %v690_v24, %s2128_s19 }
 0x2bd   : > { %v993_v42 = vpop.xlane.xlu0 %992 }
 0x2be   : > { %v997_v50 = vsub.f32 %v980_v15, %v993_v42  ;;  %v984_v34 = vpop.xlane.xlu2 %983 }
 0x2bf   : > { %v994_v35 = vsub.f32 %v977_v17, %v984_v34 }
 0x2c0   : > { %v1004_v36 = vmul.f32 1.442695, %v997_v50 }
 0x2c1   : > { %v998_v37 = vmul.f32 1.442695, %v994_v35 }
 0x2c2   : > { %2096 = vpow2.f32 %v1004_v36 }
 0x2c3   : > { %2098 = vpow2.f32 %v998_v37 }
 0x2c6   : > { %v836_v57 = vpop.permute.xlu2 %835 }
 0x2c7   : > { %v848_v60 = vrot.slane %v836_v57, 4 }
 0x2c8   : > { %v2444_v38 = vpop.eup %2096 }
 0x2c9   : > { %v2446_v39 = vpop.eup %2098  ;;  %v1015_v40 = vsel %vm981_vm7, %v2444_v38, 0.0 }
 0x2ca   : > { %1016 = vadd.xlane.f32.xlu2 %v1015_v40  ;;  %v1006_v41 = vsel %vm981_vm7, %v2446_v39, 0.0 }
 0x2cb   : > { %1007 = vadd.xlane.f32.xlu1 %v1006_v41 }
 0x2ce   : > { %v987_v43 = vpop.xlane.xlu1 %986 }
 0x2cf   : > { %v995_v44 = vsub.f32 %v978_v27, %v987_v43 }
 0x2d0   : > { %v834_v48 = vpop.permute.xlu0 %833 }
 0x2d1   : > { %v1000_v45 = vmul.f32 1.442695, %v995_v44  ;;  %v838_v53 = vrot.slane %v834_v48, 4 }
 0x2d3   : > { %2100 = vpow2.f32 %v1000_v45  ;;  %v839_v55 = vsel %vm700_vm5, %v838_v53, %v690_v24 }
 0x2d4   : > { %v843_v58 = vperm.slane %v839_v55, %v2401_v59 }
 0x2d6   : > { %v844_v61 = vrot.slane %v843_v58, 4  ;;  %v859_v9 = vshrl.u32 %v843_v58, 16 }
 0x2d8   : > { %v845_v2 = vsel %vm700_vm5, 0, %v844_v61  ;;  %v2131_v61 = vmov 1983009808  }
 0x2d9   : > { %v2452_v46 = vpop.eup %2100  ;;  %v865_v5 = vshrl.u32 %v845_v2, 16 }
 0x2da   : > { %v1009_v47 = vsel %vm981_vm7, %v2452_v46, 0.0 }
 0x2db   : > { %1010 = vadd.xlane.f32.xlu1 %v1009_v47 }
 0x2fb   : > { %v990_v49 = vpop.xlane.xlu0 %989 }
 0x2fc   : > { %v996_v51 = vsub.f32 %v979_v32, %v990_v49 }
 0x2fe   : > { %v1002_v52 = vmul.f32 1.442695, %v996_v51 }
 0x300   : > { %2102 = vpow2.f32 %v1002_v52 }
 0x306   : > { %v2456_v54 = vpop.eup %2102 }
 0x307   : > { %v1012_v56 = vsel %vm981_vm7, %v2456_v54, 0.0 }
 0x308   : > { %1013 = vadd.xlane.f32.xlu0 %v1012_v56 }
 0x30e   : > { %v832_v62 = vpop.permute.xlu0 %831 }
 0x30f   : > { %v849_v63 = vsel %vm700_vm5, %v848_v60, %v832_v62  ;;  %v1112_v62 = vunpack.c.l.s4 %v2131_v61  ;;  %v1936_v61 = vld [vmem:[%s2746_s9 + $0x78] sm:$0xf0] }
 0x310   : > { %v853_v0 = vperm.slane %v849_v63, %v2401_v59 }
 0x311   : > { %v1113_v63 = vunpack.c.0.s8 %v1112_v62 }
 0x312   : > { %v854_v3 = vrot.slane %v853_v0, 4  ;;  %v860_v6 = vshrl.u32 %v853_v0, 16  ;;  %v858_v10 = vpack.i.b16 %v853_v0, %v843_v58 }
 0x314   : > { %v855_v4 = vsel %vm700_vm5, 0, %v854_v3  ;;  %v861_v13 = vpack.i.b16 %v860_v6, %v859_v9 }
 0x315   : > { %v864_v7 = vpack.i.b16 %v855_v4, %v845_v2  ;;  %v866_v8 = vshrl.u32 %v855_v4, 16 }
 0x317   : > { %v867_v11 = vpack.i.b16 %v866_v8, %v865_v5  ;;  %v870_v12 = vrot.slane %v864_v7, 4  ;;  %v2039_v5 = vld [vmem:[%s2742_s5 + $0x38] sm:$0xff]  ;;  %v2038_v8 = vld [vmem:[%s2742_s5 + $0x30] sm:$0xff] }
 0x318   : > { %1250 = vmatpush.bf16.msrb.mxu1 %v2039_v5  ;;  %v2051_v5 = vld [vmem:[%s2746_s9 + $0x54] sm:$0xf0] }
 0x319   : > { %v871_v14 = vsel %vm700_vm5, %v870_v12, %v858_v10  ;;  %v880_v15 = vrot.slane %v867_v11, 4 }
 0x31a   : > { %v875_v16 = vperm.slane %v871_v14, %v2401_v59 }
 0x31b   : > { %v881_v17 = vsel %vm700_vm5, %v880_v15, %v861_v13  ;;  %v2037_v15 = vld [vmem:[%s2742_s5 + $0x28] sm:$0xff] }
 0x31c   : > { %v885_v19 = vperm.slane %v881_v17, %v2401_v59  ;;  %v876_v20 = vrot.slane %v875_v16, 4  ;;  %v891_v21 = vshrl.u32 %v875_v16, 16  ;;  %1251 = vmatpush.bf16.msrb.mxu1 %v2038_v8  ;;  %v1920_v8 = vld [vmem:[%s2746_s9 + $0x58] sm:$0xf0] }
 0x31e   : > { %v890_v22 = vpack.i.b16 %v885_v19, %v875_v16  ;;  %v892_v23 = vshrl.u32 %v885_v19, 16  ;;  %v877_v25 = vsel %vm700_vm5, 0, %v876_v20  ;;  %v886_v26 = vrot.slane %v885_v19, 4 }
 0x31f   : > { %v897_v30 = vshrl.u32 %v877_v25, 16 }
 0x320   : > { %v1036_v27 = vsel %vm1034_vm8, %v890_v22, 0  ;;  %v893_v28 = vpack.i.b16 %v892_v23, %v891_v21  ;;  %v887_v24 = vsel %vm700_vm5, 0, %v886_v26  ;;  %1252 = vmatpush.bf16.msrb.mxu1 %v2037_v15  ;;  %v2036_v21 = vld [vmem:[%s2742_s5 + $0x20] sm:$0xff] }
 0x321   : > { %1045 = vmatpush.bf16.msrb.mxu2 %v1036_v27  ;;  %v896_v29 = vpack.i.b16 %v887_v24, %v877_v25  ;;  %v898_v31 = vshrl.u32 %v887_v24, 16  ;;  %v2035_v24 = vld [vmem:[%s2742_s5 + $0x18] sm:$0xff] }
 0x322   : > { %v1055_v32 = vsel %vm1034_vm8, %v893_v28, 0 }
 0x323   : > { %v1074_v33 = vsel %vm1034_vm8, %v896_v29, 0  ;;  %v899_v42 = vpack.i.b16 %v898_v31, %v897_v30 }
 0x324   : > { %1083 = vmatpush.bf16.msrb.mxu3 %v1074_v33  ;;  %1253 = vmatpush.bf16.msrb.mxu1 %v2036_v21  ;;  %v1904_v21 = vld [vmem:[%s2746_s9 + $0x38] sm:$0xf0] }
 0x325   : > { %1064 = vmatpush.bf16.msra.mxu2 %v1055_v32  ;;  %v1093_v50 = vsel %vm1034_vm8, %v899_v42, 0 }
 0x326   : > { %1102 = vmatpush.bf16.msra.mxu0 %v1093_v50 }
 0x328   : > { %1254 = vmatpush.bf16.msrb.mxu1 %v2035_v24 }
 0x33d   : > { %v1017_v34 = vpop.xlane.xlu2 %1016 }
 0x33e   : > { %2104 = vrcp.f32 %v1017_v34  ;;  %v1008_v35 = vpop.xlane.xlu1 %1007 }
 0x33f   : > { %2106 = vrcp.f32 %v1008_v35 }
 0x344   : > { %v2105_v36 = vpop.eup %2104 }
 0x345   : > { %v2107_v37 = vpop.eup %2106  ;;  %v1025_v40 = vmul.f32 %v2105_v36, %v2444_v38  ;;  %v2034_v36 = vld [vmem:[%s2742_s5 + $0x10] sm:$0xff] }
 0x346   : > { %v1022_v41 = vmul.f32 %v2107_v37, %v2446_v39  ;;  %1255 = vmatpush.bf16.msrb.mxu1 %v2034_v36  ;;  %v2032_v37 = vld [vmem:[%s2742_s5] sm:$0xff]  ;;  %v1880_v36 = vld [vmem:[%s2746_s9 + $0x8] sm:$0xf0] }
 0x347   : > { %v1029_v43 = vpack.c.bf16 %v1025_v40, %v1025_v40 }
 0x348   : > { %v1026_v44 = vpack.c.bf16 %v1022_v41, %v1022_v41 }
 0x349   : > { %1843 = vmatmul.msk.bf16.vlgmr.msra.gmra.mxu0 %vm1030_vm9, %v1029_v43 }
 0x34a   : > { %1840 = vmatmul.msk.bf16.vlgmr.msrb.gmra.mxu2 %vm1030_vm9, %v1026_v44 }
 0x34e   : > { %v1011_v45 = vpop.xlane.xlu1 %1010 }
 0x34f   : > { %2108 = vrcp.f32 %v1011_v45 }
 0x355   : > { %v2109_v47 = vpop.eup %2108 }
 0x356   : > { %v1023_v48 = vmul.f32 %v2109_v47, %v2452_v46 }
 0x358   : > { %v1027_v49 = vpack.c.bf16 %v1023_v48, %v1023_v48 }
 0x35a   : > { %1841 = vmatmul.msk.bf16.vlgmr.msra.gmra.mxu2 %vm1030_vm9, %v1027_v49  ;;  %v2088_v49 = vld [vmem:[%s2743_s6] ss:$0 sm:$0xff] }
 0x37b   : > { %v1014_v51 = vpop.xlane.xlu0 %1013 }
 0x37c   : > { %2110 = vrcp.f32 %v1014_v51 }
 0x382   : > { %v2111_v38 = vpop.eup %2110 }
 0x383   : > { %v1024_v39 = vmul.f32 %v2111_v38, %v2456_v54 }
 0x385   : > { %v1028_v52 = vpack.c.bf16 %v1024_v39, %v1024_v39 }
 0x387   : > { %1842 = vmatmul.msk.bf16.vlgmr.msrb.gmra.mxu3 %vm1030_vm9, %v1028_v52 }
 0x3c6   : > { %v1104_v53 = vpop.f32.mrf.mxu0 }
 0x3c7   : > { %v1115_v46 = vrot.slane %v1104_v53, 4 }
 0x3cd   : > { %v1047_v55 = vpop.f32.mrf.mxu2 }
 0x3ce   : > { %v1106_v56 = vpop.f32.mrf.mxu0 }
 0x3d5   : > { %v1049_v57 = vpop.f32.mrf.mxu2 }
 0x3d6   : > { %v1934_v57 = vld [vmem:[%s2746_s9 + $0x70] sm:$0xf] }
 0x3dd   : > { %v1066_v58 = vpop.f32.mrf.mxu2 }
 0x3de   : > { %v1116_v0 = vsel %vm700_vm5, %v1115_v46, %v1066_v58  ;;  %v2054_v58 = vld [vmem:[%s2746_s9 + $0x74] sm:$0xf]  ;;  %v1926_v46 = vld [vmem:[%s2746_s9 + $0x60] sm:$0xf] }
 0x3df   : > { %v1120_v2 = vperm.slane %v1116_v0, %v1113_v63  ;;  %v1939_v62 = vor.u32 %v2054_v58, %v1936_v61  ;;  %v2052_v0 = vld [vmem:[%s2746_s9 + $0x64] sm:$0xf]  ;;  %v2090_v58 = vld [vmem:[%s2745_s8] ss:$0 sm:$0xff] }
 0x3e1   : > { %v1121_v6 = vrot.slane %v1120_v2, 4  ;;  %1414 = vmatpush.bf16.msra.mxu3 %v1939_v62 }
 0x3e5   : > { %v1068_v60 = vpop.f32.mrf.mxu2 }
 0x40a   : > { %v1085_v3 = vpop.f32.mrf.mxu3 }
 0x40b   : > { %v1108_v4 = vrot.slane %v1085_v3, 4  ;;  %v1928_v3 = vld [vmem:[%s2746_s9 + $0x68] sm:$0xf0] }
 0x40d   : > { %v1110_v54 = vsel %vm700_vm5, %v1108_v4, %v1047_v55  ;;  %v1931_v4 = vor.u32 %v2052_v0, %v1928_v3  ;;  %v1315_v0 = vld [vmem:[%s2747_s10] sm:$0x3] }
 0x40e   : > { %v1114_v7 = vperm.slane %v1110_v54, %v1113_v63  ;;  %v1918_v54 = vld [vmem:[%s2746_s9 + $0x50] sm:$0xf]  ;;  %v1318_v3 = vperm.slane %v1315_v0, 1 }
 0x40f   : > { %1415 = vmatpush.bf16.msra.mxu3 %v1931_v4  ;;  %v2062_v4 = vld [vmem:[%s2748_s11 + $0x30] sm:$0xff] }
 0x410   : > { %v1122_v9 = vsel %vm700_vm5, %v1121_v6, %v1114_v7  ;;  %v1123_v10 = vrot.slane %v1114_v7, 4  ;;  %v2050_v6 = vld [vmem:[%s2746_s9 + $0x54] sm:$0xf]  ;;  %v1919_v7 = vor.u32 %v2051_v5, %v1918_v54 }
 0x411   : > { %v1128_v11 = vperm.slane %v1122_v9, %v2401_v59  ;;  %v1923_v9 = vor.u32 %v2050_v6, %v1920_v8  ;;  %v2070_v54 = vld [vmem:[%s2748_s11 + $0x70] sm:$0xff] }
 0x412   : > { %v1124_v12 = vsel %vm700_vm5, %v1120_v2, %v1123_v10  ;;  %v1087_v13 = vpop.f32.mrf.mxu3  ;;  %v1910_v10 = vld [vmem:[%s2746_s9 + $0x40] sm:$0xf] }
 0x413   : > { %v1132_v14 = vperm.slane %v1124_v12, %v2401_v59  ;;  %v1133_v16 = vrot.slane %v1128_v11, 4  ;;  %1416 = vmatpush.bf16.msra.mxu3 %v1923_v9  ;;  %v2048_v12 = vld [vmem:[%s2746_s9 + $0x44] sm:$0xf]  ;;  %v2061_v9 = vld [vmem:[%s2748_s11 + $0x28] sm:$0xff] }
 0x415   : > { %v1135_v17 = vrot.slane %v1132_v14, 4  ;;  %v1134_v25 = vsel %vm700_vm5, 0.0, %v1133_v16  ;;  %v1912_v14 = vld [vmem:[%s2746_s9 + $0x48] sm:$0xf0]  ;;  %v1902_v16 = vld [vmem:[%s2746_s9 + $0x30] sm:$0xf] }
 0x416   : > { %v1915_v15 = vor.u32 %v2048_v12, %v1912_v14 }
 0x417   : > { %v1136_v19 = vsel %vm700_vm5, 0.0, %v1135_v17  ;;  %v1137_v20 = vsel %vm700_vm5, %v1135_v17, %v1128_v11  ;;  %v2049_v11 = vld [vmem:[%s2746_s9 + $0x44] sm:$0xf0]  ;;  %v2047_v17 = vld [vmem:[%s2746_s9 + $0x34] sm:$0xf0] }
 0x418   : > { %v1142_v22 = vrot.slane %v1136_v19, 4  ;;  %v1141_v23 = vperm.slane %v1137_v20, %v1113_v63  ;;  %v1911_v13 = vor.u32 %v2049_v11, %v1910_v10  ;;  %1417 = vmatpush.bf16.msra.mxu3 %v1915_v15  ;;  %v2046_v19 = vld [vmem:[%s2746_s9 + $0x34] sm:$0xf]  ;;  %v1903_v20 = vor.u32 %v2047_v17, %v1902_v16  ;;  %v2069_v10 = vld [vmem:[%s2748_s11 + $0x68] sm:$0xff]  ;;  %v2060_v15 = vld [vmem:[%s2748_s11 + $0x20] sm:$0xff] }
 0x419   : > { %v2068_v16 = vld [vmem:[%s2748_s11 + $0x60] sm:$0xff] }
 0x41a   : > { %v1143_v26 = vsel %vm700_vm5, %v1142_v22, %v1134_v25  ;;  %v1150_v27 = vrot.slane %v1141_v23, 4  ;;  %v1907_v22 = vor.u32 %v2046_v19, %v1904_v21  ;;  %v2045_v25 = vld [vmem:[%s2746_s9 + $0x24] sm:$0xf0] }
 0x41b   : > { %v1147_v28 = vperm.slane %v1143_v26, %v1113_v63  ;;  %v2053_v63 = vld [vmem:[%s2746_s9 + $0x64] sm:$0xf0]  ;;  %v2044_v26 = vld [vmem:[%s2746_s9 + $0x24] sm:$0xf] }
 0x41c   : > { %v1927_v2 = vor.u32 %v2053_v63, %v1926_v46  ;;  %1418 = vmatpush.bf16.msra.mxu3 %v1907_v22  ;;  %v2063_v46 = vld [vmem:[%s2748_s11 + $0x38] sm:$0xff] }
 0x41d   : > { %v1151_v29 = vsel %vm700_vm5, %v1147_v28, %v1150_v27  ;;  %v1148_v30 = vrot.slane %v1147_v28, 4  ;;  %v1896_v28 = vld [vmem:[%s2746_s9 + $0x28] sm:$0xf0]  ;;  %v2071_v63 = vld [vmem:[%s2748_s11 + $0x78] sm:$0xff]  ;;  %1649 = vmatpush.bf16.msrb.mxu0 %v2063_v46 }
 0x41e   : > { %v1159_v31 = vperm.slane %v1151_v29, %v2401_v59  ;;  %v1899_v24 = vor.u32 %v2044_v26, %v1896_v28  ;;  %v1886_v29 = vld [vmem:[%s2746_s9 + $0x10] sm:$0xf]  ;;  %v2067_v28 = vld [vmem:[%s2748_s11 + $0x58] sm:$0xff] }
 0x41f   : > { %v1149_v32 = vsel %vm700_vm5, %v1148_v30, %v1141_v23  ;;  %v1894_v23 = vld [vmem:[%s2746_s9 + $0x20] sm:$0xf]  ;;  %v2043_v30 = vld [vmem:[%s2746_s9 + $0x14] sm:$0xf0] }
 0x420   : > { %v1162_v33 = vrot.slane %v1159_v31, 4  ;;  %v1155_v42 = vperm.slane %v1149_v32, %v2401_v59  ;;  %v2033_v59 = vld [vmem:[%s2742_s5 + $0x8] sm:$0xff]  ;;  %v1895_v27 = vor.u32 %v2045_v25, %v1894_v23  ;;  %1419 = vmatpush.bf16.msra.mxu3 %v1899_v24  ;;  %v1887_v32 = vor.u32 %v2043_v30, %v1886_v29 }
 0x421   : > { %1256 = vmatpush.bf16.msrb.mxu1 %v2033_v59  ;;  %1650 = vmatpush.bf16.msrb.mxu0 %v2062_v4 }
 0x422   : > { %v1163_v50 = vsel %vm700_vm5, 0.0, %v1162_v33  ;;  %v1160_v34 = vrot.slane %v1155_v42, 4  ;;  %v1888_v33 = vld [vmem:[%s2746_s9 + $0x18] sm:$0xf0] }
 0x423   : > { %1173 = vrot.lane.b32.xlu0 %v1163_v50, %s2128_s19  ;;  %v2041_v50 = vld [vmem:[%s2746_s9 + $0x4] sm:$0xf0] }
 0x424   : > { %v1161_v35 = vsel %vm700_vm5, 0.0, %v1160_v34 }
 0x425   : > { %1165 = vrot.lane.b32.xlu1 %v1161_v35, %s2127_s18  ;;  %1257 = vmatpush.bf16.msrb.mxu1 %v2032_v37  ;;  %v2040_v35 = vld [vmem:[%s2746_s9 + $0x4] sm:$0xf] }
 0x426   : > { %v1883_v37 = vor.u32 %v2040_v35, %v1880_v36  ;;  %1651 = vmatpush.bf16.msrb.mxu0 %v2061_v9 }
 0x429   : > { %1662 = vmatpush.bf16.msra.mxu1 %v2071_v63 }
 0x42a   : > { %1652 = vmatpush.bf16.msrb.mxu0 %v2060_v15 }
 0x42d   : > { %1169 = vrot.lane.b32.xlu1 %v1159_v31, %s2129_s20  ;;  %v2042_v31 = vld [vmem:[%s2746_s9 + $0x14] sm:$0xf]  ;;  %1663 = vmatpush.bf16.msra.mxu1 %v2070_v54 }
 0x42e   : > { %v1891_v34 = vor.u32 %v2042_v31, %v1888_v33 }
 0x430   : > { %1420 = vmatpush.bf16.msra.mxu3 %v1891_v34  ;;  %v2066_v34 = vld [vmem:[%s2748_s11 + $0x50] sm:$0xff] }
 0x431   : > { %1664 = vmatpush.bf16.msra.mxu1 %v2069_v10 }
 0x434   : > { %1421 = vmatpush.bf16.msra.mxu3 %v1883_v37 }
 0x435   : > { %1665 = vmatpush.bf16.msra.mxu1 %v2068_v16 }
 0x439   : > { %1666 = vmatpush.bf16.msra.mxu1 %v2067_v28 }
 0x43d   : > { %1667 = vmatpush.bf16.msra.mxu1 %v2066_v34 }
 0x495   : > { %v1174_v44 = vpop.permute.xlu0 %1173 }
 0x497   : > { %v1166_v40 = vpop.permute.xlu1 %1165 }
 0x498   : > { %v1176_v41 = vsel %vm900_vm6, %v1155_v42, %v1166_v40  ;;  %v1878_v42 = vld [vmem:[%s2746_s9] sm:$0xf] }
 0x499   : > { %v1879_v59 = vor.u32 %v2041_v50, %v1878_v42  ;;  %v2058_v50 = vld [vmem:[%s2748_s11 + $0x10] sm:$0xff] }
 0x49f   : > { %v1170_v43 = vpop.permute.xlu1 %1169 }
 0x4a0   : > { %v1178_v45 = vsel %vm1177_vm10, %v1176_v41, %v1170_v43 }
 0x4a1   : > { %v1180_v47 = vsel %vm1179_vm11, %v1178_v45, %v1174_v44 }
 0x4a2   : > { %v1181_v48 = vpack.c.bf16 %v1180_v47, %v1180_v47 }
 0x4a4   : > { %1258 = vmatmul.bf16.vlgmr.msrb.gmra.mxu1 %v1181_v48 }
 0x521   : > { %v1259_v51 = vpop.f32.mrf.mxu1 }
 0x522   : > { %v1260_v38 = vadd.f32 %v2088_v49, %v1259_v51 }
 0x524   : > { %v2532_v39 = vadd.f32 %v1260_v38, %v2218_v1  ;;  %v2055_v1 = vld [vmem:[%s2746_s9 + $0x74] sm:$0xf0] }
 0x525   : > { %v1935_v60 = vor.u32 %v2055_v1, %v1934_v57  ;;  %v2089_v57 = vld [vmem:[%s2744_s7] ss:$0 sm:$0xff] }
 0x526   : > { %v1266_v52 = vsel %vm441_vm0, %v2532_v39, 0.0  ;;  %v1270_v53 = vmul.f32 %v2532_v39, %v2532_v39 }
 0x527   : > { %1267 = vadd.xlane.f32.xlu1 %v1266_v52  ;;  %1401 = vmatpush.bf16.msrb.mxu2 %v1935_v60 }
 0x528   : > { %v1271_v55 = vsel %vm441_vm0, %v1270_v53, 0.0 }
 0x529   : > { %v1261_v56 = vpop.f32.mrf.mxu1  ;;  %1272 = vadd.xlane.f32.xlu2 %v1271_v55 }
 0x52b   : > { %1402 = vmatpush.bf16.msrb.mxu2 %v1927_v2  ;;  %v1317_v2 = vperm.slane %v1315_v0, 0 }
 0x52f   : > { %1403 = vmatpush.bf16.msrb.mxu2 %v1919_v7 }
 0x533   : > { %1404 = vmatpush.bf16.msrb.mxu2 %v1911_v13 }
 0x537   : > { %1405 = vmatpush.bf16.msrb.mxu2 %v1903_v20 }
 0x53b   : > { %1406 = vmatpush.bf16.msrb.mxu2 %v1895_v27  ;;  %v2059_v27 = vld [vmem:[%s2748_s11 + $0x18] sm:$0xff] }
 0x53c   : > { %1653 = vmatpush.bf16.msrb.mxu0 %v2059_v27 }
 0x53f   : > { %1407 = vmatpush.bf16.msrb.mxu2 %v1887_v32 }
 0x540   : > { %1654 = vmatpush.bf16.msrb.mxu0 %v2058_v50 }
 0x543   : > { %1408 = vmatpush.bf16.msrb.mxu2 %v1879_v59 }
 0x59a   : > { %v1268_v40 = vpop.xlane.xlu1 %1267 }
 0x59b   : > { %v1269_v41 = vmul.f32 %v1268_v40, %v2378_v18 }
 0x59c   : > { %v1273_v43 = vpop.xlane.xlu2 %1272 }
 0x59d   : > { %v1275_v44 = vmul.f32 %v1269_v41, %v1269_v41  ;;  %v1274_v45 = vmul.f32 %v1273_v43, %v2378_v18  ;;  %v1277_v56 = vsub.f32 %v2532_v39, %v1269_v41  ;;  %v2057_v43 = vld [vmem:[%s2748_s11 + $0x8] sm:$0xff] }
 0x59e   : > { %1655 = vmatpush.bf16.msrb.mxu0 %v2057_v43 }
 0x59f   : > { %v1276_v47 = vsub.f32 %v1274_v45, %v1275_v44  ;;  %v2065_v44 = vld [vmem:[%s2748_s11 + $0x48] sm:$0xff] }
 0x5a0   : > { %1668 = vmatpush.bf16.msra.mxu1 %v2065_v44 }
 0x5a1   : > { %v1278_v48 = vadd.f32 1e-05, %v1276_v47 }
 0x5a3   : > { %2112 = vrsqrt.f32 %v1278_v48  ;;  %vm1285_vm13 = vweird.f32 %v1278_v48 }
 0x5a9   : > { %v2113_v49 = vpop.eup %2112 }
 0x5aa   : > { %v1280_v51 = vmul.f32 %v2113_v49, %v1278_v48  ;;  %vm1286_vm12 = vweird.f32 %v2113_v49 }
 0x5ab   : > { %vm1287_vm14 = vmor %vm1285_vm13, %vm1286_vm12 }
 0x5ac   : > { %v1281_v38 = vmul.f32 %v2113_v49, %v1280_v51 }
 0x5ae   : > { %v1282_v52 = vmul.f32 0.5, %v1281_v38 }
 0x5b0   : > { %v1283_v53 = vsub.f32 1.5, %v1282_v52  ;;  %v2056_v52 = vld [vmem:[%s2748_s11] sm:$0xff] }
 0x5b1   : > { %1656 = vmatpush.bf16.msrb.mxu0 %v2056_v52 }
 0x5b2   : > { %v1284_v55 = vmul.f32 %v2113_v49, %v1283_v53  ;;  %v2064_v53 = vld [vmem:[%s2748_s11 + $0x40] sm:$0xff] }
 0x5b3   : > { %1669 = vmatpush.bf16.msra.mxu1 %v2064_v53 }
 0x5b4   : > { %v1288_v18 = vsel %vm1287_vm14, %v2113_v49, %v1284_v55 }
 0x5b5   : > { %v1289_v1 = vmul.f32 %v1288_v18, %v1277_v56 }
 0x5b7   : > { %v1293_v60 = vmul.f32 %v2089_v57, %v1289_v1 }
 0x5b9   : > { %v1297_v61 = vadd.f32 %v2090_v58, %v1293_v60 }
 0x5bb   : > { %v1298_v62 = vpack.c.bf16 %v1297_v61, %v1297_v61 }
 0x5bd   : > { %1409 = vmatmul.bf16.vlgmr.msrb.gmra.mxu2 %v1298_v62  ;;  %1422 = vmatmul.bf16.vlgmr.msra.gmra.mxu3 %v1298_v62 }
 0x640   : > { %v1410_v5 = vpop.f32.mrf.mxu2  ;;  %v1423_v6 = vpop.f32.mrf.mxu3 }
 0x641   : > { %v2659_v7 = vadd.f32 %v1410_v5, %v1317_v2  ;;  %v2661_v8 = vadd.f32 %v1423_v6, %v1318_v3 }
 0x643   : > { %v2670_v11 = vmul.f32 0.70710677, %v2659_v7  ;;  %v2673_v12 = vmul.f32 0.70710677, %v2661_v8 }
 0x645   : > { %v1431_v13 = vmul.f32 %v2670_v11, %v2670_v11  ;;  %v1471_v14 = vmul.f32 %v2673_v12, %v2673_v12 }
 0x647   : > { %v1432_v17 = vmin.f32 %v1431_v13, 16.0  ;;  %v2685_v19 = vmin.f32 %v1471_v14, 16.0 }
 0x648   : > { %v1412_v20 = vpop.f32.mrf.mxu2  ;;  %v1425_v21 = vpop.f32.mrf.mxu3 }
 0x649   : > { %v1433_v22 = vmul.f32 2.1237322e-06, %v1432_v17  ;;  %v1444_v23 = vmul.f32 3.8918573e-05, %v1432_v17  ;;  %v1473_v25 = vmul.f32 2.1237322e-06, %v2685_v19 }
 0x64a   : > { %v1484_v26 = vmul.f32 3.8918573e-05, %v2685_v19 }
 0x64b   : > { %v1434_v24 = vadd.f32 0.00028619796, %v1433_v22  ;;  %v1445_v29 = vadd.f32 0.001143296, %v1444_v23  ;;  %v1474_v30 = vadd.f32 0.00028619796, %v1473_v25 }
 0x64c   : > { %v1485_v31 = vadd.f32 0.001143296, %v1484_v26 }
 0x64d   : > { %v1435_v32 = vmul.f32 %v1434_v24, %v1432_v17  ;;  %v1446_v33 = vmul.f32 %v1445_v29, %v1432_v17  ;;  %v1475_v42 = vmul.f32 %v1474_v30, %v2685_v19 }
 0x64e   : > { %v1486_v35 = vmul.f32 %v1485_v31, %v2685_v19 }
 0x64f   : > { %v1436_v36 = vadd.f32 0.0036580483, %v1435_v32  ;;  %v1447_v59 = vadd.f32 0.014752088, %v1446_v33  ;;  %v1476_v41 = vadd.f32 0.0036580483, %v1475_v42 }
 0x650   : > { %v1487_v37 = vadd.f32 0.014752088, %v1486_v35  ;;  %v1427_v35 = vmul.f32 0.5, %v2659_v7 }
 0x651   : > { %v1448_v40 = vmul.f32 %v1447_v59, %v1432_v17  ;;  %v1437_v47 = vmul.f32 %v1436_v36, %v1432_v17  ;;  %v1477_v38 = vmul.f32 %v1476_v41, %v2685_v19 }
 0x652   : > { %v1488_v45 = vmul.f32 %v1487_v37, %v2685_v19 }
 0x653   : > { %v1449_v48 = vadd.f32 0.112945676, %v1448_v40  ;;  %v1438_v56 = vadd.f32 0.05243302, %v1437_v47  ;;  %v1478_v58 = vadd.f32 0.05243302, %v1477_v38 }
 0x654   : > { %v1489_v49 = vadd.f32 0.112945676, %v1488_v45 }
 0x655   : > { %v1450_v51 = vmul.f32 %v1449_v48, %v1432_v17  ;;  %v1439_v61 = vmul.f32 %v1438_v56, %v1432_v17  ;;  %v1479_v63 = vmul.f32 %v1478_v58, %v2685_v19 }
 0x656   : > { %v1490_v55 = vmul.f32 %v1489_v49, %v2685_v19 }
 0x657   : > { %v1451_v57 = vadd.f32 0.4994258, %v1450_v51  ;;  %v1440_v0 = vadd.f32 0.18741608, %v1439_v61  ;;  %v1480_v2 = vadd.f32 0.18741608, %v1479_v63 }
 0x658   : > { %v1491_v18 = vadd.f32 0.4994258, %v1490_v55 }
 0x659   : > { %v1452_v1 = vmul.f32 %v1451_v57, %v1432_v17  ;;  %v1441_v4 = vmul.f32 %v1440_v0, %v1432_v17  ;;  %v1481_v6 = vmul.f32 %v1480_v2, %v2685_v19 }
 0x65a   : > { %v1492_v60 = vmul.f32 %v1491_v18, %v2685_v19 }
 0x65b   : > { %v1453_v62 = vadd.f32 1.0, %v1452_v1  ;;  %v1442_v13 = vadd.f32 1.1283791, %v1441_v4  ;;  %v1482_v22 = vadd.f32 1.1283791, %v1481_v6 }
 0x65c   : > { %v1493_v46 = vadd.f32 1.0, %v1492_v60 }
 0x65d   : > { %2114 = vrcp.f32 %v1453_v62  ;;  %v1465_v14 = vand.u32 2147483648, %v1453_v62  ;;  %v1463_v20 = vand.u32 2147483647, %v1453_v62  ;;  %vm1459_vm1 = vweird.f32 %v1453_v62 }
 0x65e   : > { %2116 = vrcp.f32 %v1493_v46  ;;  %v1505_v21 = vand.u32 2147483648, %v1493_v46  ;;  %v1503_v25 = vand.u32 2147483647, %v1493_v46  ;;  %vm1499_vm3 = vweird.f32 %v1493_v46 }
 0x65f   : > { %v1466_v17 = vor.u32 1.1754944e-38, %v1465_v14  ;;  %v1443_v19 = vmul.f32 %v1442_v13, %v2670_v11  ;;  %vm1464_vm4 = vcmp.eq.f32.partialorder %v1463_v20, 8.507059e+37  ;;  %v1483_v30 = vmul.f32 %v1482_v22, %v2673_v12  ;;  %v2091_v12 = vld [vmem:[%s2749_s12] ss:$0 sm:$0xff] }
 0x660   : > { %v1506_v24 = vor.u32 1.1754944e-38, %v1505_v21  ;;  %vm1504_vm6 = vcmp.eq.f32.partialorder %v1503_v25, 8.507059e+37  ;;  %v1428_v11 = vmul.f32 0.5, %v2661_v8 }
 0x663   : > { %v2115_v3 = vpop.eup %2114 }
 0x664   : > { %v2117_v54 = vpop.eup %2116  ;;  %v1455_v5 = vmul.f32 %v2115_v3, %v1453_v62  ;;  %vm1460_vm15 = vweird.f32 %v2115_v3 }
 0x665   : > { %v1495_v9 = vmul.f32 %v2117_v54, %v1493_v46  ;;  %vm1500_vm0 = vweird.f32 %v2117_v54  ;;  %vm1461_vm2 = vmor %vm1459_vm1, %vm1460_vm15 }
 0x666   : > { %v1456_v10 = vsub.f32 1.0, %v1455_v5  ;;  %vm1501_vm5 = vmor %vm1499_vm3, %vm1500_vm0 }
 0x667   : > { %v1496_v15 = vsub.f32 1.0, %v1495_v9 }
 0x668   : > { %v1457_v16 = vmul.f32 %v2115_v3, %v1456_v10 }
 0x669   : > { %v1497_v23 = vmul.f32 %v2117_v54, %v1496_v15 }
 0x66a   : > { %v1458_v26 = vadd.f32 %v2115_v3, %v1457_v16 }
 0x66b   : > { %v1498_v27 = vadd.f32 %v2117_v54, %v1497_v23 }
 0x66c   : > { %v1462_v28 = vsel %vm1461_vm2, %v2115_v3, %v1458_v26 }
 0x66d   : > { %v1467_v29 = vsel %vm1464_vm4, %v1466_v17, %v1462_v28  ;;  %v1502_v31 = vsel %vm1501_vm5, %v2117_v54, %v1498_v27 }
 0x66e   : > { %v1468_v32 = vmul.f32 %v1467_v29, %v1443_v19  ;;  %v1507_v33 = vsel %vm1504_vm6, %v1506_v24, %v1502_v31 }
 0x66f   : > { %v1508_v42 = vmul.f32 %v1507_v33, %v1483_v30 }
 0x670   : > { %v1940_v50 = vclamps-f32 %v1468_v32, 1.0 }
 0x671   : > { %v1941_v34 = vclamps-f32 %v1508_v42, 1.0 }
 0x672   : > { %v1511_v36 = vadd.f32 1.0, %v1940_v50 }
 0x673   : > { %v1512_v59 = vadd.f32 1.0, %v1941_v34 }
 0x674   : > { %v1513_v37 = vmul.f32 %v1511_v36, %v1427_v35 }
 0x675   : > { %v1514_v40 = vmul.f32 %v1512_v59, %v1428_v11 }
 0x676   : > { %v1515_v41 = vpack.c.bf16 %v1513_v37, %v1513_v37 }
 0x677   : > { %v1516_v43 = vpack.c.bf16 %v1514_v40, %v1514_v40 }
 0x678   : > { %1657 = vmatmul.bf16.vlgmr.msrb.gmra.mxu0 %v1515_v41 }
 0x679   : > { %1670 = vmatmul.bf16.vlgmr.msra.gmra.mxu1 %v1516_v43 }
 0x6f5   : > { %v1658_v44 = vpop.f32.mrf.mxu0 }
 0x6f6   : > { %v1659_v45 = vadd.f32 %v2091_v12, %v1658_v44  ;;  %v1671_v47 = vpop.f32.mrf.mxu1 }
 0x6f8   : > { %v1672_v48 = vadd.f32 %v1671_v47, %v1659_v45 }
 0x6fa   : > { %v1675_v7 = vadd.f32 %v1672_v48, %v2532_v39 }
 0x6fc   : > { %v1676_v8 = vpack.c.bf16 %v1675_v7, %v1675_v7 }
 0x6fd   : > { %v1660_v49 = vpop.f32.mrf.mxu0 }
 0x6fe   : > { %1677 = vst [vmem:[%s435_s22] sm:$0x3] %v1676_v8  ;;  %v1673_v51 = vpop.f32.mrf.mxu1 }
 0x6ff PF: > { %s23_s25 = sadd.s32 1, %s2124_s25  }
 0x700   : > { %p20_p4 = scmp.ge.s32.totalorder %s23_s25, 4  }
 0x702   :  { %22 = sbr.rel (!%p20_p4) target bundleno = 1 (0x1), region = 102 }

// kernel: hierarchical_vit_forward.11
= control target key start
LH: loop header
LB: loop body
LE: loop exit
PB: predicated region body
PF: predicated region fallthrough
CT: control target
= control target key end

     0   :  { %s2042_s25 = smov 0   ;;  %s2515_s0 = inlined_call_operand.vmem [shape: bf16[2,1,128], index: 0, kind: input, shape index: {}]   ;;  %s2516_s1 = inlined_call_operand.vmem [shape: f32[1,128], index: 1, kind: input, shape index: {}]   ;;  %s2517_s2 = inlined_call_operand.vmem [shape: f32[1,128], index: 2, kind: input, shape index: {}]   ;;  %s2518_s3 = inlined_call_operand.vmem [shape: bf16[128,384], index: 3, kind: input, shape index: {}]   ;;  %s2519_s4 = inlined_call_operand.vmem [shape: f32[1,384], index: 4, kind: input, shape index: {}]   ;;  %s2520_s5 = inlined_call_operand.vmem [shape: bf16[128,128], index: 5, kind: input, shape index: {}]   ;;  %s2521_s6 = inlined_call_operand.vmem [shape: f32[1,128], index: 6, kind: input, shape index: {}]   ;;  %s2522_s7 = inlined_call_operand.vmem [shape: f32[1,128], index: 7, kind: input, shape index: {}]   ;;  %s2523_s8 = inlined_call_operand.vmem [shape: f32[1,128], index: 8, kind: input, shape index: {}]   ;;  %s2524_s9 = inlined_call_operand.vmem [shape: bf16[128,256], index: 9, kind: input, shape index: {}]   ;;  %s2525_s10 = inlined_call_operand.vmem [shape: f32[1,256], index: 10, kind: input, shape index: {}]   ;;  %s2526_s11 = inlined_call_operand.vmem [shape: bf16[256,128], index: 11, kind: input, shape index: {}]   ;;  %s2527_s12 = inlined_call_operand.vmem [shape: f32[1,128], index: 12, kind: input, shape index: {}]   ;;  %s2528_s13 = inlined_call_operand.vmem [shape: bf16[2,1,128], index: 13, kind: output, shape index: {}]  }
   0x1 LB: > { %s1577_s26 = sadd.s32 4294967295, %s1963_s25   ;;  %p1581_p0 = scmp.ge.s32.totalorder %s1963_s25, 1  ;;  %s1963_s25 = sphi %s2042_s25, %s23_s25  }
   0x2   : > { %p385_p1 = scmp.lt.s32.totalorder %s1963_s25, 3 }
   0x4   : > { %p386_p2 = pnand %p1581_p0, %p385_p1 }
   0x5   : > { %p425_p3 = scmp.lt.s32.totalorder (!%p386_p2), %s1577_s26, 1  ;;  %s1966_s27 = smov (!%p386_p2), 32  }
   0x6   : > { %389 = sbr.rel (%p386_p2) target bundleno = 1501 (0x5dd), region = 72  ;;  %s1967_s28 = smov (!%p386_p2), 96  }
   0xb   : > { %s2530_s26 = smov (!%p425_p3, %s1577_s26), 1  ;;  %vm436_vm0 = vcmask 1040384   ;;  %v1668_v5 = vld [vmem:[%s2518_s3 + $0xa8] sm:$0xf]  ;;  %v1874_v6 = vld [vmem:[%s2518_s3 + $0xb0] sm:$0xf0] }
   0xc   : > { %s427_s29 = scalar_lea.vmem %s2515_s0, %s2530_s26  ;;  %v1873_v7 = vld [vmem:[%s2518_s3 + $0xac] sm:$0xf]  ;;  %v1669_v8 = vor.u32 %v1874_v6, %v1668_v5  ;;  %v1670_v9 = vld [vmem:[%s2518_s3 + $0xb4] sm:$0xf0]  ;;  %v1676_v10 = vld [vmem:[%s2518_s3 + $0xb0] sm:$0xf]  ;;  %s430_s17 = scalar_lea.vmem %s2528_s13, %s2530_s26 }
   0xd   : > { %v432_v0 = vld [vmem:[%s427_s29] sm:$0x1]  ;;  %v1875_v11 = vld [vmem:[%s2518_s3 + $0xb8] sm:$0xf0]  ;;  %v1965_v12 = vmov 128.0   ;;  %v1673_v13 = vor.u32 %v1873_v7, %v1670_v9  ;;  %s1968_s29 = smov 64  }
   0xe   : > { %v2056_v1 = vunpack.c.l.bf16 %v432_v0  ;;  %1931 = vrcp.f32 %v1965_v12  ;;  %v1677_v14 = vor.u32 %v1875_v11, %v1676_v10  ;;  %639 = vmatpush.bf16.msra.mxu0 %v1669_v8  ;;  %v1656_v15 = vld [vmem:[%s2518_s3 + $0x90] sm:$0xf]  ;;  %v1871_v16 = vld [vmem:[%s2518_s3 + $0x98] sm:$0xf0]  ;;  %v1870_v17 = vld [vmem:[%s2518_s3 + $0x94] sm:$0xf] }
   0xf   : > { %652 = vmatpush.bf16.msra.mxu1 %v1673_v13  ;;  %v1657_v18 = vor.u32 %v1871_v16, %v1656_v15  ;;  %v1658_v19 = vld [vmem:[%s2518_s3 + $0x9c] sm:$0xf0]  ;;  %v1664_v20 = vld [vmem:[%s2518_s3 + $0x98] sm:$0xf]  ;;  %v1872_v21 = vld [vmem:[%s2518_s3 + $0xa0] sm:$0xf0] }
  0x10   : > { %v437_v2 = vsel %vm436_vm0, %v2056_v1, 0.0  ;;  %v448_v3 = vmul.f32 %v2056_v1, %v2056_v1  ;;  %665 = vmatpush.bf16.msra.mxu2 %v1677_v14  ;;  %v1661_v22 = vor.u32 %v1870_v17, %v1658_v19  ;;  %v1665_v23 = vor.u32 %v1872_v21, %v1664_v20  ;;  %v1644_v25 = vld [vmem:[%s2518_s3 + $0x78] sm:$0xf]  ;;  %v1868_v26 = vld [vmem:[%s2518_s3 + $0x80] sm:$0xf0] }
  0x11   : > { %438 = vadd.xlane.f32.xlu0 %v437_v2  ;;  %v1867_v27 = vld [vmem:[%s2518_s3 + $0x7c] sm:$0xf]  ;;  %v1645_v28 = vor.u32 %v1868_v26, %v1644_v25  ;;  %v1646_v29 = vld [vmem:[%s2518_s3 + $0x84] sm:$0xf0]  ;;  %v1652_v30 = vld [vmem:[%s2518_s3 + $0x80] sm:$0xf] }
  0x12   : > { %v449_v4 = vsel %vm436_vm0, %v448_v3, 0.0  ;;  %640 = vmatpush.bf16.msra.mxu0 %v1657_v18  ;;  %v1869_v31 = vld [vmem:[%s2518_s3 + $0x88] sm:$0xf0]  ;;  %v1649_v32 = vor.u32 %v1867_v27, %v1646_v29  ;;  %v1632_v35 = vld [vmem:[%s2518_s3 + $0x60] sm:$0xf]  ;;  %vm689_vm5 = vcmask 1047556  }
  0x13   : > { %653 = vmatpush.bf16.msra.mxu1 %v1661_v22  ;;  %v1653_v33 = vor.u32 %v1869_v31, %v1652_v30  ;;  %v1865_v36 = vld [vmem:[%s2518_s3 + $0x68] sm:$0xf0]  ;;  %v1864_v37 = vld [vmem:[%s2518_s3 + $0x64] sm:$0xf]  ;;  %v1634_v39 = vld [vmem:[%s2518_s3 + $0x6c] sm:$0xf0] }
  0x14   : > { %v2099_v24 = vpop.eup %1931  ;;  %666 = vmatpush.bf16.msra.mxu2 %v1665_v23  ;;  %v1633_v38 = vor.u32 %v1865_v36, %v1632_v35  ;;  %v1640_v40 = vld [vmem:[%s2518_s3 + $0x68] sm:$0xf]  ;;  %v1866_v41 = vld [vmem:[%s2518_s3 + $0x70] sm:$0xf0]  ;;  %v1637_v42 = vor.u32 %v1864_v37, %v1634_v39  ;;  %v1861_v47 = vld [vmem:[%s2518_s3 + $0x4c] sm:$0xf] }
  0x15   : > { %v441_v34 = vmul.f32 128.0, %v2099_v24  ;;  %v1641_v43 = vor.u32 %v1866_v41, %v1640_v40  ;;  %v1620_v45 = vld [vmem:[%s2518_s3 + $0x48] sm:$0xf]  ;;  %v1862_v46 = vld [vmem:[%s2518_s3 + $0x50] sm:$0xf0]  ;;  %vm445_vm1 = vweird.f32 %v2099_v24  ;;  %vm801_vm6 = vcmask 261120  }
  0x16   : > { %641 = vmatpush.bf16.msra.mxu0 %v1645_v28  ;;  %v1621_v48 = vor.u32 %v1862_v46, %v1620_v45  ;;  %v1622_v49 = vld [vmem:[%s2518_s3 + $0x54] sm:$0xf0]  ;;  %v1628_v50 = vld [vmem:[%s2518_s3 + $0x50] sm:$0xf]  ;;  %v1863_v51 = vld [vmem:[%s2518_s3 + $0x58] sm:$0xf0] }
  0x17   : > { %654 = vmatpush.bf16.msra.mxu1 %v1649_v32  ;;  %v442_v44 = vsub.f32 1.0, %v441_v34  ;;  %v1625_v52 = vor.u32 %v1861_v47, %v1622_v49  ;;  %v1629_v53 = vor.u32 %v1863_v51, %v1628_v50  ;;  %v1608_v55 = vld [vmem:[%s2518_s3 + $0x30] sm:$0xf]  ;;  %v1859_v56 = vld [vmem:[%s2518_s3 + $0x38] sm:$0xf0]  ;;  %vm910_vm7 = vcmask 7168  }
  0x18   : > { %667 = vmatpush.bf16.msra.mxu2 %v1653_v33  ;;  %v1858_v57 = vld [vmem:[%s2518_s3 + $0x34] sm:$0xf]  ;;  %v1609_v58 = vor.u32 %v1859_v56, %v1608_v55  ;;  %v1610_v59 = vld [vmem:[%s2518_s3 + $0x3c] sm:$0xf0]  ;;  %v1616_v60 = vld [vmem:[%s2518_s3 + $0x38] sm:$0xf] }
  0x19   : > { %450 = vadd.xlane.f32.xlu0 %v449_v4  ;;  %v443_v54 = vmul.f32 %v2099_v24, %v442_v44  ;;  %v1860_v61 = vld [vmem:[%s2518_s3 + $0x40] sm:$0xf0]  ;;  %v1613_v62 = vor.u32 %v1858_v57, %v1610_v59  ;;  %v1596_v2 = vld [vmem:[%s2518_s3 + $0x18] sm:$0xf]  ;;  %v1855_v4 = vld [vmem:[%s2518_s3 + $0x1c] sm:$0xf] }
  0x1a   : > { %642 = vmatpush.bf16.msra.mxu0 %v1633_v38  ;;  %v1617_v63 = vor.u32 %v1860_v61, %v1616_v60  ;;  %v1856_v3 = vld [vmem:[%s2518_s3 + $0x20] sm:$0xf0]  ;;  %v1598_v6 = vld [vmem:[%s2518_s3 + $0x24] sm:$0xf0]  ;;  %v1604_v7 = vld [vmem:[%s2518_s3 + $0x20] sm:$0xf] }
  0x1b   : > { %655 = vmatpush.bf16.msra.mxu1 %v1637_v42  ;;  %v444_v0 = vadd.f32 %v2099_v24, %v443_v54  ;;  %v1597_v5 = vor.u32 %v1856_v3, %v1596_v2  ;;  %v1857_v8 = vld [vmem:[%s2518_s3 + $0x28] sm:$0xf0]  ;;  %v1601_v10 = vor.u32 %v1855_v4, %v1598_v6  ;;  %v1584_v12 = vld [vmem:[%s2518_s3] sm:$0xf]  ;;  %v1852_v14 = vld [vmem:[%s2518_s3 + $0x4] sm:$0xf] }
  0x1c   : > { %668 = vmatpush.bf16.msra.mxu2 %v1641_v43  ;;  %v1605_v11 = vor.u32 %v1857_v8, %v1604_v7  ;;  %v1853_v13 = vld [vmem:[%s2518_s3 + $0x8] sm:$0xf0]  ;;  %v1586_v15 = vld [vmem:[%s2518_s3 + $0xc] sm:$0xf0]  ;;  %v1592_v16 = vld [vmem:[%s2518_s3 + $0x8] sm:$0xf] }
  0x1d   : > { %v1854_v17 = vld [vmem:[%s2518_s3 + $0x10] sm:$0xf0]  ;;  %v2216_v18 = vsel %vm445_vm1, %v2099_v24, %v444_v0  ;;  %v1585_v19 = vor.u32 %v1853_v13, %v1584_v12  ;;  %v1589_v20 = vor.u32 %v1852_v14, %v1586_v15  ;;  %v434_v35 = vld [vmem:[%s2516_s1] sm:$0x1]  ;;  %v1969_v60 = vmov 1934713408  }
  0x1e   : > { %643 = vmatpush.bf16.msra.mxu0 %v1621_v48  ;;  %v1593_v21 = vor.u32 %v1854_v17, %v1592_v16  ;;  %v435_v38 = vld [vmem:[%s2517_s2] sm:$0x1]  ;;  %v692_v61 = vunpack.c.l.s4 %v1969_v60  ;;  %vm1039_vm8 = vcmask 523264   ;;  %vm1041_vm9 = vcmask 785408  }
  0x1f   : > { %656 = vmatpush.bf16.msra.mxu1 %v1625_v52  ;;  %v503_v42 = vld [vmem:[%s2519_s4] sm:$0x7] }
  0x20   : > { %669 = vmatpush.bf16.msra.mxu2 %v1629_v53  ;;  %v633_v43 = vperm.slane %v503_v42, 0  ;;  %v634_v44 = vperm.slane %v503_v42, 1  ;;  %v635_v50 = vperm.slane %v503_v42, 2  ;;  %v2237_v3 = vunpack.c.0.s8 %v692_v61 }
  0x22   : > { %644 = vmatpush.bf16.msra.mxu0 %v1609_v58 }
  0x23   : > { %657 = vmatpush.bf16.msra.mxu1 %v1613_v62 }
  0x24   : > { %670 = vmatpush.bf16.msra.mxu2 %v1617_v63 }
  0x26   : > { %645 = vmatpush.bf16.msra.mxu0 %v1597_v5 }
  0x27   : > { %658 = vmatpush.bf16.msra.mxu1 %v1601_v10 }
  0x28   : > { %671 = vmatpush.bf16.msra.mxu2 %v1605_v11 }
  0x2a   : > { %646 = vmatpush.bf16.msra.mxu0 %v1585_v19 }
  0x2b   : > { %659 = vmatpush.bf16.msra.mxu1 %v1589_v20 }
  0x2c   : > { %672 = vmatpush.bf16.msra.mxu2 %v1593_v21 }
  0x84   : > { %v439_v9 = vpop.xlane.xlu0 %438 }
  0x85   : > { %v447_v22 = vmul.f32 %v2216_v18, %v439_v9 }
  0x87   : > { %v453_v25 = vmul.f32 %v447_v22, %v447_v22  ;;  %v455_v34 = vsub.f32 %v2056_v1, %v447_v22 }
  0x8c   : > { %v451_v23 = vpop.xlane.xlu0 %450 }
  0x8d   : > { %v452_v26 = vmul.f32 %v451_v23, %v2216_v18 }
  0x8f   : > { %v454_v27 = vsub.f32 %v452_v26, %v453_v25 }
  0x91   : > { %v456_v28 = vadd.f32 1e-05, %v454_v27 }
  0x93   : > { %1933 = vrsqrt.f32 %v456_v28  ;;  %vm463_vm3 = vweird.f32 %v456_v28 }
  0x99   : > { %v1934_v24 = vpop.eup %1933 }
  0x9a   : > { %v458_v29 = vmul.f32 %v1934_v24, %v456_v28  ;;  %vm464_vm2 = vweird.f32 %v1934_v24 }
  0x9b   : > { %vm465_vm4 = vmor %vm463_vm3, %vm464_vm2 }
  0x9c   : > { %v459_v30 = vmul.f32 %v1934_v24, %v458_v29 }
  0x9e   : > { %v460_v31 = vmul.f32 0.5, %v459_v30 }
  0xa0   : > { %v461_v32 = vsub.f32 1.5, %v460_v31 }
  0xa2   : > { %v462_v33 = vmul.f32 %v1934_v24, %v461_v32 }
  0xa4   : > { %v466_v36 = vsel %vm465_vm4, %v1934_v24, %v462_v33 }
  0xa5   : > { %v467_v37 = vmul.f32 %v466_v36, %v455_v34 }
  0xa7   : > { %v468_v39 = vmul.f32 %v467_v37, %v434_v35 }
  0xa9   : > { %v469_v40 = vadd.f32 %v468_v39, %v435_v38 }
  0xab   : > { %v470_v41 = vpack.c.bf16 %v469_v40, %v469_v40 }
  0xad   : > { %647 = vmatmul.bf16.vlgmr.msra.gmra.mxu0 %v470_v41  ;;  %660 = vmatmul.bf16.vlgmr.msra.gmra.mxu1 %v470_v41 }
  0xae   : > { %673 = vmatmul.bf16.vlgmr.msra.gmra.mxu2 %v470_v41  ;;  %v1970_v41 = vmov 0  }
  0xaf   : > { %v915_v42 = vsel %vm436_vm0, 65535, %v1970_v41 }
 0x12a   : > { %v648_v45 = vpop.f32.mrf.mxu0  ;;  %v661_v46 = vpop.f32.mrf.mxu1 }
 0x12b   : > { %v649_v47 = vadd.f32 %v648_v45, %v633_v43  ;;  %v662_v48 = vadd.f32 %v661_v46, %v634_v44 }
 0x12d   : > { %v678_v49 = vpack.c.bf16 %v662_v48, %v649_v47 }
 0x12f   : > { %685 = vrot.lane.b32.xlu2 %v678_v49, %s1966_s27  ;;  %681 = vrot.lane.b32.xlu1 %v678_v49, %s1967_s28  ;;  %v723_v2 = vrot.slane %v678_v49, 4 }
 0x131   : > { %v674_v51 = vpop.f32.mrf.mxu2 }
 0x132   : > { %v675_v52 = vadd.f32 %v674_v51, %v635_v50  ;;  %v650_v53 = vpop.f32.mrf.mxu0  ;;  %v663_v54 = vpop.f32.mrf.mxu1 }
 0x134   : > { %v679_v55 = vpack.c.bf16 %v675_v52, %v675_v52 }
 0x136   : > { %766 = vrot.lane.b32.xlu0 %v679_v55, %s1966_s27 }
 0x137   : > { %764 = vrot.lane.b32.xlu2 %v679_v55, %s1968_s29  ;;  %683 = vrot.lane.b32.xlu1 %v678_v49, %s1968_s29 }
 0x139   : > { %v676_v56 = vpop.f32.mrf.mxu2 }
 0x13f   : > { %762 = vrot.lane.b32.xlu1 %v679_v55, %s1967_s28 }
 0x189   : > { %v686_v57 = vpop.permute.xlu2 %685 }
 0x18a   : > { %v697_v62 = vrot.slane %v686_v57, 4 }
 0x191   : > { %v765_v63 = vpop.permute.xlu2 %764 }
 0x192   : > { %v769_v8 = vrot.slane %v765_v63, 4 }
 0x194   : > { %v770_v16 = vsel %vm689_vm5, %v769_v8, %v679_v55 }
 0x195   : > { %v774_v27 = vperm.slane %v770_v16, %v2237_v3 }
 0x1a1   : > { %v682_v58 = vpop.permute.xlu1 %681 }
 0x1a2   : > { %v724_v59 = vrot.slane %v682_v58, 4  ;;  %v698_v5 = vsel %vm689_vm5, %v697_v62, %v682_v58 }
 0x1a3   : > { %v702_v12 = vperm.slane %v698_v5, %v2237_v3 }
 0x1a4   : > { %v738_v0 = vsel %vm689_vm5, %v686_v57, %v724_v59 }
 0x1a5   : > { %v742_v9 = vperm.slane %v738_v0, %v2237_v3 }
 0x1a8   : > { %v767_v13 = vpop.permute.xlu0 %766 }
 0x1a9   : > { %v684_v4 = vpop.permute.xlu1 %683  ;;  %v777_v20 = vrot.slane %v767_v13, 4 }
 0x1aa   : > { %v688_v6 = vrot.slane %v684_v4, 4  ;;  %v730_v7 = vsel %vm689_vm5, %v684_v4, %v723_v2 }
 0x1ab   : > { %v734_v10 = vperm.slane %v730_v7, %v2237_v3 }
 0x1ac   : > { %v690_v11 = vsel %vm689_vm5, %v688_v6, %v678_v49 }
 0x1ad   : > { %v694_v14 = vperm.slane %v690_v11, %v2237_v3  ;;  %v745_v15 = vpack.i.b16 %v742_v9, %v734_v10 }
 0x1af   : > { %v705_v17 = vpack.i.b16 %v702_v12, %v694_v14  ;;  %v750_v19 = vperm.slane %v745_v15, %v2237_v3 }
 0x1b1   : > { %v763_v21 = vpop.permute.xlu1 %762  ;;  %v754_v22 = vpack.i.b16 0, %v750_v19  ;;  %v755_v23 = vshrl.u32 %v750_v19, 16  ;;  %v751_v25 = vrot.slane %v750_v19, 4  ;;  %v710_v26 = vperm.slane %v705_v17, %v2237_v3 }
 0x1b2   : > { %v778_v28 = vsel %vm689_vm5, %v777_v20, %v763_v21 }
 0x1b3   : > { %v782_v24 = vperm.slane %v778_v28, %v2237_v3  ;;  %v806_v29 = vsel %vm801_vm6, %v754_v22, 0  ;;  %v756_v30 = vpack.i.b16 0, %v755_v23  ;;  %v752_v31 = vsel %vm689_vm5, 0, %v751_v25 }
 0x1b4   : > { %815 = vmatpush.bf16.xpose.msra.mxu3 %v806_v29  ;;  %v759_v32 = vshrl.u32 %v752_v31, 16  ;;  %v711_v33 = vrot.slane %v710_v26, 4  ;;  %v758_v38 = vpack.i.b16 0, %v752_v31  ;;  %v715_v44 = vpack.i.b16 0, %v710_v26 }
 0x1b5   : > { %v785_v34 = vpack.i.b16 %v782_v24, %v774_v27  ;;  %v825_v35 = vsel %vm801_vm6, %v756_v30, 0  ;;  %v716_v57 = vshrl.u32 %v710_v26, 16 }
 0x1b6   : > { %v760_v36 = vpack.i.b16 0, %v759_v32  ;;  %v712_v39 = vsel %vm689_vm5, 0, %v711_v33  ;;  %v844_v48 = vsel %vm801_vm6, %v758_v38, 0 }
 0x1b7   : > { %v790_v37 = vperm.slane %v785_v34, %v2237_v3  ;;  %v721_v47 = vshrl.u32 %v712_v39, 16  ;;  %v718_v59 = vpack.i.b16 0, %v716_v57  ;;  %v720_v61 = vpack.i.b16 0, %v712_v39 }
 0x1b8   : > { %v863_v40 = vsel %vm801_vm6, %v760_v36, 0 }
 0x1b9   : > { %v791_v43 = vrot.slane %v790_v37, 4  ;;  %872 = vmatpush.bf16.xpose.msrb.mxu0 %v863_v40  ;;  %v794_v45 = vpack.i.b16 0, %v790_v37  ;;  %v795_v46 = vshrl.u32 %v790_v37, 16  ;;  %v722_v54 = vpack.i.b16 0, %v721_v47 }
 0x1bb   : > { %1680 = vmatmul.msk.bf16.vlgmr.msra.gmra.mxu3 %vm801_vm6, %v715_v44  ;;  %v917_v49 = vand.u32 %v915_v42, %v794_v45  ;;  %v796_v50 = vpack.i.b16 0, %v795_v46  ;;  %v792_v51 = vsel %vm689_vm5, 0, %v791_v43  ;;  %v1883_v45 = vld [vmem:[%s2520_s5 + $0x38] sm:$0xff] }
 0x1bc   : > { %834 = vmatpush.bf16.xpose.msrb.mxu3 %v825_v35  ;;  %v799_v52 = vshrl.u32 %v792_v51, 16  ;;  %v798_v58 = vpack.i.b16 0, %v792_v51  ;;  %1109 = vmatpush.bf16.msrb.mxu1 %v1883_v45  ;;  %v1893_v45 = vld [vmem:[%s2524_s9 + $0x44] sm:$0xf0] }
 0x1bd   : > { %926 = vmatpush.bf16.msrb.mxu2 %v917_v49  ;;  %v936_v53 = vand.u32 %v915_v42, %v796_v50 }
 0x1be   : > { %v800_v55 = vpack.i.b16 0, %v799_v52  ;;  %v955_v60 = vand.u32 %v915_v42, %v798_v58 }
 0x1c0   : > { %1683 = vmatmul.msk.bf16.vlgmr.msrb.gmra.mxu0 %vm801_vm6, %v722_v54  ;;  %v974_v56 = vand.u32 %v915_v42, %v800_v55  ;;  %v1971_v42 = vmov 1983009808  }
 0x1c1   : > { %945 = vmatpush.bf16.msra.mxu2 %v936_v53  ;;  %v993_v43 = vunpack.c.l.s4 %v1971_v42  ;;  %v1764_v42 = vld [vmem:[%s2524_s9 + $0x58] sm:$0xf0] }
 0x1c2   : > { %983 = vmatpush.bf16.msra.mxu0 %v974_v56 }
 0x1c3   : > { %v994_v47 = vunpack.c.0.s8 %v993_v43 }
 0x1c4   : > { %853 = vmatpush.bf16.xpose.msra.mxu3 %v844_v48 }
 0x1cb   : > { %1681 = vmatmul.msk.bf16.vlgmr.msrb.gmra.mxu3 %vm801_vm6, %v718_v59 }
 0x1cc   : > { %964 = vmatpush.bf16.msrb.mxu3 %v955_v60 }
 0x1db   : > { %1682 = vmatmul.msk.bf16.vlgmr.msra.gmra.mxu3 %vm801_vm6, %v720_v61 }
 0x23d   : > { %v874_v62 = vpop.f32.mrf.mxu0 }
 0x23e   : > { %v881_v63 = vmul.f32 0.17677669, %v874_v62  ;;  %v817_v0 = vpop.f32.mrf.mxu3 }
 0x23f   : > { %v878_v2 = vmul.f32 0.17677669, %v817_v0 }
 0x240   : > { %v885_v4 = vsub.f32 %v881_v63, %v881_v63 }
 0x241   : > { %v882_v5 = vsub.f32 %v878_v2, %v878_v2 }
 0x242   : > { %v892_v6 = vmul.f32 1.442695, %v885_v4 }
 0x243   : > { %v886_v7 = vmul.f32 1.442695, %v882_v5  ;;  %v1882_v5 = vld [vmem:[%s2520_s5 + $0x30] sm:$0xff] }
 0x244   : > { %1935 = vpow2.f32 %v892_v6  ;;  %1110 = vmatpush.bf16.msrb.mxu1 %v1882_v5  ;;  %v1880_v6 = vld [vmem:[%s2520_s5 + $0x20] sm:$0xff] }
 0x245   : > { %1937 = vpow2.f32 %v886_v7  ;;  %v876_v8 = vpop.f32.mrf.mxu0  ;;  %v1879_v7 = vld [vmem:[%s2520_s5 + $0x18] sm:$0xff]  ;;  %v1722_v5 = vld [vmem:[%s2524_s9] sm:$0xf] }
 0x246   : > { %v819_v9 = vpop.f32.mrf.mxu3  ;;  %v1878_v8 = vld [vmem:[%s2520_s5 + $0x10] sm:$0xff] }
 0x247   : > { %v1877_v9 = vld [vmem:[%s2520_s5 + $0x8] sm:$0xff] }
 0x24a   : > { %v1936_v10 = vpop.eup %1935 }
 0x24b   : > { %v1938_v11 = vpop.eup %1937  ;;  %1939 = vrcp.f32 %v1936_v10 }
 0x24c   : > { %1941 = vrcp.f32 %v1938_v11 }
 0x24e   : > { %v836_v12 = vpop.f32.mrf.mxu3 }
 0x24f   : > { %v879_v13 = vmul.f32 0.17677669, %v836_v12 }
 0x251   : > { %v1940_v14 = vpop.eup %1939  ;;  %v883_v15 = vsub.f32 %v879_v13, %v879_v13 }
 0x252   : > { %v1942_v16 = vpop.eup %1941  ;;  %v905_v17 = vmul.f32 %v1940_v14, %v1936_v10  ;;  %v1876_v10 = vld [vmem:[%s2520_s5] sm:$0xff] }
 0x253   : > { %v888_v19 = vmul.f32 1.442695, %v883_v15  ;;  %v902_v20 = vmul.f32 %v1942_v16, %v1938_v11 }
 0x254   : > { %v909_v21 = vpack.c.bf16 %v905_v17, %v905_v17 }
 0x255   : > { %1943 = vpow2.f32 %v888_v19  ;;  %v906_v22 = vpack.c.bf16 %v902_v20, %v902_v20  ;;  %v1060_v19 = vld [vmem:[%s2521_s6] sm:$0x1] }
 0x256   : > { %v838_v23 = vpop.f32.mrf.mxu3  ;;  %1687 = vmatmul.msk.bf16.vlgmr.msra.gmra.mxu0 %vm910_vm7, %v909_v21 }
 0x257   : > { %1684 = vmatmul.msk.bf16.vlgmr.msrb.gmra.mxu2 %vm910_vm7, %v906_v22 }
 0x25b   : > { %v1944_v25 = vpop.eup %1943 }
 0x25c   : > { %1945 = vrcp.f32 %v1944_v25 }
 0x25e   : > { %v855_v26 = vpop.f32.mrf.mxu3 }
 0x25f   : > { %v880_v27 = vmul.f32 0.17677669, %v855_v26 }
 0x261   : > { %v884_v28 = vsub.f32 %v880_v27, %v880_v27 }
 0x262   : > { %v1946_v24 = vpop.eup %1945 }
 0x263   : > { %v903_v29 = vmul.f32 %v1946_v24, %v1944_v25  ;;  %v890_v30 = vmul.f32 1.442695, %v884_v28  ;;  %v1778_v28 = vld [vmem:[%s2524_s9 + $0x70] sm:$0xf]  ;;  %v1898_v24 = vld [vmem:[%s2524_s9 + $0x74] sm:$0xf] }
 0x265   : > { %v907_v31 = vpack.c.bf16 %v903_v29, %v903_v29  ;;  %1947 = vpow2.f32 %v890_v30  ;;  %v1780_v30 = vld [vmem:[%s2524_s9 + $0x78] sm:$0xf0] }
 0x266   : > { %v857_v32 = vpop.f32.mrf.mxu3 }
 0x267   : > { %1685 = vmatmul.msk.bf16.vlgmr.msra.gmra.mxu2 %vm910_vm7, %v907_v31  ;;  %v1783_v31 = vor.u32 %v1898_v24, %v1780_v30  ;;  %v1770_v32 = vld [vmem:[%s2524_s9 + $0x60] sm:$0xf] }
 0x268   : > { %v1124_v24 = vld [vmem:[%s2523_s8] sm:$0x1] }
 0x269   : > { %1267 = vmatpush.bf16.msra.mxu3 %v1783_v31 }
 0x26b   : > { %v1948_v33 = vpop.eup %1947 }
 0x26c   : > { %1949 = vrcp.f32 %v1948_v33 }
 0x272   : > { %v1950_v34 = vpop.eup %1949 }
 0x273   : > { %v904_v35 = vmul.f32 %v1950_v34, %v1948_v33  ;;  %v1897_v33 = vld [vmem:[%s2524_s9 + $0x64] sm:$0xf0]  ;;  %v1896_v34 = vld [vmem:[%s2524_s9 + $0x64] sm:$0xf] }
 0x275   : > { %v908_v36 = vpack.c.bf16 %v904_v35, %v904_v35  ;;  %v1771_v35 = vor.u32 %v1897_v33, %v1770_v32  ;;  %v1907_v32 = vld [vmem:[%s2526_s11 + $0x38] sm:$0xff] }
 0x276   : > { %v1915_v33 = vld [vmem:[%s2526_s11 + $0x78] sm:$0xff]  ;;  %1499 = vmatpush.bf16.msrb.mxu0 %v1907_v32 }
 0x277   : > { %1686 = vmatmul.msk.bf16.vlgmr.msrb.gmra.mxu3 %vm910_vm7, %v908_v36  ;;  %v1772_v36 = vld [vmem:[%s2524_s9 + $0x68] sm:$0xf0] }
 0x2d3   : > { %v985_v37 = vpop.f32.mrf.mxu0 }
 0x2d4   : > { %v996_v46 = vrot.slane %v985_v37, 4  ;;  %v1775_v37 = vor.u32 %v1896_v34, %v1772_v36  ;;  %v1168_v34 = vld [vmem:[%s2525_s10] sm:$0x3] }
 0x2d5   : > { %v1251_v36 = vperm.slane %v1168_v34, 1 }
 0x2d6   : > { %1268 = vmatpush.bf16.msra.mxu3 %v1775_v37  ;;  %v1906_v37 = vld [vmem:[%s2526_s11 + $0x30] sm:$0xff] }
 0x2d7   : > { %1500 = vmatpush.bf16.msrb.mxu0 %v1906_v37 }
 0x2da   : > { %v928_v38 = vpop.f32.mrf.mxu2 }
 0x2db   : > { %v987_v39 = vpop.f32.mrf.mxu0 }
 0x2dc   : > { %v1895_v39 = vld [vmem:[%s2524_s9 + $0x54] sm:$0xf0] }
 0x2e2   : > { %v930_v40 = vpop.f32.mrf.mxu2 }
 0x2e3   : > { %v1894_v40 = vld [vmem:[%s2524_s9 + $0x54] sm:$0xf] }
 0x2e4   : > { %v1767_v43 = vor.u32 %v1894_v40, %v1764_v42 }
 0x2e6   : > { %1269 = vmatpush.bf16.msra.mxu3 %v1767_v43  ;;  %v1905_v43 = vld [vmem:[%s2526_s11 + $0x28] sm:$0xff] }
 0x2e7   : > { %1501 = vmatpush.bf16.msrb.mxu0 %v1905_v43 }
 0x2ea   : > { %v947_v41 = vpop.f32.mrf.mxu2 }
 0x2eb   : > { %v997_v48 = vsel %vm689_vm5, %v996_v46, %v947_v41  ;;  %v1892_v46 = vld [vmem:[%s2524_s9 + $0x44] sm:$0xf] }
 0x2ec   : > { %v1001_v49 = vperm.slane %v997_v48, %v994_v47  ;;  %v1756_v48 = vld [vmem:[%s2524_s9 + $0x48] sm:$0xf0] }
 0x2ee   : > { %v1002_v53 = vrot.slane %v1001_v49, 4  ;;  %v1759_v49 = vor.u32 %v1892_v46, %v1756_v48 }
 0x2f0   : > { %1270 = vmatpush.bf16.msra.mxu3 %v1759_v49  ;;  %v1904_v49 = vld [vmem:[%s2526_s11 + $0x20] sm:$0xff] }
 0x2f1   : > { %1502 = vmatpush.bf16.msrb.mxu0 %v1904_v49 }
 0x2f2   : > { %v949_v44 = vpop.f32.mrf.mxu2 }
 0x2f3   : > { %v1754_v44 = vld [vmem:[%s2524_s9 + $0x40] sm:$0xf] }
 0x2fa   : > { %v966_v50 = vpop.f32.mrf.mxu3 }
 0x2fb   : > { %v989_v51 = vrot.slane %v966_v50, 4  ;;  %v1746_v50 = vld [vmem:[%s2524_s9 + $0x30] sm:$0xf] }
 0x2fd   : > { %v991_v52 = vsel %vm689_vm5, %v989_v51, %v928_v38  ;;  %v1762_v38 = vld [vmem:[%s2524_s9 + $0x50] sm:$0xf]  ;;  %v1891_v51 = vld [vmem:[%s2524_s9 + $0x34] sm:$0xf0] }
 0x2fe   : > { %v995_v54 = vperm.slane %v991_v52, %v994_v47  ;;  %v1763_v41 = vor.u32 %v1895_v39, %v1762_v38  ;;  %v1890_v52 = vld [vmem:[%s2524_s9 + $0x34] sm:$0xf] }
 0x2ff   : > { %v1914_v38 = vld [vmem:[%s2526_s11 + $0x70] sm:$0xff] }
 0x300   : > { %v1003_v55 = vsel %vm689_vm5, %v1002_v53, %v995_v54  ;;  %v1747_v53 = vor.u32 %v1891_v51, %v1746_v50  ;;  %v1748_v54 = vld [vmem:[%s2524_s9 + $0x38] sm:$0xf0]  ;;  %v1912_v50 = vld [vmem:[%s2526_s11 + $0x60] sm:$0xff] }
 0x301   : > { %v1007_v56 = vperm.slane %v1003_v55, %v2237_v3  ;;  %v1751_v55 = vor.u32 %v1890_v52, %v1748_v54 }
 0x302   : > { %v968_v57 = vpop.f32.mrf.mxu3 }
 0x303   : > { %v1011_v58 = vperm.slane %v1007_v56, %v994_v47  ;;  %v1755_v47 = vor.u32 %v1893_v45, %v1754_v44  ;;  %1271 = vmatpush.bf16.msra.mxu3 %v1751_v55  ;;  %v1738_v56 = vld [vmem:[%s2524_s9 + $0x20] sm:$0xf]  ;;  %v1889_v57 = vld [vmem:[%s2524_s9 + $0x24] sm:$0xf0] }
 0x304   : > { %v1913_v44 = vld [vmem:[%s2526_s11 + $0x68] sm:$0xff] }
 0x305   : > { %v1017_v59 = vperm.slane %v1011_v58, %v2237_v3  ;;  %v1012_v60 = vrot.slane %v1011_v58, 4  ;;  %v1888_v58 = vld [vmem:[%s2524_s9 + $0x24] sm:$0xf] }
 0x307   : > { %v1022_v61 = vrot.slane %v1017_v59, 4  ;;  %v1013_v62 = vsel %vm689_vm5, 0.0, %v1012_v60  ;;  %v1740_v60 = vld [vmem:[%s2524_s9 + $0x28] sm:$0xf0] }
 0x308   : > { %v1021_v63 = vperm.slane %v1013_v62, %v2237_v3  ;;  %v1881_v3 = vld [vmem:[%s2520_s5 + $0x28] sm:$0xff]  ;;  %v1730_v62 = vld [vmem:[%s2524_s9 + $0x10] sm:$0xf] }
 0x309   : > { %v1023_v0 = vsel %vm689_vm5, 0.0, %v1022_v61  ;;  %1111 = vmatpush.bf16.msrb.mxu1 %v1881_v3  ;;  %v1743_v61 = vor.u32 %v1888_v58, %v1740_v60  ;;  %v1885_v3 = vld [vmem:[%s2524_s9 + $0x4] sm:$0xf0]  ;;  %v1911_v60 = vld [vmem:[%s2526_s11 + $0x58] sm:$0xff] }
 0x30a   : > { %1027 = vrot.lane.b32.xlu2 %v1023_v0, %s1966_s27  ;;  %1031 = vrot.lane.b32.xlu1 %v1021_v63, %s1968_s29  ;;  %v1024_v2 = vrot.slane %v1021_v63, 4  ;;  %v1887_v63 = vld [vmem:[%s2524_s9 + $0x14] sm:$0xf0]  ;;  %v1886_v0 = vld [vmem:[%s2524_s9 + $0x14] sm:$0xf] }
 0x30b   : > { %1272 = vmatpush.bf16.msra.mxu3 %v1743_v61 }
 0x30c   : > { %v1025_v4 = vsel %vm689_vm5, 0.0, %v1024_v2  ;;  %v1731_v2 = vor.u32 %v1887_v63, %v1730_v62 }
 0x30d   : > { %1112 = vmatpush.bf16.msrb.mxu1 %v1880_v6 }
 0x311   : > { %1113 = vmatpush.bf16.msrb.mxu1 %v1879_v7  ;;  %v1884_v7 = vld [vmem:[%s2524_s9 + $0x4] sm:$0xf] }
 0x312   : > { %1035 = vrot.lane.b32.xlu2 %v1025_v4, %s1967_s28  ;;  %v1732_v4 = vld [vmem:[%s2524_s9 + $0x18] sm:$0xf0] }
 0x313   : > { %v1735_v6 = vor.u32 %v1886_v0, %v1732_v4 }
 0x315   : > { %1114 = vmatpush.bf16.msrb.mxu1 %v1878_v8  ;;  %v1724_v8 = vld [vmem:[%s2524_s9 + $0x8] sm:$0xf0]  ;;  %1273 = vmatpush.bf16.msra.mxu3 %v1735_v6  ;;  %v1910_v6 = vld [vmem:[%s2526_s11 + $0x50] sm:$0xff] }
 0x319   : > { %1115 = vmatpush.bf16.msrb.mxu1 %v1877_v9  ;;  %v1723_v9 = vor.u32 %v1885_v3, %v1722_v5  ;;  %v1902_v3 = vld [vmem:[%s2526_s11 + $0x10] sm:$0xff] }
 0x31d   : > { %1116 = vmatpush.bf16.msrb.mxu1 %v1876_v10  ;;  %v1727_v10 = vor.u32 %v1884_v7, %v1724_v8 }
 0x31f   : > { %1274 = vmatpush.bf16.msra.mxu3 %v1727_v10 }
 0x321   : > { %1512 = vmatpush.bf16.msra.mxu1 %v1915_v33 }
 0x325   : > { %1513 = vmatpush.bf16.msra.mxu1 %v1914_v38 }
 0x329   : > { %1514 = vmatpush.bf16.msra.mxu1 %v1913_v44 }
 0x32d   : > { %1515 = vmatpush.bf16.msra.mxu1 %v1912_v50 }
 0x331   : > { %1516 = vmatpush.bf16.msra.mxu1 %v1911_v60 }
 0x335   : > { %1517 = vmatpush.bf16.msra.mxu1 %v1910_v6 }
 0x364   : > { %v1028_v11 = vpop.permute.xlu2 %1027 }
 0x365   : > { %v1038_v12 = vsel %vm801_vm6, %v1017_v59, %v1028_v11  ;;  %v1739_v59 = vor.u32 %v1889_v57, %v1738_v56  ;;  %vm1528_vm6 = vsmask.f32 256 }
 0x366   : > { %vm1529_vm7 = vmand %vm436_vm0, %vm1528_vm6 }
 0x36c   : > { %v1036_v14 = vpop.permute.xlu2 %1035 }
 0x37c   : > { %v1032_v13 = vpop.permute.xlu1 %1031 }
 0x37d   : > { %v1040_v15 = vsel %vm1039_vm8, %v1038_v12, %v1032_v13 }
 0x37e   : > { %v1042_v16 = vsel %vm1041_vm9, %v1040_v15, %v1036_v14 }
 0x37f   : > { %v1043_v17 = vpack.c.bf16 %v1042_v16, %v1042_v16 }
 0x381   : > { %1117 = vmatmul.bf16.vlgmr.msrb.gmra.mxu1 %v1043_v17 }
 0x3fe   : > { %v1118_v20 = vpop.f32.mrf.mxu1 }
 0x3ff   : > { %v1119_v21 = vadd.f32 %v1118_v20, %v1060_v19 }
 0x401   : > { %v2310_v22 = vadd.f32 %v1119_v21, %v2056_v1  ;;  %v1899_v1 = vld [vmem:[%s2524_s9 + $0x74] sm:$0xf0] }
 0x402   : > { %v1779_v29 = vor.u32 %v1899_v1, %v1778_v28 }
 0x403   : > { %v1125_v23 = vsel %vm436_vm0, %v2310_v22, 0.0  ;;  %v1129_v25 = vmul.f32 %v2310_v22, %v2310_v22 }
 0x404   : > { %1126 = vadd.xlane.f32.xlu1 %v1125_v23  ;;  %1254 = vmatpush.bf16.msrb.mxu2 %v1779_v29 }
 0x405   : > { %v1130_v26 = vsel %vm436_vm0, %v1129_v25, 0.0 }
 0x406   : > { %v1120_v27 = vpop.f32.mrf.mxu1  ;;  %1131 = vadd.xlane.f32.xlu2 %v1130_v26 }
 0x408   : > { %1255 = vmatpush.bf16.msrb.mxu2 %v1771_v35  ;;  %v1250_v35 = vperm.slane %v1168_v34, 0 }
 0x40c   : > { %1256 = vmatpush.bf16.msrb.mxu2 %v1763_v41 }
 0x410   : > { %1257 = vmatpush.bf16.msrb.mxu2 %v1755_v47 }
 0x414   : > { %1258 = vmatpush.bf16.msrb.mxu2 %v1747_v53 }
 0x418   : > { %1259 = vmatpush.bf16.msrb.mxu2 %v1739_v59  ;;  %v1903_v59 = vld [vmem:[%s2526_s11 + $0x18] sm:$0xff] }
 0x419   : > { %1503 = vmatpush.bf16.msrb.mxu0 %v1903_v59 }
 0x41c   : > { %1260 = vmatpush.bf16.msrb.mxu2 %v1731_v2 }
 0x41d   : > { %1504 = vmatpush.bf16.msrb.mxu0 %v1902_v3 }
 0x420   : > { %1261 = vmatpush.bf16.msrb.mxu2 %v1723_v9 }
 0x477   : > { %v1127_v11 = vpop.xlane.xlu1 %1126 }
 0x478   : > { %v1128_v12 = vmul.f32 %v1127_v11, %v2216_v18 }
 0x479   : > { %v1132_v13 = vpop.xlane.xlu2 %1131 }
 0x47a   : > { %v1134_v14 = vmul.f32 %v1128_v12, %v1128_v12  ;;  %v1133_v15 = vmul.f32 %v1132_v13, %v2216_v18  ;;  %v1136_v27 = vsub.f32 %v2310_v22, %v1128_v12  ;;  %v1123_v18 = vld [vmem:[%s2522_s7] sm:$0x1]  ;;  %v1901_v13 = vld [vmem:[%s2526_s11 + $0x8] sm:$0xff] }
 0x47b   : > { %1505 = vmatpush.bf16.msrb.mxu0 %v1901_v13 }
 0x47c   : > { %v1135_v16 = vsub.f32 %v1133_v15, %v1134_v14  ;;  %v1909_v14 = vld [vmem:[%s2526_s11 + $0x48] sm:$0xff] }
 0x47d   : > { %1518 = vmatpush.bf16.msra.mxu1 %v1909_v14 }
 0x47e   : > { %v1137_v17 = vadd.f32 1e-05, %v1135_v16 }
 0x480   : > { %1951 = vrsqrt.f32 %v1137_v17  ;;  %vm1144_vm11 = vweird.f32 %v1137_v17 }
 0x486   : > { %v1952_v19 = vpop.eup %1951 }
 0x487   : > { %v1139_v20 = vmul.f32 %v1952_v19, %v1137_v17  ;;  %vm1145_vm10 = vweird.f32 %v1952_v19 }
 0x488   : > { %vm1146_vm12 = vmor %vm1144_vm11, %vm1145_vm10 }
 0x489   : > { %v1140_v21 = vmul.f32 %v1952_v19, %v1139_v20 }
 0x48b   : > { %v1141_v23 = vmul.f32 0.5, %v1140_v21 }
 0x48d   : > { %v1142_v25 = vsub.f32 1.5, %v1141_v23  ;;  %v1900_v23 = vld [vmem:[%s2526_s11] sm:$0xff] }
 0x48e   : > { %1506 = vmatpush.bf16.msrb.mxu0 %v1900_v23 }
 0x48f   : > { %v1143_v26 = vmul.f32 %v1952_v19, %v1142_v25  ;;  %v1908_v25 = vld [vmem:[%s2526_s11 + $0x40] sm:$0xff] }
 0x490   : > { %1519 = vmatpush.bf16.msra.mxu1 %v1908_v25 }
 0x491   : > { %v1147_v28 = vsel %vm1146_vm12, %v1952_v19, %v1143_v26 }
 0x492   : > { %v1148_v1 = vmul.f32 %v1147_v28, %v1136_v27 }
 0x494   : > { %v1149_v29 = vmul.f32 %v1148_v1, %v1123_v18 }
 0x496   : > { %v1150_v30 = vadd.f32 %v1149_v29, %v1124_v24 }
 0x498   : > { %v1151_v31 = vpack.c.bf16 %v1150_v30, %v1150_v30 }
 0x49a   : > { %1262 = vmatmul.bf16.vlgmr.msrb.gmra.mxu2 %v1151_v31  ;;  %1275 = vmatmul.bf16.vlgmr.msra.gmra.mxu3 %v1151_v31 }
 0x51d   : > { %v1263_v39 = vpop.f32.mrf.mxu2  ;;  %v1276_v40 = vpop.f32.mrf.mxu3 }
 0x51e   : > { %v2437_v41 = vadd.f32 %v1263_v39, %v1250_v35  ;;  %v2439_v42 = vadd.f32 %v1276_v40, %v1251_v36 }
 0x520   : > { %v2448_v45 = vmul.f32 0.70710677, %v2437_v41  ;;  %v2451_v46 = vmul.f32 0.70710677, %v2439_v42 }
 0x522   : > { %v1284_v47 = vmul.f32 %v2448_v45, %v2448_v45  ;;  %v1324_v48 = vmul.f32 %v2451_v46, %v2451_v46 }
 0x524   : > { %v1285_v51 = vmin.f32 %v1284_v47, 16.0  ;;  %v2463_v52 = vmin.f32 %v1324_v48, 16.0 }
 0x525   : > { %v1265_v53 = vpop.f32.mrf.mxu2  ;;  %v1278_v54 = vpop.f32.mrf.mxu3 }
 0x526   : > { %v1286_v55 = vmul.f32 2.1237322e-06, %v1285_v51  ;;  %v1297_v56 = vmul.f32 3.8918573e-05, %v1285_v51  ;;  %v1326_v57 = vmul.f32 2.1237322e-06, %v2463_v52 }
 0x527   : > { %v1337_v58 = vmul.f32 3.8918573e-05, %v2463_v52 }
 0x528   : > { %v1287_v61 = vadd.f32 0.00028619796, %v1286_v55  ;;  %v1298_v62 = vadd.f32 0.001143296, %v1297_v56  ;;  %v1327_v63 = vadd.f32 0.00028619796, %v1326_v57 }
 0x529   : > { %v1338_v0 = vadd.f32 0.001143296, %v1337_v58 }
 0x52a   : > { %v1288_v2 = vmul.f32 %v1287_v61, %v1285_v51  ;;  %v1299_v4 = vmul.f32 %v1298_v62, %v1285_v51  ;;  %v1328_v5 = vmul.f32 %v1327_v63, %v2463_v52 }
 0x52b   : > { %v1339_v7 = vmul.f32 %v1338_v0, %v2463_v52 }
 0x52c   : > { %v1289_v8 = vadd.f32 0.0036580483, %v1288_v2  ;;  %v1300_v9 = vadd.f32 0.014752088, %v1299_v4  ;;  %v1329_v12 = vadd.f32 0.0036580483, %v1328_v5 }
 0x52d   : > { %v1340_v10 = vadd.f32 0.014752088, %v1339_v7  ;;  %v1280_v7 = vmul.f32 0.5, %v2437_v41 }
 0x52e   : > { %v1301_v11 = vmul.f32 %v1300_v9, %v1285_v51  ;;  %v1290_v16 = vmul.f32 %v1289_v8, %v1285_v51  ;;  %v1330_v21 = vmul.f32 %v1329_v12, %v2463_v52 }
 0x52f   : > { %v1341_v15 = vmul.f32 %v1340_v10, %v2463_v52 }
 0x530   : > { %v1302_v17 = vadd.f32 0.112945676, %v1301_v11  ;;  %v1291_v27 = vadd.f32 0.05243302, %v1290_v16  ;;  %v1331_v24 = vadd.f32 0.05243302, %v1330_v21 }
 0x531   : > { %v1342_v19 = vadd.f32 0.112945676, %v1341_v15 }
 0x532   : > { %v1303_v20 = vmul.f32 %v1302_v17, %v1285_v51  ;;  %v1292_v30 = vmul.f32 %v1291_v27, %v1285_v51  ;;  %v1332_v33 = vmul.f32 %v1331_v24, %v2463_v52  ;;  %v1530_v17 = vld [vmem:[%s430_s17] sm:$0x1] }
 0x533   : > { %v1343_v26 = vmul.f32 %v1342_v19, %v2463_v52 }
 0x534   : > { %v1304_v28 = vadd.f32 0.4994258, %v1303_v20  ;;  %v1293_v34 = vadd.f32 0.18741608, %v1292_v30  ;;  %v1333_v35 = vadd.f32 0.18741608, %v1332_v33 }
 0x535   : > { %v1344_v18 = vadd.f32 0.4994258, %v1343_v26 }
 0x536   : > { %v1305_v1 = vmul.f32 %v1304_v28, %v1285_v51  ;;  %v1294_v37 = vmul.f32 %v1293_v34, %v1285_v51  ;;  %v1334_v40 = vmul.f32 %v1333_v35, %v2463_v52 }
 0x537   : > { %v1345_v29 = vmul.f32 %v1344_v18, %v2463_v52 }
 0x538   : > { %v1306_v31 = vadd.f32 1.0, %v1305_v1  ;;  %v1295_v47 = vadd.f32 1.1283791, %v1294_v37  ;;  %v1335_v55 = vadd.f32 1.1283791, %v1334_v40 }
 0x539   : > { %v1346_v32 = vadd.f32 1.0, %v1345_v29 }
 0x53a   : > { %1953 = vrcp.f32 %v1306_v31  ;;  %v1318_v48 = vand.u32 2147483648, %v1306_v31  ;;  %v1316_v53 = vand.u32 2147483647, %v1306_v31  ;;  %vm1312_vm15 = vweird.f32 %v1306_v31 }
 0x53b   : > { %1955 = vrcp.f32 %v1346_v32  ;;  %v1358_v54 = vand.u32 2147483648, %v1346_v32  ;;  %v1356_v57 = vand.u32 2147483647, %v1346_v32  ;;  %vm1352_vm2 = vweird.f32 %v1346_v32 }
 0x53c   : > { %v1319_v51 = vor.u32 1.1754944e-38, %v1318_v48  ;;  %v1296_v52 = vmul.f32 %v1295_v47, %v2448_v45  ;;  %vm1317_vm3 = vcmp.eq.f32.partialorder %v1316_v53, 8.507059e+37  ;;  %v1336_v63 = vmul.f32 %v1335_v55, %v2451_v46  ;;  %v1402_v46 = vld [vmem:[%s2527_s12] sm:$0x1] }
 0x53d   : > { %v1359_v61 = vor.u32 1.1754944e-38, %v1358_v54  ;;  %vm1357_vm5 = vcmp.eq.f32.partialorder %v1356_v57, 8.507059e+37  ;;  %v1281_v45 = vmul.f32 0.5, %v2439_v42 }
 0x540   : > { %v1954_v36 = vpop.eup %1953 }
 0x541   : > { %v1956_v38 = vpop.eup %1955  ;;  %v1308_v39 = vmul.f32 %v1954_v36, %v1306_v31  ;;  %vm1313_vm13 = vweird.f32 %v1954_v36 }
 0x542   : > { %v1348_v43 = vmul.f32 %v1956_v38, %v1346_v32  ;;  %vm1353_vm14 = vweird.f32 %v1956_v38  ;;  %vm1314_vm1 = vmor %vm1312_vm15, %vm1313_vm13 }
 0x543   : > { %v1309_v44 = vsub.f32 1.0, %v1308_v39  ;;  %vm1354_vm4 = vmor %vm1352_vm2, %vm1353_vm14 }
 0x544   : > { %v1349_v49 = vsub.f32 1.0, %v1348_v43 }
 0x545   : > { %v1310_v50 = vmul.f32 %v1954_v36, %v1309_v44 }
 0x546   : > { %v1350_v56 = vmul.f32 %v1956_v38, %v1349_v49 }
 0x547   : > { %v1311_v58 = vadd.f32 %v1954_v36, %v1310_v50 }
 0x548   : > { %v1351_v59 = vadd.f32 %v1956_v38, %v1350_v56 }
 0x549   : > { %v1315_v60 = vsel %vm1314_vm1, %v1954_v36, %v1311_v58 }
 0x54a   : > { %v1320_v62 = vsel %vm1317_vm3, %v1319_v51, %v1315_v60  ;;  %v1355_v0 = vsel %vm1354_vm4, %v1956_v38, %v1351_v59 }
 0x54b   : > { %v1321_v2 = vmul.f32 %v1320_v62, %v1296_v52  ;;  %v1360_v4 = vsel %vm1357_vm5, %v1359_v61, %v1355_v0 }
 0x54c   : > { %v1361_v5 = vmul.f32 %v1360_v4, %v1336_v63 }
 0x54d   : > { %v1784_v3 = vclamps-f32 %v1321_v2, 1.0 }
 0x54e   : > { %v1785_v6 = vclamps-f32 %v1361_v5, 1.0 }
 0x54f   : > { %v1364_v8 = vadd.f32 1.0, %v1784_v3 }
 0x550   : > { %v1365_v9 = vadd.f32 1.0, %v1785_v6 }
 0x551   : > { %v1366_v10 = vmul.f32 %v1364_v8, %v1280_v7 }
 0x552   : > { %v1367_v11 = vmul.f32 %v1365_v9, %v1281_v45 }
 0x553   : > { %v1368_v12 = vpack.c.bf16 %v1366_v10, %v1366_v10 }
 0x554   : > { %v1369_v13 = vpack.c.bf16 %v1367_v11, %v1367_v11 }
 0x555   : > { %1507 = vmatmul.bf16.vlgmr.msrb.gmra.mxu0 %v1368_v12 }
 0x556   : > { %1520 = vmatmul.bf16.vlgmr.msra.gmra.mxu1 %v1369_v13 }
 0x5d2   : > { %v1508_v14 = vpop.f32.mrf.mxu0 }
 0x5d3   : > { %v1509_v15 = vadd.f32 %v1508_v14, %v1402_v46  ;;  %v1521_v16 = vpop.f32.mrf.mxu1 }
 0x5d5   : > { %v1522_v41 = vadd.f32 %v1521_v16, %v1509_v15 }
 0x5d7   : > { %v1525_v42 = vadd.f32 %v1522_v41, %v2310_v22 }
 0x5d9   : > { %v1526_v19 = vpack.c.bf16 %v1525_v42, %v1525_v42 }
 0x5da   : > { %v1510_v20 = vpop.f32.mrf.mxu0 }
 0x5db   : > { %v1531_v21 = vsel %vm1529_vm7, %v1526_v19, %v1530_v17  ;;  %v1523_v23 = vpop.f32.mrf.mxu1 }
 0x5dc   : > { %1532 = vst [vmem:[%s430_s17] sm:$0x1] %v1531_v21 }
 0x5dd PF: > { %s23_s25 = sadd.s32 1, %s1963_s25  }
 0x5de   : > { %p20_p4 = scmp.ge.s32.totalorder %s23_s25, 4  }
 0x5e0   :  { %22 = sbr.rel (!%p20_p4) target bundleno = 1 (0x1), region = 102 }

</bundles_post_ra>
